<compile_context>
chip_gen: v5e
topology: v5e:2x2
jax: 0.10.0
libtpu: 0.0.40
codegen_flags: <defaults>
</compile_context>

<pallas_src>
import functools

import jax
import jax.numpy as jnp
from jax import lax
from jax.experimental import pallas as pl
from jax.experimental.pallas import tpu as pltpu

BN_EPS = 1e-5


def _linear_bn_kernel(x_ref, w_ref, g_ref, b_ref, o_ref, acc_ref,
                      *, apply_relu, inv_n):
    """One output-feature tile of out = act(BN(x @ W)).

    Grid = (out_feature_tiles, k_tiles); K (reduction) is the last grid axis.
      x_ref  : (N, tk)   bf16  activation chunk (whole batch, K slice)
      w_ref  : (tk, tn)  bf16  weight chunk
      g_ref  : (1, tn)   f32   BN gamma (ones when affine=False)
      b_ref  : (1, tn)   f32   BN beta  (zeros when affine=False)
      o_ref  : (N, tn)         output tile
      acc_ref: (N, tn)   f32   matmul accumulator (VMEM scratch)
    """
    k = pl.program_id(1)

    @pl.when(k == 0)
    def _():
        acc_ref[...] = jnp.zeros_like(acc_ref)

    acc_ref[...] += jnp.dot(x_ref[...], w_ref[...],
                            preferred_element_type=jnp.float32)

    @pl.when(k == pl.num_programs(1) - 1)
    def _():
        h = acc_ref[...]
        # Training-mode BN over the (whole, untiled) batch axis.
        # Single-pass stats: sum and sum-of-squares -> E[x^2] - mean^2.
        mean = jnp.sum(h, axis=0, keepdims=True) * inv_n
        var = jnp.sum(h * h, axis=0, keepdims=True) * inv_n - mean * mean
        var = jnp.maximum(var, 0.0)
        # Fused scale/shift: a single multiply-add pass over the (N, tn) tile.
        scale = lax.rsqrt(var + BN_EPS) * g_ref[...]
        shift = b_ref[...] - mean * scale
        out = h * scale + shift
        if apply_relu:
            out = jnp.maximum(out, 0.0)
        o_ref[...] = out.astype(o_ref.dtype)


def _pick_tile(dim, want):
    t = min(want, dim)
    return t if dim % t == 0 else dim   # production dims are 128-aligned


def _linear_bn(x, w, gamma, beta, *, apply_relu, out_dtype, tn=128, tk=256):
    """out = act(BN(x @ w)) as one tiled pallas_call."""
    n, kdim = x.shape
    kdim_w, odim = w.shape
    assert kdim == kdim_w, (x.shape, w.shape)
    tn = _pick_tile(odim, tn)
    tk = _pick_tile(kdim, tk)
    grid = (odim // tn, kdim // tk)

    # Explicit VMEM budget: double-buffered input/output blocks + f32
    # accumulator, with headroom, capped below v7x's 64 MiB physical VMEM.
    x_b = jnp.dtype(x.dtype).itemsize
    w_b = jnp.dtype(w.dtype).itemsize
    o_b = jnp.dtype(out_dtype).itemsize
    est = (2 * (n * tk * x_b + tk * tn * w_b + 2 * tn * 4 + n * tn * o_b)
           + n * tn * 4)
    vmem_limit = int(min(max(2 * est, 8 * 1024 * 1024), 60 * 1024 * 1024))

    kernel = functools.partial(_linear_bn_kernel,
                               apply_relu=apply_relu, inv_n=1.0 / n)
    return pl.pallas_call(
        kernel,
        out_shape=jax.ShapeDtypeStruct((n, odim), out_dtype),
        grid_spec=pltpu.PrefetchScalarGridSpec(
            num_scalar_prefetch=0,
            grid=grid,
            in_specs=[
                pl.BlockSpec((n, tk), lambda j, k: (0, k)),    # x : K slice
                pl.BlockSpec((tk, tn), lambda j, k: (k, j)),   # w : (K, out) tile
                pl.BlockSpec((1, tn), lambda j, k: (0, j)),    # gamma
                pl.BlockSpec((1, tn), lambda j, k: (0, j)),    # beta
            ],
            out_specs=pl.BlockSpec((n, tn), lambda j, k: (0, j)),
            scratch_shapes=[pltpu.VMEM((n, tn), jnp.float32)],
        ),
        compiler_params=pltpu.CompilerParams(
            dimension_semantics=("parallel", "arbitrary"),
            vmem_limit_bytes=vmem_limit,
        ),
    )(x, w, gamma, beta)


def moco_head_forward(x, params, *, tn=128, tk=256):
    """3-layer MoCo projection head forward (training-mode BN)."""
    # bf16 inter-layer activations: halve HBM<->VMEM traffic and feed the MXU
    # natively.  BN / ReLU math stays f32 inside the kernels.
    h = x.astype(jnp.bfloat16)
    h = _linear_bn(h, params["w1"], params["g1"], params["b1"],
                   apply_relu=True, out_dtype=jnp.bfloat16, tn=tn, tk=tk)
    h = _linear_bn(h, params["w2"], params["g2"], params["b2"],
                   apply_relu=True, out_dtype=jnp.bfloat16, tn=tn, tk=tk)
    # Final layer: BN(affine=False) -> identity gamma/beta, no ReLU, f32 out.
    return _linear_bn(h, params["w3"], params["g3"], params["b3"],
                      apply_relu=False, out_dtype=jnp.float32, tn=tn, tk=tk)


def init_params(key, in_dim, hidden_dim, bottleneck_dim):
    """Deterministic synthetic parameters (shapes match the PyTorch module).

    Linear weights are stored pre-transposed as (in, out) and in bfloat16
    (MXU operand dtype).  BN gammas/betas are f32.
    """
    k1, k2, k3 = jax.random.split(key, 3)

    def linear_w(k, fan_in, fan_out):
        # PyTorch nn.Linear default init: U(-1/sqrt(fan_in), 1/sqrt(fan_in)).
        bound = 1.0 / jnp.sqrt(float(fan_in))
        w = jax.random.uniform(k, (fan_in, fan_out), jnp.float32,
                               minval=-bound, maxval=bound)
        return w.astype(jnp.bfloat16)

    return {
        "w1": linear_w(k1, in_dim, hidden_dim),
        "g1": jnp.ones((1, hidden_dim), jnp.float32),
        "b1": jnp.zeros((1, hidden_dim), jnp.float32),
        "w2": linear_w(k2, hidden_dim, hidden_dim),
        "g2": jnp.ones((1, hidden_dim), jnp.float32),
        "b2": jnp.zeros((1, hidden_dim), jnp.float32),
        "w3": linear_w(k3, hidden_dim, bottleneck_dim),
        # Last BN is affine=False -> identity scale/shift.
        "g3": jnp.ones((1, bottleneck_dim), jnp.float32),
        "b3": jnp.zeros((1, bottleneck_dim), jnp.float32),
    }


def _reference_forward(x, p):
    """Pure-JAX reference of the PyTorch forward (training-mode BN), using the
    same bf16 MXU operands / f32 accumulation as the kernel."""
    def bn(h, g, b):
        n = h.shape[0]
        mean = jnp.sum(h, axis=0, keepdims=True) / n
        var = jnp.maximum(
            jnp.sum(h * h, axis=0, keepdims=True) / n - mean * mean, 0.0)
        scale = lax.rsqrt(var + BN_EPS) * g
        shift = b - mean * scale
        return h * scale + shift

    def lin(h, w):
        return jnp.dot(h.astype(jnp.bfloat16), w.astype(jnp.bfloat16),
                       preferred_element_type=jnp.float32)

    h = jax.nn.relu(bn(lin(x, p["w1"]), p["g1"], p["b1"]))
    h = jax.nn.relu(bn(lin(h, p["w2"]), p["g2"], p["b2"]))
    return bn(lin(h, p["w3"]), p["g3"], p["b3"])


if __name__ == "__main__":
    # Small but lane/MXU-friendly shapes: batch=256, in=128, hidden=256,
    # bottleneck=128 (multiples of 128 so vregs stay lane-dense and the
    # feature/K grids have >1 tile to exercise the pipeline).
    N, IN_DIM, HIDDEN_DIM, BOTTLENECK_DIM = 256, 128, 256, 128

    key = jax.random.PRNGKey(0)
    kx, kp = jax.random.split(key)
    x = jax.random.normal(kx, (N, IN_DIM), dtype=jnp.float32)
    params = init_params(kp, IN_DIM, HIDDEN_DIM, BOTTLENECK_DIM)

    fwd = jax.jit(moco_head_forward)
    out = jax.block_until_ready(fwd(x, params))

    ref = jax.block_until_ready(_reference_forward(x, params))
    assert out.shape == (N, BOTTLENECK_DIM)
    assert out.dtype == jnp.float32
    # bf16 matmul operands -> compare against the matching-precision reference
    # with a bf16-appropriate tolerance.
    assert jnp.allclose(out, ref, atol=3e-2, rtol=3e-2), (
        "mismatch vs JAX reference: max abs err = "
        f"{float(jnp.max(jnp.abs(out - ref)))}")

    print("KERNEL_OK")
</pallas_src>

<mosaic_0001>
module attributes {stable_mosaic.version = 11 : i64} {
  func.func @_linear_bn_kernel(%arg0: i32, %arg1: i32, %arg2: memref<256x128xbf16, #tpu.memory_space<vmem>>, %arg3: memref<128x128xbf16, #tpu.memory_space<vmem>>, %arg4: memref<1x128xf32, #tpu.memory_space<vmem>>, %arg5: memref<1x128xf32, #tpu.memory_space<vmem>>, %arg6: memref<256x128xbf16, #tpu.memory_space<vmem>>, %arg7: memref<256x128xf32, #tpu.memory_space<vmem>>) attributes {dimension_semantics = [#tpu.dimension_semantics<parallel>, #tpu.dimension_semantics<arbitrary>], iteration_bounds = array<i64: 2, 1>, scalar_prefetch = 0 : i64, scratch_operands = 1 : i64, tpu.core_type = #tpu.core_type<tc>, window_params = [{transform_indices = @transform_0, window_bounds = array<i64: 256, 128>}, {transform_indices = @transform_1, window_bounds = array<i64: 128, 128>}, {transform_indices = @transform_2, window_bounds = array<i64: 1, 128>}, {transform_indices = @transform_3, window_bounds = array<i64: 1, 128>}, {transform_indices = @transform_4, window_bounds = array<i64: 256, 128>}]} {
    %c0_i32 = arith.constant 0 : i32
    %0 = arith.cmpi eq, %arg1, %c0_i32 : i32
    %1 = arith.extui %0 : i1 to i32
    %c0_i32_0 = arith.constant 0 : i32
    %2 = arith.cmpi ne, %1, %c0_i32_0 : i32
    scf.if %2 {
      %cst_10 = arith.constant 0.000000e+00 : f32
      %12 = vector.broadcast %cst_10 : f32 to vector<256x128xf32>
      %c0_11 = arith.constant 0 : index
      %c0_12 = arith.constant 0 : index
      %13 = vector.load %arg7[%c0_11, %c0_12] : memref<256x128xf32, #tpu.memory_space<vmem>>, vector<256x128xf32>
      tpu.vector_store %arg7[%c0_11, %c0_12], %12 {strides = array<i32>} : memref<256x128xf32, #tpu.memory_space<vmem>>, vector<256x128xf32>,
    } else {
    }
    %c0 = arith.constant 0 : index
    %c0_1 = arith.constant 0 : index
    %3 = vector.load %arg7[%c0, %c0_1] : memref<256x128xf32, #tpu.memory_space<vmem>>, vector<256x128xf32>
    %c0_2 = arith.constant 0 : index
    %c0_3 = arith.constant 0 : index
    %4 = vector.load %arg2[%c0_2, %c0_3] : memref<256x128xbf16, #tpu.memory_space<vmem>>, vector<256x128xbf16>
    %c0_4 = arith.constant 0 : index
    %c0_5 = arith.constant 0 : index
    %5 = vector.load %arg3[%c0_4, %c0_5] : memref<128x128xbf16, #tpu.memory_space<vmem>>, vector<128x128xbf16>
    %cst = arith.constant dense<0.000000e+00> : vector<256x128xf32>
    %6 = tpu.matmul %4, %5, %cst {dimension_numbers = #tpu.dot_dimension_numbers<[1], [0], [0], [1], [0, 0, 1, 1], [], []>} : vector<256x128xbf16>, vector<128x128xbf16>, vector<256x128xf32> -> vector<256x128xf32>
    %7 = arith.addf %3, %6 : vector<256x128xf32>
    %c0_6 = arith.constant 0 : index
    %c0_7 = arith.constant 0 : index
    %8 = vector.load %arg7[%c0_6, %c0_7] : memref<256x128xf32, #tpu.memory_space<vmem>>, vector<256x128xf32>
    tpu.vector_store %arg7[%c0_6, %c0_7], %7 {strides = array<i32>} : memref<256x128xf32, #tpu.memory_space<vmem>>, vector<256x128xf32>,
    %c0_i32_8 = arith.constant 0 : i32
    %9 = arith.cmpi eq, %arg1, %c0_i32_8 : i32
    %10 = arith.extui %9 : i1 to i32
    %c0_i32_9 = arith.constant 0 : i32
    %11 = arith.cmpi ne, %10, %c0_i32_9 : i32
    scf.if %11 {
      %c0_10 = arith.constant 0 : index
      %c0_11 = arith.constant 0 : index
      %12 = vector.load %arg7[%c0_10, %c0_11] : memref<256x128xf32, #tpu.memory_space<vmem>>, vector<256x128xf32>
      %cst_12 = arith.constant dense<0.000000e+00> : vector<128xf32>
      %13 = vector.multi_reduction <add>, %12, %cst_12 [0] : vector<256x128xf32> to vector<128xf32>
      %14 = vector.shape_cast %13 : vector<128xf32> to vector<1x128xf32>
      %cst_13 = arith.constant 3.906250e-03 : f32
      %15 = vector.broadcast %cst_13 : f32 to vector<1x128xf32>
      %16 = arith.mulf %14, %15 : vector<1x128xf32>
      %17 = arith.mulf %12, %12 : vector<256x128xf32>
      %cst_14 = arith.constant dense<0.000000e+00> : vector<128xf32>
      %18 = vector.multi_reduction <add>, %17, %cst_14 [0] : vector<256x128xf32> to vector<128xf32>
      %19 = vector.shape_cast %18 : vector<128xf32> to vector<1x128xf32>
      %cst_15 = arith.constant 3.906250e-03 : f32
      %20 = vector.broadcast %cst_15 : f32 to vector<1x128xf32>
      %21 = arith.mulf %19, %20 : vector<1x128xf32>
      %22 = arith.mulf %16, %16 : vector<1x128xf32>
      %23 = arith.subf %21, %22 : vector<1x128xf32>
      %cst_16 = arith.constant 0.000000e+00 : f32
      %24 = vector.broadcast %cst_16 : f32 to vector<1x128xf32>
      %25 = arith.maximumf %23, %24 : vector<1x128xf32>
      %cst_17 = arith.constant 9.99999974E-6 : f32
      %26 = vector.broadcast %cst_17 : f32 to vector<1x128xf32>
      %27 = arith.addf %25, %26 : vector<1x128xf32>
      %28 = math.rsqrt %27 : vector<1x128xf32>
      %c0_18 = arith.constant 0 : index
      %c0_19 = arith.constant 0 : index
      %29 = vector.load %arg4[%c0_18, %c0_19] : memref<1x128xf32, #tpu.memory_space<vmem>>, vector<1x128xf32>
      %30 = arith.mulf %28, %29 : vector<1x128xf32>
      %c0_20 = arith.constant 0 : index
      %c0_21 = arith.constant 0 : index
      %31 = vector.load %arg5[%c0_20, %c0_21] : memref<1x128xf32, #tpu.memory_space<vmem>>, vector<1x128xf32>
      %32 = arith.mulf %16, %30 : vector<1x128xf32>
      %33 = arith.subf %31, %32 : vector<1x128xf32>
      %34 = vector.broadcast %30 : vector<1x128xf32> to vector<256x128xf32>
      %35 = arith.mulf %12, %34 : vector<256x128xf32>
      %36 = vector.broadcast %33 : vector<1x128xf32> to vector<256x128xf32>
      %37 = arith.addf %35, %36 : vector<256x128xf32>
      %cst_22 = arith.constant 0.000000e+00 : f32
      %38 = vector.broadcast %cst_22 : f32 to vector<256x128xf32>
      %39 = arith.maximumf %37, %38 : vector<256x128xf32>
      %40 = arith.truncf %39 : vector<256x128xf32> to vector<256x128xbf16>
      %c0_23 = arith.constant 0 : index
      %c0_24 = arith.constant 0 : index
      %41 = vector.load %arg6[%c0_23, %c0_24] : memref<256x128xbf16, #tpu.memory_space<vmem>>, vector<256x128xbf16>
      tpu.vector_store %arg6[%c0_23, %c0_24], %40 {strides = array<i32>} : memref<256x128xbf16, #tpu.memory_space<vmem>>, vector<256x128xbf16>,
    } else {
    }
    return
  }
  func.func @transform_0(%arg0: i32, %arg1: i32) -> (i32, i32) {
    %c0_i32 = arith.constant 0 : i32
    %c0_i32_0 = arith.constant 0 : i32
    return %c0_i32, %arg1 : i32, i32
  }
  func.func @transform_1(%arg0: i32, %arg1: i32) -> (i32, i32) {
    %c0_i32 = arith.constant 0 : i32
    return %arg1, %arg0 : i32, i32
  }
  func.func @transform_2(%arg0: i32, %arg1: i32) -> (i32, i32) {
    %c0_i32 = arith.constant 0 : i32
    %c0_i32_0 = arith.constant 0 : i32
    return %c0_i32, %arg0 : i32, i32
  }
  func.func @transform_3(%arg0: i32, %arg1: i32) -> (i32, i32) {
    %c0_i32 = arith.constant 0 : i32
    %c0_i32_0 = arith.constant 0 : i32
    return %c0_i32, %arg0 : i32, i32
  }
  func.func @transform_4(%arg0: i32, %arg1: i32) -> (i32, i32) {
    %c0_i32 = arith.constant 0 : i32
    %c0_i32_0 = arith.constant 0 : i32
    return %c0_i32, %arg0 : i32, i32
  }
}

module attributes {stable_mosaic.version = 11 : i64} {
  func.func @_linear_bn_kernel(%arg0: i32, %arg1: i32, %arg2: memref<256x256xbf16, #tpu.memory_space<vmem>>, %arg3: memref<256x128xbf16, #tpu.memory_space<vmem>>, %arg4: memref<1x128xf32, #tpu.memory_space<vmem>>, %arg5: memref<1x128xf32, #tpu.memory_space<vmem>>, %arg6: memref<256x128xf32, #tpu.memory_space<vmem>>, %arg7: memref<256x128xf32, #tpu.memory_space<vmem>>) attributes {dimension_semantics = [#tpu.dimension_semantics<parallel>, #tpu.dimension_semantics<arbitrary>], iteration_bounds = array<i64: 1, 1>, scalar_prefetch = 0 : i64, scratch_operands = 1 : i64, tpu.core_type = #tpu.core_type<tc>, window_params = [{transform_indices = @transform_0, window_bounds = array<i64: 256, 256>}, {transform_indices = @transform_1, window_bounds = array<i64: 256, 128>}, {transform_indices = @transform_2, window_bounds = array<i64: 1, 128>}, {transform_indices = @transform_3, window_bounds = array<i64: 1, 128>}, {transform_indices = @transform_4, window_bounds = array<i64: 256, 128>}]} {
    %c0_i32 = arith.constant 0 : i32
    %0 = arith.cmpi eq, %arg1, %c0_i32 : i32
    %1 = arith.extui %0 : i1 to i32
    %c0_i32_0 = arith.constant 0 : i32
    %2 = arith.cmpi ne, %1, %c0_i32_0 : i32
    scf.if %2 {
      %cst_10 = arith.constant 0.000000e+00 : f32
      %12 = vector.broadcast %cst_10 : f32 to vector<256x128xf32>
      %c0_11 = arith.constant 0 : index
      %c0_12 = arith.constant 0 : index
      %13 = vector.load %arg7[%c0_11, %c0_12] : memref<256x128xf32, #tpu.memory_space<vmem>>, vector<256x128xf32>
      tpu.vector_store %arg7[%c0_11, %c0_12], %12 {strides = array<i32>} : memref<256x128xf32, #tpu.memory_space<vmem>>, vector<256x128xf32>,
    } else {
    }
    %c0 = arith.constant 0 : index
    %c0_1 = arith.constant 0 : index
    %3 = vector.load %arg7[%c0, %c0_1] : memref<256x128xf32, #tpu.memory_space<vmem>>, vector<256x128xf32>
    %c0_2 = arith.constant 0 : index
    %c0_3 = arith.constant 0 : index
    %4 = vector.load %arg2[%c0_2, %c0_3] : memref<256x256xbf16, #tpu.memory_space<vmem>>, vector<256x256xbf16>
    %c0_4 = arith.constant 0 : index
    %c0_5 = arith.constant 0 : index
    %5 = vector.load %arg3[%c0_4, %c0_5] : memref<256x128xbf16, #tpu.memory_space<vmem>>, vector<256x128xbf16>
    %cst = arith.constant dense<0.000000e+00> : vector<256x128xf32>
    %6 = tpu.matmul %4, %5, %cst {dimension_numbers = #tpu.dot_dimension_numbers<[1], [0], [0], [1], [0, 0, 1, 1], [], []>} : vector<256x256xbf16>, vector<256x128xbf16>, vector<256x128xf32> -> vector<256x128xf32>
    %7 = arith.addf %3, %6 : vector<256x128xf32>
    %c0_6 = arith.constant 0 : index
    %c0_7 = arith.constant 0 : index
    %8 = vector.load %arg7[%c0_6, %c0_7] : memref<256x128xf32, #tpu.memory_space<vmem>>, vector<256x128xf32>
    tpu.vector_store %arg7[%c0_6, %c0_7], %7 {strides = array<i32>} : memref<256x128xf32, #tpu.memory_space<vmem>>, vector<256x128xf32>,
    %c0_i32_8 = arith.constant 0 : i32
    %9 = arith.cmpi eq, %arg1, %c0_i32_8 : i32
    %10 = arith.extui %9 : i1 to i32
    %c0_i32_9 = arith.constant 0 : i32
    %11 = arith.cmpi ne, %10, %c0_i32_9 : i32
    scf.if %11 {
      %c0_10 = arith.constant 0 : index
      %c0_11 = arith.constant 0 : index
      %12 = vector.load %arg7[%c0_10, %c0_11] : memref<256x128xf32, #tpu.memory_space<vmem>>, vector<256x128xf32>
      %cst_12 = arith.constant dense<0.000000e+00> : vector<128xf32>
      %13 = vector.multi_reduction <add>, %12, %cst_12 [0] : vector<256x128xf32> to vector<128xf32>
      %14 = vector.shape_cast %13 : vector<128xf32> to vector<1x128xf32>
      %cst_13 = arith.constant 3.906250e-03 : f32
      %15 = vector.broadcast %cst_13 : f32 to vector<1x128xf32>
      %16 = arith.mulf %14, %15 : vector<1x128xf32>
      %17 = arith.mulf %12, %12 : vector<256x128xf32>
      %cst_14 = arith.constant dense<0.000000e+00> : vector<128xf32>
      %18 = vector.multi_reduction <add>, %17, %cst_14 [0] : vector<256x128xf32> to vector<128xf32>
      %19 = vector.shape_cast %18 : vector<128xf32> to vector<1x128xf32>
      %cst_15 = arith.constant 3.906250e-03 : f32
      %20 = vector.broadcast %cst_15 : f32 to vector<1x128xf32>
      %21 = arith.mulf %19, %20 : vector<1x128xf32>
      %22 = arith.mulf %16, %16 : vector<1x128xf32>
      %23 = arith.subf %21, %22 : vector<1x128xf32>
      %cst_16 = arith.constant 0.000000e+00 : f32
      %24 = vector.broadcast %cst_16 : f32 to vector<1x128xf32>
      %25 = arith.maximumf %23, %24 : vector<1x128xf32>
      %cst_17 = arith.constant 9.99999974E-6 : f32
      %26 = vector.broadcast %cst_17 : f32 to vector<1x128xf32>
      %27 = arith.addf %25, %26 : vector<1x128xf32>
      %28 = math.rsqrt %27 : vector<1x128xf32>
      %c0_18 = arith.constant 0 : index
      %c0_19 = arith.constant 0 : index
      %29 = vector.load %arg4[%c0_18, %c0_19] : memref<1x128xf32, #tpu.memory_space<vmem>>, vector<1x128xf32>
      %30 = arith.mulf %28, %29 : vector<1x128xf32>
      %c0_20 = arith.constant 0 : index
      %c0_21 = arith.constant 0 : index
      %31 = vector.load %arg5[%c0_20, %c0_21] : memref<1x128xf32, #tpu.memory_space<vmem>>, vector<1x128xf32>
      %32 = arith.mulf %16, %30 : vector<1x128xf32>
      %33 = arith.subf %31, %32 : vector<1x128xf32>
      %34 = vector.broadcast %30 : vector<1x128xf32> to vector<256x128xf32>
      %35 = arith.mulf %12, %34 : vector<256x128xf32>
      %36 = vector.broadcast %33 : vector<1x128xf32> to vector<256x128xf32>
      %37 = arith.addf %35, %36 : vector<256x128xf32>
      %c0_22 = arith.constant 0 : index
      %c0_23 = arith.constant 0 : index
      %38 = vector.load %arg6[%c0_22, %c0_23] : memref<256x128xf32, #tpu.memory_space<vmem>>, vector<256x128xf32>
      tpu.vector_store %arg6[%c0_22, %c0_23], %37 {strides = array<i32>} : memref<256x128xf32, #tpu.memory_space<vmem>>, vector<256x128xf32>,
    } else {
    }
    return
  }
  func.func @transform_0(%arg0: i32, %arg1: i32) -> (i32, i32) {
    %c0_i32 = arith.constant 0 : i32
    %c0_i32_0 = arith.constant 0 : i32
    return %c0_i32, %arg1 : i32, i32
  }
  func.func @transform_1(%arg0: i32, %arg1: i32) -> (i32, i32) {
    %c0_i32 = arith.constant 0 : i32
    return %arg1, %arg0 : i32, i32
  }
  func.func @transform_2(%arg0: i32, %arg1: i32) -> (i32, i32) {
    %c0_i32 = arith.constant 0 : i32
    %c0_i32_0 = arith.constant 0 : i32
    return %c0_i32, %arg0 : i32, i32
  }
  func.func @transform_3(%arg0: i32, %arg1: i32) -> (i32, i32) {
    %c0_i32 = arith.constant 0 : i32
    %c0_i32_0 = arith.constant 0 : i32
    return %c0_i32, %arg0 : i32, i32
  }
  func.func @transform_4(%arg0: i32, %arg1: i32) -> (i32, i32) {
    %c0_i32 = arith.constant 0 : i32
    %c0_i32_0 = arith.constant 0 : i32
    return %c0_i32, %arg0 : i32, i32
  }
}

module attributes {stable_mosaic.version = 11 : i64} {
  func.func @_linear_bn_kernel(%arg0: i32, %arg1: i32, %arg2: memref<256x256xbf16, #tpu.memory_space<vmem>>, %arg3: memref<256x128xbf16, #tpu.memory_space<vmem>>, %arg4: memref<1x128xf32, #tpu.memory_space<vmem>>, %arg5: memref<1x128xf32, #tpu.memory_space<vmem>>, %arg6: memref<256x128xbf16, #tpu.memory_space<vmem>>, %arg7: memref<256x128xf32, #tpu.memory_space<vmem>>) attributes {dimension_semantics = [#tpu.dimension_semantics<parallel>, #tpu.dimension_semantics<arbitrary>], iteration_bounds = array<i64: 2, 1>, scalar_prefetch = 0 : i64, scratch_operands = 1 : i64, tpu.core_type = #tpu.core_type<tc>, window_params = [{transform_indices = @transform_0, window_bounds = array<i64: 256, 256>}, {transform_indices = @transform_1, window_bounds = array<i64: 256, 128>}, {transform_indices = @transform_2, window_bounds = array<i64: 1, 128>}, {transform_indices = @transform_3, window_bounds = array<i64: 1, 128>}, {transform_indices = @transform_4, window_bounds = array<i64: 256, 128>}]} {
    %c0_i32 = arith.constant 0 : i32
    %0 = arith.cmpi eq, %arg1, %c0_i32 : i32
    %1 = arith.extui %0 : i1 to i32
    %c0_i32_0 = arith.constant 0 : i32
    %2 = arith.cmpi ne, %1, %c0_i32_0 : i32
    scf.if %2 {
      %cst_10 = arith.constant 0.000000e+00 : f32
      %12 = vector.broadcast %cst_10 : f32 to vector<256x128xf32>
      %c0_11 = arith.constant 0 : index
      %c0_12 = arith.constant 0 : index
      %13 = vector.load %arg7[%c0_11, %c0_12] : memref<256x128xf32, #tpu.memory_space<vmem>>, vector<256x128xf32>
      tpu.vector_store %arg7[%c0_11, %c0_12], %12 {strides = array<i32>} : memref<256x128xf32, #tpu.memory_space<vmem>>, vector<256x128xf32>,
    } else {
    }
    %c0 = arith.constant 0 : index
    %c0_1 = arith.constant 0 : index
    %3 = vector.load %arg7[%c0, %c0_1] : memref<256x128xf32, #tpu.memory_space<vmem>>, vector<256x128xf32>
    %c0_2 = arith.constant 0 : index
    %c0_3 = arith.constant 0 : index
    %4 = vector.load %arg2[%c0_2, %c0_3] : memref<256x256xbf16, #tpu.memory_space<vmem>>, vector<256x256xbf16>
    %c0_4 = arith.constant 0 : index
    %c0_5 = arith.constant 0 : index
    %5 = vector.load %arg3[%c0_4, %c0_5] : memref<256x128xbf16, #tpu.memory_space<vmem>>, vector<256x128xbf16>
    %cst = arith.constant dense<0.000000e+00> : vector<256x128xf32>
    %6 = tpu.matmul %4, %5, %cst {dimension_numbers = #tpu.dot_dimension_numbers<[1], [0], [0], [1], [0, 0, 1, 1], [], []>} : vector<256x256xbf16>, vector<256x128xbf16>, vector<256x128xf32> -> vector<256x128xf32>
    %7 = arith.addf %3, %6 : vector<256x128xf32>
    %c0_6 = arith.constant 0 : index
    %c0_7 = arith.constant 0 : index
    %8 = vector.load %arg7[%c0_6, %c0_7] : memref<256x128xf32, #tpu.memory_space<vmem>>, vector<256x128xf32>
    tpu.vector_store %arg7[%c0_6, %c0_7], %7 {strides = array<i32>} : memref<256x128xf32, #tpu.memory_space<vmem>>, vector<256x128xf32>,
    %c0_i32_8 = arith.constant 0 : i32
    %9 = arith.cmpi eq, %arg1, %c0_i32_8 : i32
    %10 = arith.extui %9 : i1 to i32
    %c0_i32_9 = arith.constant 0 : i32
    %11 = arith.cmpi ne, %10, %c0_i32_9 : i32
    scf.if %11 {
      %c0_10 = arith.constant 0 : index
      %c0_11 = arith.constant 0 : index
      %12 = vector.load %arg7[%c0_10, %c0_11] : memref<256x128xf32, #tpu.memory_space<vmem>>, vector<256x128xf32>
      %cst_12 = arith.constant dense<0.000000e+00> : vector<128xf32>
      %13 = vector.multi_reduction <add>, %12, %cst_12 [0] : vector<256x128xf32> to vector<128xf32>
      %14 = vector.shape_cast %13 : vector<128xf32> to vector<1x128xf32>
      %cst_13 = arith.constant 3.906250e-03 : f32
      %15 = vector.broadcast %cst_13 : f32 to vector<1x128xf32>
      %16 = arith.mulf %14, %15 : vector<1x128xf32>
      %17 = arith.mulf %12, %12 : vector<256x128xf32>
      %cst_14 = arith.constant dense<0.000000e+00> : vector<128xf32>
      %18 = vector.multi_reduction <add>, %17, %cst_14 [0] : vector<256x128xf32> to vector<128xf32>
      %19 = vector.shape_cast %18 : vector<128xf32> to vector<1x128xf32>
      %cst_15 = arith.constant 3.906250e-03 : f32
      %20 = vector.broadcast %cst_15 : f32 to vector<1x128xf32>
      %21 = arith.mulf %19, %20 : vector<1x128xf32>
      %22 = arith.mulf %16, %16 : vector<1x128xf32>
      %23 = arith.subf %21, %22 : vector<1x128xf32>
      %cst_16 = arith.constant 0.000000e+00 : f32
      %24 = vector.broadcast %cst_16 : f32 to vector<1x128xf32>
      %25 = arith.maximumf %23, %24 : vector<1x128xf32>
      %cst_17 = arith.constant 9.99999974E-6 : f32
      %26 = vector.broadcast %cst_17 : f32 to vector<1x128xf32>
      %27 = arith.addf %25, %26 : vector<1x128xf32>
      %28 = math.rsqrt %27 : vector<1x128xf32>
      %c0_18 = arith.constant 0 : index
      %c0_19 = arith.constant 0 : index
      %29 = vector.load %arg4[%c0_18, %c0_19] : memref<1x128xf32, #tpu.memory_space<vmem>>, vector<1x128xf32>
      %30 = arith.mulf %28, %29 : vector<1x128xf32>
      %c0_20 = arith.constant 0 : index
      %c0_21 = arith.constant 0 : index
      %31 = vector.load %arg5[%c0_20, %c0_21] : memref<1x128xf32, #tpu.memory_space<vmem>>, vector<1x128xf32>
      %32 = arith.mulf %16, %30 : vector<1x128xf32>
      %33 = arith.subf %31, %32 : vector<1x128xf32>
      %34 = vector.broadcast %30 : vector<1x128xf32> to vector<256x128xf32>
      %35 = arith.mulf %12, %34 : vector<256x128xf32>
      %36 = vector.broadcast %33 : vector<1x128xf32> to vector<256x128xf32>
      %37 = arith.addf %35, %36 : vector<256x128xf32>
      %cst_22 = arith.constant 0.000000e+00 : f32
      %38 = vector.broadcast %cst_22 : f32 to vector<256x128xf32>
      %39 = arith.maximumf %37, %38 : vector<256x128xf32>
      %40 = arith.truncf %39 : vector<256x128xf32> to vector<256x128xbf16>
      %c0_23 = arith.constant 0 : index
      %c0_24 = arith.constant 0 : index
      %41 = vector.load %arg6[%c0_23, %c0_24] : memref<256x128xbf16, #tpu.memory_space<vmem>>, vector<256x128xbf16>
      tpu.vector_store %arg6[%c0_23, %c0_24], %40 {strides = array<i32>} : memref<256x128xbf16, #tpu.memory_space<vmem>>, vector<256x128xbf16>,
    } else {
    }
    return
  }
  func.func @transform_0(%arg0: i32, %arg1: i32) -> (i32, i32) {
    %c0_i32 = arith.constant 0 : i32
    %c0_i32_0 = arith.constant 0 : i32
    return %c0_i32, %arg1 : i32, i32
  }
  func.func @transform_1(%arg0: i32, %arg1: i32) -> (i32, i32) {
    %c0_i32 = arith.constant 0 : i32
    return %arg1, %arg0 : i32, i32
  }
  func.func @transform_2(%arg0: i32, %arg1: i32) -> (i32, i32) {
    %c0_i32 = arith.constant 0 : i32
    %c0_i32_0 = arith.constant 0 : i32
    return %c0_i32, %arg0 : i32, i32
  }
  func.func @transform_3(%arg0: i32, %arg1: i32) -> (i32, i32) {
    %c0_i32 = arith.constant 0 : i32
    %c0_i32_0 = arith.constant 0 : i32
    return %c0_i32, %arg0 : i32, i32
  }
  func.func @transform_4(%arg0: i32, %arg1: i32) -> (i32, i32) {
    %c0_i32 = arith.constant 0 : i32
    %c0_i32_0 = arith.constant 0 : i32
    return %c0_i32, %arg0 : i32, i32
  }
}

</mosaic_0001>

<bundles_post_ra>
// kernel: moco_head_forward.5
= control target key start
LH: loop header
LB: loop body
LE: loop exit
PB: predicated region body
PF: predicated region fallthrough
CT: control target
= control target key end

     0   :  { %9 = vsyncpa [#allocation4], 0  ;;  %s1835_s0 = inlined_call_operand.vmem [shape: bf16[256,256], index: 0, kind: input, shape index: {}]   ;;  %s1836_s1 = inlined_call_operand.hbm [shape: bf16[256,128], index: 1, kind: input, shape index: {}]   ;;  %s1837_s2 = inlined_call_operand.vmem [shape: f32[1,128], index: 2, kind: input, shape index: {}]   ;;  %s1838_s3 = inlined_call_operand.hbm [shape: f32[1,128], index: 3, kind: input, shape index: {}]   ;;  %s1839_s4 = inlined_call_operand.hbm [shape: f32[256,128], index: 4, kind: output, shape index: {}]  }
   0x1   :  { %10 = vsyncpa [#allocation7], 0 }
   0x2   :  { %11 = vsyncpa [#allocation5], 0  ;;  %s18_s17 = sshll.u32 %s1836_s1, 4  ;;  %s1303_s18 = smov [#allocation3]   ;;  %s19_s17 = int_to_ptr.hbm [resolvable:$true] %s18_s17 }
   0x3   :  { %s20_s19 = sshll.u32 %s1303_s18, 4  ;;  %s34_s22 = sshll.u32 %s1838_s3, 4  ;;  %s21_s19 = int_to_ptr.vmem [resolvable:$true] %s20_s19  ;;  %s35_s22 = int_to_ptr.hbm [resolvable:$true] %s34_s22 }
   0x4   :  { %s1304_s23 = smov 64   ;;  %s1305_s24 = smov 4  }
   0x5   :  { %26 = dma.hbm_to_vmem [thread:$0]  %s19_s17, 2048, %s21_s19, [#allocation4], %s1304_s23, %s1304_s23, %s1305_s24  }
   0x6   :  { %s1306_s25 = smov [#allocation6]  }
   0x7   :  { %s36_s26 = sshll.u32 %s1306_s25, 4  ;;  %s37_s26 = int_to_ptr.vmem [resolvable:$true] %s36_s26 }
   0x8   :  { %39 = dma.hbm_to_vmem [thread:$0]  %s35_s22, 16, %s37_s26, [#allocation7]  }
   0x9   :  { %1297 = dma.done.wait [#allocation4], 2048  }
   0xa   :  { %1298 = vsyncadd [#allocation4], 4294965248 }
   0xb   :  { %1299 = dma.done.wait [#allocation7], 16  }
   0xc   :  { %1300 = vsyncadd [#allocation7], 4294967280  ;;  %v1191_v0 = vld [vmem:[#allocation3 + $0x38] sm:$0xff]  ;;  %v1190_v2 = vld [vmem:[#allocation3 + $0x30] sm:$0xff]  ;;  %s946_s19 = sshll.u32 %s1839_s4, 4  ;;  %s1308_s20 = smov 128   ;;  %s947_s19 = int_to_ptr.hbm [resolvable:$true] %s946_s19 }
   0xd   :  { %v1199_v1 = vld [vmem:[#allocation3 + $0x78] sm:$0xff]  ;;  %436 = vmatpush.bf16.msra.mxu0 %v1191_v0  ;;  %v1198_v3 = vld [vmem:[#allocation3 + $0x70] sm:$0xff]  ;;  %1200 = vmatpush.bf16.msra.mxu2 %v1191_v0  ;;  %v1189_v4 = vld [vmem:[#allocation3 + $0x28] sm:$0xff]  ;;  %s1309_s21 = smov 8  }
   0xe   :  { %525 = vmatpush.bf16.msra.mxu1 %v1199_v1  ;;  %1208 = vmatpush.bf16.msra.mxu3 %v1199_v1  ;;  %v1197_v5 = vld [vmem:[#allocation3 + $0x68] sm:$0xff]  ;;  %v1188_v6 = vld [vmem:[#allocation3 + $0x20] sm:$0xff]  ;;  %v1187_v8 = vld [vmem:[#allocation3 + $0x18] sm:$0xff] }
   0xf   :  { %v1196_v7 = vld [vmem:[#allocation3 + $0x60] sm:$0xff]  ;;  %v1195_v9 = vld [vmem:[#allocation3 + $0x58] sm:$0xff]  ;;  %v1186_v10 = vld [vmem:[#allocation3 + $0x10] sm:$0xff] }
  0x10   :  { %v1194_v11 = vld [vmem:[#allocation3 + $0x50] sm:$0xff]  ;;  %v1185_v12 = vld [vmem:[#allocation3 + $0x8] sm:$0xff]  ;;  %v1184_v14 = vld [vmem:[#allocation3] sm:$0xff] }
  0x11   :  { %437 = vmatpush.bf16.msra.mxu0 %v1190_v2  ;;  %1201 = vmatpush.bf16.msra.mxu2 %v1190_v2  ;;  %v1193_v13 = vld [vmem:[#allocation3 + $0x48] sm:$0xff]  ;;  %v1192_v15 = vld [vmem:[#allocation3 + $0x40] sm:$0xff]  ;;  %v970_v28 = vld [vmem:[%s1835_s0 + $0x10] sm:$0xf] }
  0x12   :  { %526 = vmatpush.bf16.msra.mxu1 %v1198_v3  ;;  %1209 = vmatpush.bf16.msra.mxu3 %v1198_v3  ;;  %v962_v16 = vld [vmem:[%s1835_s0] sm:$0xf]  ;;  %v1153_v17 = vld [vmem:[%s1835_s0 + $0x4] sm:$0xf0]  ;;  %v1152_v18 = vld [vmem:[%s1835_s0 + $0x4] sm:$0xf] }
  0x13   :  { %v964_v19 = vld [vmem:[%s1835_s0 + $0x8] sm:$0xf0]  ;;  %v1026_v20 = vld [vmem:[%s1835_s0 + $0x80] sm:$0xf]  ;;  %v1169_v21 = vld [vmem:[%s1835_s0 + $0x84] sm:$0xf0]  ;;  %v963_v24 = vor.u32 %v1153_v17, %v962_v16 }
  0x14   :  { %v1168_v22 = vld [vmem:[%s1835_s0 + $0x84] sm:$0xf]  ;;  %v1028_v23 = vld [vmem:[%s1835_s0 + $0x88] sm:$0xf0]  ;;  %v967_v25 = vor.u32 %v1152_v18, %v964_v19  ;;  %v1027_v26 = vor.u32 %v1169_v21, %v1026_v20  ;;  %v1155_v29 = vld [vmem:[%s1835_s0 + $0x14] sm:$0xf0] }
  0x15   :  { %438 = vmatpush.bf16.msra.mxu0 %v1189_v4  ;;  %1202 = vmatpush.bf16.msra.mxu2 %v1189_v4  ;;  %v1031_v27 = vor.u32 %v1168_v22, %v1028_v23  ;;  %v1154_v30 = vld [vmem:[%s1835_s0 + $0x14] sm:$0xf]  ;;  %v972_v31 = vld [vmem:[%s1835_s0 + $0x18] sm:$0xf0]  ;;  %v1034_v32 = vld [vmem:[%s1835_s0 + $0x90] sm:$0xf]  ;;  %v971_v36 = vor.u32 %v1155_v29, %v970_v28 }
  0x16   :  { %527 = vmatpush.bf16.msra.mxu1 %v1197_v5  ;;  %1210 = vmatpush.bf16.msra.mxu3 %v1197_v5  ;;  %v1171_v33 = vld [vmem:[%s1835_s0 + $0x94] sm:$0xf0]  ;;  %v1170_v34 = vld [vmem:[%s1835_s0 + $0x94] sm:$0xf]  ;;  %v1036_v35 = vld [vmem:[%s1835_s0 + $0x98] sm:$0xf0]  ;;  %v975_v37 = vor.u32 %v1154_v30, %v972_v31 }
  0x17   :  { %v1035_v38 = vor.u32 %v1171_v33, %v1034_v32  ;;  %v1039_v39 = vor.u32 %v1170_v34, %v1036_v35  ;;  %v978_v40 = vld [vmem:[%s1835_s0 + $0x20] sm:$0xf]  ;;  %v1157_v41 = vld [vmem:[%s1835_s0 + $0x24] sm:$0xf0]  ;;  %v1156_v42 = vld [vmem:[%s1835_s0 + $0x24] sm:$0xf] }
  0x18   :  { %v980_v43 = vld [vmem:[%s1835_s0 + $0x28] sm:$0xf0]  ;;  %v1042_v44 = vld [vmem:[%s1835_s0 + $0xa0] sm:$0xf]  ;;  %v1173_v45 = vld [vmem:[%s1835_s0 + $0xa4] sm:$0xf0]  ;;  %v979_v48 = vor.u32 %v1157_v41, %v978_v40 }
  0x19   :  { %439 = vmatpush.bf16.msra.mxu0 %v1188_v6  ;;  %1203 = vmatpush.bf16.msra.mxu2 %v1188_v6  ;;  %v1172_v46 = vld [vmem:[%s1835_s0 + $0xa4] sm:$0xf]  ;;  %v1044_v47 = vld [vmem:[%s1835_s0 + $0xa8] sm:$0xf0]  ;;  %v983_v49 = vor.u32 %v1156_v42, %v980_v43  ;;  %v1043_v50 = vor.u32 %v1173_v45, %v1042_v44  ;;  %v986_v52 = vld [vmem:[%s1835_s0 + $0x30] sm:$0xf] }
  0x1a   :  { %528 = vmatpush.bf16.msra.mxu1 %v1196_v7  ;;  %1211 = vmatpush.bf16.msra.mxu3 %v1196_v7  ;;  %v1047_v51 = vor.u32 %v1172_v46, %v1044_v47  ;;  %v1159_v53 = vld [vmem:[%s1835_s0 + $0x34] sm:$0xf0]  ;;  %v1158_v54 = vld [vmem:[%s1835_s0 + $0x34] sm:$0xf]  ;;  %v988_v55 = vld [vmem:[%s1835_s0 + $0x38] sm:$0xf0] }
  0x1b   :  { %v1050_v56 = vld [vmem:[%s1835_s0 + $0xb0] sm:$0xf]  ;;  %v1175_v57 = vld [vmem:[%s1835_s0 + $0xb4] sm:$0xf0]  ;;  %v1174_v58 = vld [vmem:[%s1835_s0 + $0xb4] sm:$0xf]  ;;  %v987_v60 = vor.u32 %v1159_v53, %v986_v52  ;;  %v991_v61 = vor.u32 %v1158_v54, %v988_v55 }
  0x1c   :  { %v1052_v59 = vld [vmem:[%s1835_s0 + $0xb8] sm:$0xf0]  ;;  %v1051_v62 = vor.u32 %v1175_v57, %v1050_v56  ;;  %v994_v0 = vld [vmem:[%s1835_s0 + $0x40] sm:$0xf]  ;;  %v1161_v1 = vld [vmem:[%s1835_s0 + $0x44] sm:$0xf0] }
  0x1d   :  { %440 = vmatpush.bf16.msra.mxu0 %v1187_v8  ;;  %1204 = vmatpush.bf16.msra.mxu2 %v1187_v8  ;;  %v1055_v63 = vor.u32 %v1174_v58, %v1052_v59  ;;  %v1160_v2 = vld [vmem:[%s1835_s0 + $0x44] sm:$0xf]  ;;  %v996_v3 = vld [vmem:[%s1835_s0 + $0x48] sm:$0xf0]  ;;  %v1058_v4 = vld [vmem:[%s1835_s0 + $0xc0] sm:$0xf]  ;;  %v995_v8 = vor.u32 %v1161_v1, %v994_v0 }
  0x1e   :  { %529 = vmatpush.bf16.msra.mxu1 %v1195_v9  ;;  %1212 = vmatpush.bf16.msra.mxu3 %v1195_v9  ;;  %v1177_v5 = vld [vmem:[%s1835_s0 + $0xc4] sm:$0xf0]  ;;  %v1176_v6 = vld [vmem:[%s1835_s0 + $0xc4] sm:$0xf]  ;;  %v1060_v7 = vld [vmem:[%s1835_s0 + $0xc8] sm:$0xf0]  ;;  %v999_v9 = vor.u32 %v1160_v2, %v996_v3 }
  0x1f   :  { %v1066_v16 = vld [vmem:[%s1835_s0 + $0xd0] sm:$0xf]  ;;  %v1179_v17 = vld [vmem:[%s1835_s0 + $0xd4] sm:$0xf0]  ;;  %v1178_v18 = vld [vmem:[%s1835_s0 + $0xd4] sm:$0xf] }
  0x20   :  { %v1068_v19 = vld [vmem:[%s1835_s0 + $0xd8] sm:$0xf0]  ;;  %v1067_v22 = vor.u32 %v1179_v17, %v1066_v16  ;;  %v1074_v28 = vld [vmem:[%s1835_s0 + $0xe0] sm:$0xf]  ;;  %v1181_v29 = vld [vmem:[%s1835_s0 + $0xe4] sm:$0xf0] }
  0x21   :  { %441 = vmatpush.bf16.msra.mxu0 %v1186_v10  ;;  %1205 = vmatpush.bf16.msra.mxu2 %v1186_v10  ;;  %v1059_v10 = vor.u32 %v1177_v5, %v1058_v4  ;;  %v1071_v23 = vor.u32 %v1178_v18, %v1068_v19  ;;  %v1180_v30 = vld [vmem:[%s1835_s0 + $0xe4] sm:$0xf]  ;;  %v1076_v31 = vld [vmem:[%s1835_s0 + $0xe8] sm:$0xf0]  ;;  %v1075_v34 = vor.u32 %v1181_v29, %v1074_v28  ;;  %v1082_v40 = vld [vmem:[%s1835_s0 + $0xf0] sm:$0xf] }
  0x22   :  { %530 = vmatpush.bf16.msra.mxu1 %v1194_v11  ;;  %1213 = vmatpush.bf16.msra.mxu3 %v1194_v11  ;;  %v1063_v11 = vor.u32 %v1176_v6, %v1060_v7  ;;  %v1079_v35 = vor.u32 %v1180_v30, %v1076_v31  ;;  %v1183_v41 = vld [vmem:[%s1835_s0 + $0xf4] sm:$0xf0]  ;;  %v1182_v42 = vld [vmem:[%s1835_s0 + $0xf4] sm:$0xf]  ;;  %v1084_v43 = vld [vmem:[%s1835_s0 + $0xf8] sm:$0xf0] }
  0x23   :  { %v1083_v46 = vor.u32 %v1183_v41, %v1082_v40  ;;  %v1087_v47 = vor.u32 %v1182_v42, %v1084_v43 }
  0x25   :  { %442 = vmatpush.bf16.msra.mxu0 %v1185_v12  ;;  %1206 = vmatpush.bf16.msra.mxu2 %v1185_v12  ;;  %v1002_v12 = vld [vmem:[%s1835_s0 + $0x50] sm:$0xf] }
  0x26   :  { %531 = vmatpush.bf16.msra.mxu1 %v1193_v13  ;;  %1214 = vmatpush.bf16.msra.mxu3 %v1193_v13  ;;  %v1163_v13 = vld [vmem:[%s1835_s0 + $0x54] sm:$0xf0] }
  0x27   :  { %v1003_v20 = vor.u32 %v1163_v13, %v1002_v12 }
  0x29   :  { %443 = vmatpush.bf16.msra.mxu0 %v1184_v14  ;;  %1207 = vmatpush.bf16.msra.mxu2 %v1184_v14  ;;  %v1162_v14 = vld [vmem:[%s1835_s0 + $0x54] sm:$0xf] }
  0x2a   :  { %532 = vmatpush.bf16.msra.mxu1 %v1192_v15  ;;  %1215 = vmatpush.bf16.msra.mxu3 %v1192_v15  ;;  %v1004_v15 = vld [vmem:[%s1835_s0 + $0x58] sm:$0xf0] }
  0x2b   :  { %v1007_v21 = vor.u32 %v1162_v14, %v1004_v15 }
  0x2c   :  { %444 = vmatmul.bf16.vlgmr.msra.gmra.mxu0 %v963_v24  ;;  %484 = vmatmul.bf16.vlgmr.msra.gmra.mxu2 %v1027_v26  ;;  %v1010_v24 = vld [vmem:[%s1835_s0 + $0x60] sm:$0xf]  ;;  %v1164_v26 = vld [vmem:[%s1835_s0 + $0x64] sm:$0xf] }
  0x2d   :  { %533 = vmatmul.bf16.vlgmr.msra.gmra.mxu1 %v967_v25  ;;  %573 = vmatmul.bf16.vlgmr.msra.gmra.mxu3 %v1031_v27  ;;  %v1165_v25 = vld [vmem:[%s1835_s0 + $0x64] sm:$0xf0]  ;;  %v1012_v27 = vld [vmem:[%s1835_s0 + $0x68] sm:$0xf0] }
  0x2e   :  { %v1011_v32 = vor.u32 %v1165_v25, %v1010_v24  ;;  %v1015_v33 = vor.u32 %v1164_v26, %v1012_v27 }
  0x3c   :  { %449 = vmatmul.bf16.gmra.mxu0 %v971_v36  ;;  %489 = vmatmul.bf16.gmra.mxu2 %v1035_v38  ;;  %v1018_v36 = vld [vmem:[%s1835_s0 + $0x70] sm:$0xf]  ;;  %v1166_v38 = vld [vmem:[%s1835_s0 + $0x74] sm:$0xf] }
  0x3d   :  { %538 = vmatmul.bf16.gmra.mxu1 %v975_v37  ;;  %578 = vmatmul.bf16.gmra.mxu3 %v1039_v39  ;;  %v1167_v37 = vld [vmem:[%s1835_s0 + $0x74] sm:$0xf0]  ;;  %v1020_v39 = vld [vmem:[%s1835_s0 + $0x78] sm:$0xf0] }
  0x3e   :  { %v1019_v44 = vor.u32 %v1167_v37, %v1018_v36  ;;  %v1023_v45 = vor.u32 %v1166_v38, %v1020_v39 }
  0x4c   :  { %454 = vmatmul.bf16.gmra.mxu0 %v979_v48  ;;  %494 = vmatmul.bf16.gmra.mxu2 %v1043_v50 }
  0x4d   :  { %543 = vmatmul.bf16.gmra.mxu1 %v983_v49  ;;  %583 = vmatmul.bf16.gmra.mxu3 %v1047_v51 }
  0x5c   :  { %459 = vmatmul.bf16.gmra.mxu0 %v987_v60  ;;  %499 = vmatmul.bf16.gmra.mxu2 %v1051_v62 }
  0x5d   :  { %548 = vmatmul.bf16.gmra.mxu1 %v991_v61  ;;  %588 = vmatmul.bf16.gmra.mxu3 %v1055_v63 }
  0x6c   :  { %464 = vmatmul.bf16.gmra.mxu0 %v995_v8  ;;  %504 = vmatmul.bf16.gmra.mxu2 %v1059_v10 }
  0x6d   :  { %553 = vmatmul.bf16.gmra.mxu1 %v999_v9  ;;  %593 = vmatmul.bf16.gmra.mxu3 %v1063_v11 }
  0x7c   :  { %469 = vmatmul.bf16.gmra.mxu0 %v1003_v20  ;;  %509 = vmatmul.bf16.gmra.mxu2 %v1067_v22 }
  0x7d   :  { %558 = vmatmul.bf16.gmra.mxu1 %v1007_v21  ;;  %598 = vmatmul.bf16.gmra.mxu3 %v1071_v23 }
  0x8c   :  { %474 = vmatmul.bf16.gmra.mxu0 %v1011_v32  ;;  %514 = vmatmul.bf16.gmra.mxu2 %v1075_v34 }
  0x8d   :  { %563 = vmatmul.bf16.gmra.mxu1 %v1015_v33  ;;  %603 = vmatmul.bf16.gmra.mxu3 %v1079_v35 }
  0x9c   :  { %479 = vmatmul.bf16.gmra.mxu0 %v1019_v44  ;;  %519 = vmatmul.bf16.gmra.mxu2 %v1083_v46 }
  0x9d   :  { %568 = vmatmul.bf16.gmra.mxu1 %v1023_v45  ;;  %608 = vmatmul.bf16.gmra.mxu3 %v1087_v47 }
  0xa9   :  { %v445_v48 = vpop.f32.mrf.mxu0 }
  0xaa   :  { %v534_v49 = vpop.f32.mrf.mxu1 }
  0xab   :  { %v1533_v50 = vadd.f32 %v534_v49, %v445_v48 }
  0xad   :  { %v751_v39 = vmul.f32 %v1533_v50, %v1533_v50 }
  0xaf   :  { %v485_v51 = vpop.f32.mrf.mxu2 }
  0xb0   :  { %v574_v52 = vpop.f32.mrf.mxu3 }
  0xb1   :  { %v447_v53 = vpop.f32.mrf.mxu0  ;;  %v1535_v55 = vadd.f32 %v574_v52, %v485_v51 }
  0xb2   :  { %v536_v54 = vpop.f32.mrf.mxu1 }
  0xb3   :  { %v1537_v56 = vadd.f32 %v536_v54, %v447_v53 }
  0xb5   :  { %v752_v38 = vmul.f32 %v1537_v56, %v1537_v56  ;;  %v713_v40 = vadd.f32 %v1537_v56, %v1533_v50 }
  0xb7   :  { %v487_v57 = vpop.f32.mrf.mxu2  ;;  %v783_v44 = vadd.f32 %v752_v38, %v751_v39 }
  0xb8   :  { %v576_v58 = vpop.f32.mrf.mxu3 }
  0xb9   :  { %v450_v59 = vpop.f32.mrf.mxu0  ;;  %v1539_v61 = vadd.f32 %v576_v58, %v487_v57 }
  0xba   :  { %v539_v60 = vpop.f32.mrf.mxu1 }
  0xbb   :  { %v1541_v62 = vadd.f32 %v539_v60, %v450_v59 }
  0xbd   :  { %v753_v41 = vmul.f32 %v1541_v62, %v1541_v62  ;;  %v714_v45 = vadd.f32 %v713_v40, %v1541_v62 }
  0xbf   :  { %v490_v63 = vpop.f32.mrf.mxu2  ;;  %v784_v51 = vadd.f32 %v783_v44, %v753_v41 }
  0xc0   :  { %v579_v0 = vpop.f32.mrf.mxu3 }
  0xc1   :  { %v452_v1 = vpop.f32.mrf.mxu0  ;;  %v1543_v3 = vadd.f32 %v579_v0, %v490_v63 }
  0xc2   :  { %v541_v2 = vpop.f32.mrf.mxu1 }
  0xc3   :  { %v1545_v4 = vadd.f32 %v541_v2, %v452_v1 }
  0xc5   :  { %v754_v46 = vmul.f32 %v1545_v4, %v1545_v4  ;;  %v715_v52 = vadd.f32 %v714_v45, %v1545_v4 }
  0xc7   :  { %v492_v5 = vpop.f32.mrf.mxu2  ;;  %v785_v57 = vadd.f32 %v784_v51, %v754_v46 }
  0xc8   :  { %v581_v6 = vpop.f32.mrf.mxu3 }
  0xc9   :  { %v455_v7 = vpop.f32.mrf.mxu0  ;;  %v1547_v9 = vadd.f32 %v581_v6, %v492_v5 }
  0xca   :  { %v544_v8 = vpop.f32.mrf.mxu1 }
  0xcb   :  { %v1549_v10 = vadd.f32 %v544_v8, %v455_v7 }
  0xcd   :  { %v755_v53 = vmul.f32 %v1549_v10, %v1549_v10  ;;  %v716_v58 = vadd.f32 %v715_v52, %v1549_v10 }
  0xcf   :  { %v495_v11 = vpop.f32.mrf.mxu2  ;;  %v786_v63 = vadd.f32 %v785_v57, %v755_v53 }
  0xd0   :  { %v584_v12 = vpop.f32.mrf.mxu3 }
  0xd1   :  { %v457_v13 = vpop.f32.mrf.mxu0  ;;  %v1551_v15 = vadd.f32 %v584_v12, %v495_v11 }
  0xd2   :  { %v546_v14 = vpop.f32.mrf.mxu1 }
  0xd3   :  { %v1584_v47 = vadd.f32 %v546_v14, %v457_v13 }
  0xd5   :  { %v756_v59 = vmul.f32 %v1584_v47, %v1584_v47  ;;  %v717_v0 = vadd.f32 %v716_v58, %v1584_v47 }
  0xd7   :  { %v1553_v16 = vpop.f32.mrf.mxu2  ;;  %v787_v7 = vadd.f32 %v786_v63, %v756_v59 }
  0xd8   :  { %v1555_v17 = vpop.f32.mrf.mxu3 }
  0xd9   :  { %v460_v18 = vpop.f32.mrf.mxu0 }
  0xda   :  { %v549_v19 = vpop.f32.mrf.mxu1 }
  0xdb   :  { %v1593_v54 = vadd.f32 %v549_v19, %v460_v18 }
  0xdd   :  { %v757_v1 = vmul.f32 %v1593_v54, %v1593_v54  ;;  %v718_v8 = vadd.f32 %v717_v0, %v1593_v54 }
  0xdf   :  { %v1557_v22 = vpop.f32.mrf.mxu2  ;;  %v788_v13 = vadd.f32 %v787_v7, %v757_v1 }
  0xe0   :  { %v1559_v23 = vpop.f32.mrf.mxu3 }
  0xe1   :  { %v462_v20 = vpop.f32.mrf.mxu0 }
  0xe2   :  { %v551_v21 = vpop.f32.mrf.mxu1 }
  0xe3   :  { %v1598_v60 = vadd.f32 %v551_v21, %v462_v20 }
  0xe5   :  { %v758_v11 = vmul.f32 %v1598_v60, %v1598_v60  ;;  %v719_v14 = vadd.f32 %v718_v8, %v1598_v60 }
  0xe7   :  { %v1561_v26 = vpop.f32.mrf.mxu2 }
  0xe8   :  { %v1563_v27 = vpop.f32.mrf.mxu3 }
  0xe9   :  { %v465_v24 = vpop.f32.mrf.mxu0 }
  0xea   :  { %v554_v25 = vpop.f32.mrf.mxu1 }
  0xeb   :  { %v1603_v2 = vadd.f32 %v554_v25, %v465_v24  ;;  %v789_v24 = vadd.f32 %v788_v13, %v758_v11 }
  0xed   :  { %v759_v18 = vmul.f32 %v1603_v2, %v1603_v2  ;;  %v720_v25 = vadd.f32 %v719_v14, %v1603_v2 }
  0xef   :  { %v1565_v30 = vpop.f32.mrf.mxu2 }
  0xf0   :  { %v1567_v31 = vpop.f32.mrf.mxu3 }
  0xf1   :  { %v467_v28 = vpop.f32.mrf.mxu0 }
  0xf2   :  { %v556_v29 = vpop.f32.mrf.mxu1 }
  0xf3   :  { %v1608_v12 = vadd.f32 %v556_v29, %v467_v28  ;;  %v790_v29 = vadd.f32 %v789_v24, %v759_v18  ;;  %v767_v24 = vmul.f32 %v1535_v55, %v1535_v55 }
  0xf5   :  { %v760_v38 = vmul.f32 %v1608_v12, %v1608_v12  ;;  %v721_v39 = vadd.f32 %v720_v25, %v1608_v12 }
  0xf7   :  { %v1569_v34 = vpop.f32.mrf.mxu2  ;;  %v791_v44 = vadd.f32 %v790_v29, %v760_v38  ;;  %v768_v29 = vmul.f32 %v1539_v61, %v1539_v61 }
  0xf8   :  { %v1571_v35 = vpop.f32.mrf.mxu3 }
  0xf9   :  { %v470_v32 = vpop.f32.mrf.mxu0 }
  0xfa   :  { %v559_v33 = vpop.f32.mrf.mxu1 }
  0xfb   :  { %v1613_v19 = vadd.f32 %v559_v33, %v470_v32 }
  0xfd   :  { %v761_v40 = vmul.f32 %v1613_v19, %v1613_v19  ;;  %v722_v45 = vadd.f32 %v721_v39, %v1613_v19 }
  0xff   :  { %v1586_v48 = vpop.f32.mrf.mxu2 }
 0x100   :  { %v1588_v49 = vpop.f32.mrf.mxu3 }
 0x101   :  { %v472_v36 = vpop.f32.mrf.mxu0 }
 0x102   :  { %v561_v37 = vpop.f32.mrf.mxu1 }
 0x103   :  { %v1622_v28 = vadd.f32 %v561_v37, %v472_v36  ;;  %v792_v36 = vadd.f32 %v791_v44, %v761_v40  ;;  %v769_v44 = vmul.f32 %v1543_v3, %v1543_v3 }
 0x105   :  { %v762_v46 = vmul.f32 %v1622_v28, %v1622_v28  ;;  %v723_v37 = vadd.f32 %v722_v45, %v1622_v28 }
 0x107   :  { %v1615_v20 = vpop.f32.mrf.mxu2 }
 0x108   :  { %v1617_v21 = vpop.f32.mrf.mxu3 }
 0x109   :  { %v475_v42 = vpop.f32.mrf.mxu0 }
 0x10a   :  { %v564_v43 = vpop.f32.mrf.mxu1 }
 0x10b   :  { %v1627_v32 = vadd.f32 %v564_v43, %v475_v42  ;;  %v793_v42 = vadd.f32 %v792_v36, %v762_v46  ;;  %v770_v36 = vmul.f32 %v1547_v9, %v1547_v9 }
 0x10d   :  { %v763_v52 = vmul.f32 %v1627_v32, %v1627_v32  ;;  %v724_v43 = vadd.f32 %v723_v37, %v1627_v32  ;;  %v1664_v37 = vadd.f32 %v1555_v17, %v1553_v16  ;;  %v1678_v16 = vadd.f32 %v1563_v27, %v1561_v26 }
 0x10e   :  { %v1692_v26 = vadd.f32 %v1571_v35, %v1569_v34  ;;  %v1706_v34 = vadd.f32 %v1617_v21, %v1615_v20 }
 0x10f   :  { %v515_v58 = vpop.f32.mrf.mxu2  ;;  %v794_v63 = vadd.f32 %v793_v42, %v763_v52 }
 0x110   :  { %v604_v59 = vpop.f32.mrf.mxu3 }
 0x111   :  { %v477_v5 = vpop.f32.mrf.mxu0 }
 0x112   :  { %v566_v6 = vpop.f32.mrf.mxu1 }
 0x113   :  { %v1632_v51 = vadd.f32 %v566_v6, %v477_v5 }
 0x115   :  { %v764_v57 = vmul.f32 %v1632_v51, %v1632_v51  ;;  %v725_v0 = vadd.f32 %v724_v43, %v1632_v51  ;;  %v771_v43 = vmul.f32 %v1551_v15, %v1551_v15 }
 0x117   :  { %v795_v7 = vadd.f32 %v794_v63, %v764_v57  ;;  %v1671_v57 = vadd.f32 %v1559_v23, %v1557_v22  ;;  %v1685_v22 = vadd.f32 %v1567_v31, %v1565_v30  ;;  %v1699_v30 = vadd.f32 %v1588_v49, %v1586_v48 }
 0x119   :  { %v480_v33 = vpop.f32.mrf.mxu0 }
 0x11a   :  { %v569_v41 = vpop.f32.mrf.mxu1 }
 0x11b   :  { %v1637_v53 = vadd.f32 %v569_v41, %v480_v33  ;;  %v517_v33 = vpop.f32.mrf.mxu2  ;;  %v606_v41 = vpop.f32.mrf.mxu3 }
 0x11d   :  { %v765_v1 = vmul.f32 %v1637_v53, %v1637_v53  ;;  %v726_v8 = vadd.f32 %v725_v0, %v1637_v53 }
 0x11f   :  { %v796_v13 = vadd.f32 %v795_v7, %v765_v1  ;;  %v772_v1 = vmul.f32 %v1664_v37, %v1664_v37 }
 0x121   :  { %v482_v5 = vpop.f32.mrf.mxu0 }
 0x122   :  { %v571_v6 = vpop.f32.mrf.mxu1 }
 0x123   :  { %v1646_v11 = vadd.f32 %v571_v6, %v482_v5  ;;  %v773_v6 = vmul.f32 %v1671_v57, %v1671_v57 }
 0x125   :  { %v727_v14 = vadd.f32 %v726_v8, %v1646_v11  ;;  %v766_v18 = vmul.f32 %v1646_v11, %v1646_v11  ;;  %v520_v8 = vpop.f32.mrf.mxu2 }
 0x127   :  { %v728_v25 = vadd.f32 %v727_v14, %v1535_v55  ;;  %v797_v38 = vadd.f32 %v796_v13, %v766_v18  ;;  %v609_v13 = vpop.f32.mrf.mxu3  ;;  %v774_v14 = vmul.f32 %v1678_v16, %v1678_v16 }
 0x129   :  { %v729_v39 = vadd.f32 %v728_v25, %v1539_v61  ;;  %v798_v40 = vadd.f32 %v797_v38, %v767_v24  ;;  %v775_v24 = vmul.f32 %v1685_v22, %v1685_v22  ;;  %v776_v38 = vmul.f32 %v1692_v26, %v1692_v26 }
 0x12b   :  { %v730_v45 = vadd.f32 %v729_v39, %v1543_v3  ;;  %v799_v46 = vadd.f32 %v798_v40, %v768_v29  ;;  %v777_v39 = vmul.f32 %v1699_v30, %v1699_v30  ;;  %v1711_v40 = vadd.f32 %v604_v59, %v515_v58 }
 0x12c   :  { %v1722_v59 = vadd.f32 %v609_v13, %v520_v8 }
 0x12d   :  { %v731_v52 = vadd.f32 %v730_v45, %v1547_v9  ;;  %v800_v42 = vadd.f32 %v799_v46, %v769_v44  ;;  %v778_v44 = vmul.f32 %v1706_v34, %v1706_v34  ;;  %v522_v20 = vpop.f32.mrf.mxu2 }
 0x12f   :  { %v732_v63 = vadd.f32 %v731_v52, %v1551_v15  ;;  %v801_v0 = vadd.f32 %v800_v42, %v770_v36  ;;  %v1717_v36 = vadd.f32 %v606_v41, %v517_v33  ;;  %v611_v21 = vpop.f32.mrf.mxu3  ;;  %v779_v42 = vmul.f32 %v1711_v40, %v1711_v40 }
 0x130   :  { %v781_v41 = vmul.f32 %v1722_v59, %v1722_v59 }
 0x131   :  { %v733_v17 = vadd.f32 %v732_v63, %v1664_v37  ;;  %v802_v5 = vadd.f32 %v801_v0, %v771_v43  ;;  %v780_v0 = vmul.f32 %v1717_v36, %v1717_v36 }
 0x133   :  { %v803_v23 = vadd.f32 %v802_v5, %v772_v1  ;;  %v734_v7 = vadd.f32 %v733_v17, %v1671_v57  ;;  %v612_v1 = vadd.f32 %v611_v21, %v522_v20 }
 0x135   :  { %v735_v27 = vadd.f32 %v734_v7, %v1678_v16  ;;  %v804_v18 = vadd.f32 %v803_v23, %v773_v6  ;;  %v782_v23 = vmul.f32 %v612_v1, %v612_v1 }
 0x137   :  { %v736_v31 = vadd.f32 %v735_v27, %v1685_v22  ;;  %v805_v25 = vadd.f32 %v804_v18, %v774_v14 }
 0x139   :  { %v737_v35 = vadd.f32 %v736_v31, %v1692_v26  ;;  %v806_v29 = vadd.f32 %v805_v25, %v775_v24 }
 0x13b   :  { %v738_v48 = vadd.f32 %v737_v35, %v1699_v30  ;;  %v807_v49 = vadd.f32 %v806_v29, %v776_v38 }
 0x13d   :  { %v739_v45 = vadd.f32 %v738_v48, %v1706_v34  ;;  %v808_v46 = vadd.f32 %v807_v49, %v777_v39 }
 0x13f   :  { %v740_v52 = vadd.f32 %v739_v45, %v1711_v40  ;;  %v809_v58 = vadd.f32 %v808_v46, %v778_v44 }
 0x141   :  { %v810_v43 = vadd.f32 %v809_v58, %v779_v42  ;;  %v741_v63 = vadd.f32 %v740_v52, %v1717_v36 }
 0x143   :  { %v811_v17 = vadd.f32 %v810_v43, %v780_v0  ;;  %v742_v33 = vadd.f32 %v741_v63, %v1722_v59  ;;  %v835_v0 = vld [vmem:[%s1837_s2] sm:$0x1]  ;;  %s1307_s2 = smov [#allocation8]  }
 0x144   :  { %s944_s16 = sshll.u32 %s1307_s2, 4  ;;  %s945_s16 = int_to_ptr.vmem [resolvable:$true] %s944_s16 }
 0x145   :  { %v812_v5 = vadd.f32 %v811_v17, %v781_v41  ;;  %v743_v6 = vadd.f32 %v742_v33, %v612_v1  ;;  %v837_v41 = vld [vmem:[#allocation6] sm:$0x1] }
 0x147   :  { %v744_v7 = vrot.slane %v743_v6, 4  ;;  %v813_v14 = vadd.f32 %v812_v5, %v782_v23 }
 0x149   :  { %v745_v8 = vadd.f32 %v744_v7, %v743_v6  ;;  %v814_v13 = vrot.slane %v813_v14, 4 }
 0x14b   :  { %v746_v27 = vrot.slane %v745_v8, 2  ;;  %v815_v18 = vadd.f32 %v814_v13, %v813_v14 }
 0x14d   :  { %v747_v24 = vadd.f32 %v746_v27, %v745_v8  ;;  %v816_v31 = vrot.slane %v815_v18, 2 }
 0x14f   :  { %v748_v25 = vrot.slane %v747_v24, 1  ;;  %v817_v38 = vadd.f32 %v816_v31, %v815_v18 }
 0x151   :  { %v749_v35 = vadd.f32 %v748_v25, %v747_v24  ;;  %v818_v29 = vrot.slane %v817_v38, 1 }
 0x153   :  { %v750_v39 = vmul.f32 0.00390625, %v749_v35  ;;  %v819_v48 = vadd.f32 %v818_v29, %v817_v38 }
 0x155   :  { %v820_v49 = vmul.f32 0.00390625, %v819_v48  ;;  %v821_v44 = vmul.f32 %v750_v39, %v750_v39 }
 0x157   :  { %v822_v45 = vsub.f32 %v820_v49, %v821_v44 }
 0x159   :  { %v823_v46 = vmax.f32 %v822_v45, 0.0 }
 0x15b   :  { %v824_v20 = vadd.f32 1e-05, %v823_v46 }
 0x15d   :  { %1223 = vrsqrt.f32 %v824_v20  ;;  %vm831_vm1 = vweird.f32 %v824_v20 }
 0x163   :  { %v1224_v21 = vpop.eup %1223 }
 0x164   :  { %v826_v52 = vmul.f32 %v1224_v21, %v824_v20  ;;  %vm832_vm0 = vweird.f32 %v1224_v21 }
 0x165   :  { %vm833_vm2 = vmor %vm831_vm1, %vm832_vm0 }
 0x166   :  { %v827_v42 = vmul.f32 %v1224_v21, %v826_v52 }
 0x168   :  { %v828_v58 = vmul.f32 0.5, %v827_v42 }
 0x16a   :  { %v829_v43 = vsub.f32 1.5, %v828_v58 }
 0x16c   :  { %v830_v63 = vmul.f32 %v1224_v21, %v829_v43 }
 0x16e   :  { %v834_v17 = vsel %vm833_vm2, %v1224_v21, %v830_v63 }
 0x16f   :  { %v836_v33 = vmul.f32 %v835_v0, %v834_v17 }
 0x171   :  { %v838_v5 = vmul.f32 %v836_v33, %v750_v39  ;;  %v1733_v6 = vperm.slane %v836_v33, 0 }
 0x173   :  { %v839_v23 = vsub.f32 %v837_v41, %v838_v5  ;;  %v872_v7 = vmul.f32 %v1733_v6, %v612_v1  ;;  %v841_v13 = vmul.f32 %v1733_v6, %v1533_v50  ;;  %v842_v27 = vmul.f32 %v1733_v6, %v1537_v56 }
 0x174   :  { %v843_v18 = vmul.f32 %v1733_v6, %v1541_v62  ;;  %v844_v24 = vmul.f32 %v1733_v6, %v1545_v4  ;;  %v845_v1 = vmul.f32 %v1733_v6, %v1549_v10  ;;  %v846_v25 = vmul.f32 %v1733_v6, %v1584_v47 }
 0x175   :  { %v1736_v14 = vperm.slane %v839_v23, 0  ;;  %v847_v62 = vmul.f32 %v1733_v6, %v1593_v54  ;;  %v848_v4 = vmul.f32 %v1733_v6, %v1598_v60  ;;  %v849_v47 = vmul.f32 %v1733_v6, %v1603_v2 }
 0x176   :  { %v850_v39 = vmul.f32 %v1733_v6, %v1608_v12  ;;  %v851_v48 = vmul.f32 %v1733_v6, %v1613_v19  ;;  %v852_v49 = vmul.f32 %v1733_v6, %v1622_v28  ;;  %v853_v44 = vmul.f32 %v1733_v6, %v1627_v32 }
 0x177   :  { %v907_v8 = vadd.f32 %v1736_v14, %v872_v7  ;;  %v876_v31 = vadd.f32 %v1736_v14, %v841_v13  ;;  %v877_v38 = vadd.f32 %v1736_v14, %v842_v27  ;;  %v878_v50 = vadd.f32 %v1736_v14, %v843_v18 }
 0x178   :  { %v879_v56 = vadd.f32 %v1736_v14, %v844_v24  ;;  %v880_v35 = vadd.f32 %v1736_v14, %v845_v1  ;;  %v881_v10 = vadd.f32 %v1736_v14, %v846_v25  ;;  %v882_v29 = vadd.f32 %v1736_v14, %v847_v62 }
 0x179   :  { %939 = vst [vmem:[#allocation8 + $0xf8] sm:$0xff] %v907_v8  ;;  %v883_v54 = vadd.f32 %v1736_v14, %v848_v4  ;;  %v884_v60 = vadd.f32 %v1736_v14, %v849_v47  ;;  %v885_v2 = vadd.f32 %v1736_v14, %v850_v39  ;;  %v886_v12 = vadd.f32 %v1736_v14, %v851_v48 }
 0x17a   :  { %908 = vst [vmem:[#allocation8] sm:$0xff] %v876_v31  ;;  %v854_v45 = vmul.f32 %v1733_v6, %v1632_v51  ;;  %v887_v19 = vadd.f32 %v1736_v14, %v852_v49  ;;  %v855_v46 = vmul.f32 %v1733_v6, %v1637_v53  ;;  %v888_v28 = vadd.f32 %v1736_v14, %v853_v44 }
 0x17b   :  { %909 = vst [vmem:[#allocation8 + $0x8] sm:$0xff] %v877_v38  ;;  %v856_v20 = vmul.f32 %v1733_v6, %v1646_v11  ;;  %v857_v21 = vmul.f32 %v1733_v6, %v1535_v55  ;;  %v858_v52 = vmul.f32 %v1733_v6, %v1539_v61  ;;  %v859_v42 = vmul.f32 %v1733_v6, %v1543_v3 }
 0x17c   :  { %910 = vst [vmem:[#allocation8 + $0x10] sm:$0xff] %v878_v50  ;;  %v889_v32 = vadd.f32 %v1736_v14, %v854_v45  ;;  %v890_v51 = vadd.f32 %v1736_v14, %v855_v46  ;;  %v860_v58 = vmul.f32 %v1733_v6, %v1547_v9  ;;  %v861_v43 = vmul.f32 %v1733_v6, %v1551_v15 }
 0x17d   :  { %911 = vst [vmem:[#allocation8 + $0x18] sm:$0xff] %v879_v56  ;;  %v891_v53 = vadd.f32 %v1736_v14, %v856_v20  ;;  %v892_v11 = vadd.f32 %v1736_v14, %v857_v21  ;;  %v893_v55 = vadd.f32 %v1736_v14, %v858_v52  ;;  %v894_v61 = vadd.f32 %v1736_v14, %v859_v42 }
 0x17e   :  { %912 = vst [vmem:[#allocation8 + $0x20] sm:$0xff] %v880_v35  ;;  %v862_v63 = vmul.f32 %v1733_v6, %v1664_v37  ;;  %v895_v3 = vadd.f32 %v1736_v14, %v860_v58  ;;  %v863_v0 = vmul.f32 %v1733_v6, %v1671_v57  ;;  %v896_v9 = vadd.f32 %v1736_v14, %v861_v43 }
 0x17f   :  { %913 = vst [vmem:[#allocation8 + $0x28] sm:$0xff] %v881_v10  ;;  %v864_v17 = vmul.f32 %v1733_v6, %v1678_v16  ;;  %v865_v33 = vmul.f32 %v1733_v6, %v1685_v22  ;;  %v866_v41 = vmul.f32 %v1733_v6, %v1692_v26  ;;  %v867_v5 = vmul.f32 %v1733_v6, %v1699_v30 }
 0x180   :  { %914 = vst [vmem:[#allocation8 + $0x30] sm:$0xff] %v882_v29  ;;  %v897_v15 = vadd.f32 %v1736_v14, %v862_v63  ;;  %v898_v37 = vadd.f32 %v1736_v14, %v863_v0  ;;  %v868_v23 = vmul.f32 %v1733_v6, %v1706_v34  ;;  %v869_v7 = vmul.f32 %v1733_v6, %v1711_v40 }
 0x181   :  { %915 = vst [vmem:[#allocation8 + $0x38] sm:$0xff] %v883_v54  ;;  %v899_v57 = vadd.f32 %v1736_v14, %v864_v17  ;;  %v900_v16 = vadd.f32 %v1736_v14, %v865_v33  ;;  %v901_v22 = vadd.f32 %v1736_v14, %v866_v41  ;;  %v902_v26 = vadd.f32 %v1736_v14, %v867_v5 }
 0x182   :  { %916 = vst [vmem:[#allocation8 + $0x40] sm:$0xff] %v884_v60  ;;  %v870_v8 = vmul.f32 %v1733_v6, %v1717_v36  ;;  %v903_v30 = vadd.f32 %v1736_v14, %v868_v23  ;;  %v871_v13 = vmul.f32 %v1733_v6, %v1722_v59  ;;  %v904_v34 = vadd.f32 %v1736_v14, %v869_v7 }
 0x183   :  { %917 = vst [vmem:[#allocation8 + $0x48] sm:$0xff] %v885_v2 }
 0x184   :  { %918 = vst [vmem:[#allocation8 + $0x50] sm:$0xff] %v886_v12  ;;  %v905_v40 = vadd.f32 %v1736_v14, %v870_v8  ;;  %v906_v36 = vadd.f32 %v1736_v14, %v871_v13 }
 0x185   :  { %919 = vst [vmem:[#allocation8 + $0x58] sm:$0xff] %v887_v19 }
 0x186   :  { %920 = vst [vmem:[#allocation8 + $0x60] sm:$0xff] %v888_v28 }
 0x187   :  { %921 = vst [vmem:[#allocation8 + $0x68] sm:$0xff] %v889_v32 }
 0x188   :  { %922 = vst [vmem:[#allocation8 + $0x70] sm:$0xff] %v890_v51 }
 0x189   :  { %923 = vst [vmem:[#allocation8 + $0x78] sm:$0xff] %v891_v53 }
 0x18a   :  { %924 = vst [vmem:[#allocation8 + $0x80] sm:$0xff] %v892_v11 }
 0x18b   :  { %925 = vst [vmem:[#allocation8 + $0x88] sm:$0xff] %v893_v55 }
 0x18c   :  { %926 = vst [vmem:[#allocation8 + $0x90] sm:$0xff] %v894_v61 }
 0x18d   :  { %927 = vst [vmem:[#allocation8 + $0x98] sm:$0xff] %v895_v3 }
 0x18e   :  { %928 = vst [vmem:[#allocation8 + $0xa0] sm:$0xff] %v896_v9 }
 0x18f   :  { %929 = vst [vmem:[#allocation8 + $0xa8] sm:$0xff] %v897_v15 }
 0x190   :  { %930 = vst [vmem:[#allocation8 + $0xb0] sm:$0xff] %v898_v37 }
 0x191   :  { %931 = vst [vmem:[#allocation8 + $0xb8] sm:$0xff] %v899_v57 }
 0x192   :  { %932 = vst [vmem:[#allocation8 + $0xc0] sm:$0xff] %v900_v16 }
 0x193   :  { %933 = vst [vmem:[#allocation8 + $0xc8] sm:$0xff] %v901_v22 }
 0x194   :  { %934 = vst [vmem:[#allocation8 + $0xd0] sm:$0xff] %v902_v26 }
 0x195   :  { %935 = vst [vmem:[#allocation8 + $0xd8] sm:$0xff] %v903_v30 }
 0x196   :  { %936 = vst [vmem:[#allocation8 + $0xe0] sm:$0xff] %v904_v34 }
 0x197   :  { %937 = vst [vmem:[#allocation8 + $0xe8] sm:$0xff] %v905_v40 }
 0x198   :  { %938 = vst [vmem:[#allocation8 + $0xf0] sm:$0xff] %v906_v36 }
 0x199   :  { %952 = dma.vmem_to_hbm [thread:$0]  %s945_s16, 4096, %s947_s19, [#allocation5], %s1308_s20, %s1308_s20, %s1309_s21  }
 0x19a   :  { %1301 = dma.done.wait [#allocation5], 4096  }
 0x19b   :  { %1302 = vsyncadd [#allocation5], 4294963200 }
 0x19c   :  { %957 = vsyncpa [#allocation4], 1 }
 0x19d   :  { %958 = vsyncpa [#allocation7], 1 }
 0x19e   :  { %959 = vsyncpa [#allocation5], 1 }

// kernel: moco_head_forward.3
= control target key start
LH: loop header
LB: loop body
LE: loop exit
PB: predicated region body
PF: predicated region fallthrough
CT: control target
= control target key end

     0   :  { %s1731_s15 = smov 0   ;;  %s1733_s16 = smov 0   ;;  %s2204_s0 = inlined_call_operand.vmem [shape: bf16[256,128], index: 0, kind: input, shape index: {}]   ;;  %s2205_s1 = inlined_call_operand.vmem [shape: bf16[128,256], index: 1, kind: input, shape index: {}]   ;;  %s2206_s2 = inlined_call_operand.vmem [shape: f32[1,256], index: 2, kind: input, shape index: {}]   ;;  %s2207_s3 = inlined_call_operand.vmem [shape: f32[1,256], index: 3, kind: input, shape index: {}]   ;;  %s2208_s4 = inlined_call_operand.vmem [shape: bf16[256,256], index: 4, kind: output, shape index: {}]  }
   0x1   :  { %s1735_s17 = smov 0   ;;  %s1737_s18 = smov 0  }
   0x2   :  { %s1739_s19 = smov 0  }
   0x3 LB: > { %s26_s20 = sadd.s32 1, %s1700_s18  ;;  %s1371_s21 = sadd.s32 4294967295, %s1704_s19   ;;  %s1704_s19 = sphi %s1739_s19, %s14_s19   ;;  %s1700_s18 = sphi %s1737_s18, %s2213_s18   ;;  %s1696_s17 = sphi %s1735_s17, %s2212_s17   ;;  %s1692_s16 = sphi %s1733_s16, %s2211_s16   ;;  %s1688_s15 = sphi %s1731_s15, %s2210_s15  }
   0x4   : > { %p28_p0 = scmp.ge.s32.totalorder %s26_s20, 2  ;;  %p68_p1 = scmp.ne.s32.totalorder %s1692_s16, %s1688_s15 }
   0x5   : > { %p69_p2 = scmp.eq.s32.totalorder %s1704_s19, 0  ;;  %p150_p4 = scmp.eq.s32.totalorder %s1371_s21, 1 }
   0x6   : > { %s2215_s20 = smov (%p28_p0, %s26_s20), 0  ;;  %s61_s23 = sadd.s32 1, %s1692_s16 }
   0x7   : > { %p70_p3 = por %p69_p2, %p68_p1  ;;  %s57_s22 = ssub.s32 %s1700_s18, %s2215_s20 }
   0x8   : > { %p59_p5 = scmp.eq.s32.totalorder %s57_s22, 0  ;;  %p1766_p6 = por %p150_p4, %p68_p1 }
   0x9   : > { %p1375_p7 = scmp.ge.s32.totalorder %s1704_s19, 2 }
   0xa   : > { %s1771_s25 = scalar_select %p59_p5, %s1692_s16, %s61_s23  }
   0xb   : > { %179 = sbr.rel (%p1375_p7) target bundleno = 36 (0x24), region = 20 }
  0x10   : > { %182 = sbr.rel (!%p70_p3) target bundleno = 36 (0x24), region = 24  ;;  %s184_s26 = sand.u32 (%p70_p3), 1, %s1692_s16  }
  0x11   : > { %s1377_s27 = sshll.u32 (%p70_p3), %s1700_s18, 2  ;;  %s1376_s28 = sshll.u32 (%p70_p3), %s184_s26, 6 }
  0x12   : > { %s1779_s5 = scalar_lea.vmem (%p70_p3), %s2205_s1, %s1377_s27  ;;  %s186_s6 = scalar_lea.vmem (%p70_p3), [#allocation3], %s1376_s28 }
  0x13   : > { %v208_v0 = vld [vmem:[%s1779_s5] sm:$0xf] (%p70_p3)  ;;  %v210_v1 = vld [vmem:[%s1779_s5 + $0x8] sm:$0xf] (%p70_p3)  ;;  %v212_v2 = vld [vmem:[%s1779_s5 + $0x10] sm:$0xf] (%p70_p3) }
  0x14   : > { %209 = vst [vmem:[%s186_s6] sm:$0xf] (%p70_p3), %v208_v0  ;;  %v214_v3 = vld [vmem:[%s1779_s5 + $0x18] sm:$0xf] (%p70_p3)  ;;  %v216_v4 = vld [vmem:[%s1779_s5 + $0x20] sm:$0xf] (%p70_p3) }
  0x15   : > { %211 = vst [vmem:[%s186_s6 + $0x4] sm:$0xf] %v210_v1  ;;  %v218_v5 = vld [vmem:[%s1779_s5 + $0x28] sm:$0xf]  ;;  %v220_v6 = vld [vmem:[%s1779_s5 + $0x30] sm:$0xf] }
  0x16   : > { %213 = vst [vmem:[%s186_s6 + $0x8] sm:$0xf] %v212_v2  ;;  %v222_v7 = vld [vmem:[%s1779_s5 + $0x38] sm:$0xf]  ;;  %v224_v8 = vld [vmem:[%s1779_s5 + $0x40] sm:$0xf] }
  0x17   : > { %215 = vst [vmem:[%s186_s6 + $0xc] sm:$0xf] %v214_v3  ;;  %v226_v9 = vld [vmem:[%s1779_s5 + $0x48] sm:$0xf]  ;;  %v228_v10 = vld [vmem:[%s1779_s5 + $0x50] sm:$0xf] }
  0x18   : > { %217 = vst [vmem:[%s186_s6 + $0x10] sm:$0xf] %v216_v4  ;;  %v230_v11 = vld [vmem:[%s1779_s5 + $0x58] sm:$0xf]  ;;  %v232_v12 = vld [vmem:[%s1779_s5 + $0x60] sm:$0xf] }
  0x19   : > { %219 = vst [vmem:[%s186_s6 + $0x14] sm:$0xf] %v218_v5  ;;  %v234_v13 = vld [vmem:[%s1779_s5 + $0x68] sm:$0xf]  ;;  %v236_v14 = vld [vmem:[%s1779_s5 + $0x70] sm:$0xf] }
  0x1a   : > { %221 = vst [vmem:[%s186_s6 + $0x18] sm:$0xf] %v220_v6  ;;  %v238_v15 = vld [vmem:[%s1779_s5 + $0x78] sm:$0xf] }
  0x1b   : > { %223 = vst [vmem:[%s186_s6 + $0x1c] sm:$0xf] %v222_v7 }
  0x1c   : > { %225 = vst [vmem:[%s186_s6 + $0x20] sm:$0xf] %v224_v8 }
  0x1d   : > { %227 = vst [vmem:[%s186_s6 + $0x24] sm:$0xf] %v226_v9 }
  0x1e   : > { %229 = vst [vmem:[%s186_s6 + $0x28] sm:$0xf] %v228_v10 }
  0x1f   : > { %231 = vst [vmem:[%s186_s6 + $0x2c] sm:$0xf] %v230_v11 }
  0x20   : > { %233 = vst [vmem:[%s186_s6 + $0x30] sm:$0xf] %v232_v12 }
  0x21   : > { %235 = vst [vmem:[%s186_s6 + $0x34] sm:$0xf] %v234_v13 }
  0x22   : > { %237 = vst [vmem:[%s186_s6 + $0x38] sm:$0xf] %v236_v14 }
  0x23   : > { %239 = vst [vmem:[%s186_s6 + $0x3c] sm:$0xf] %v238_v15 }
  0x24 PF: > { %p1378_p8 = scmp.ge.s32.totalorder %s1704_s19, 1  ;;  %p306_p9 = scmp.lt.s32.totalorder %s1704_s19, 3 }
  0x26   : > { %p307_p10 = pnand %p1378_p8, %p306_p9 }
  0x27   : > { %s313_s7 = sand.u32 (!%p307_p10), 1, %s1688_s15   ;;  %p352_p11 = scmp.lt.s32.totalorder (!%p307_p10), %s1696_s17, 1 }
  0x28   : > { %310 = sbr.rel (%p307_p10) target bundleno = 421 (0x1a5), region = 73  ;;  %s1379_s8 = sshll.u32 (!%p307_p10), %s313_s7, 6 }
  0x29   : > { %s1802_s9 = scalar_lea.vmem (!%p307_p10), [#allocation3], %s1379_s8  ;;  %s1380_s21 = sshll.u32 (!%p307_p10), %s313_s7, 7 }
  0x2a   : > { %s2095_s15 = scalar_lea.vmem (!%p307_p10), [#allocation4], %s1380_s21 }
  0x2d   : > { %v1504_v16 = vld [vmem:[%s1802_s9 + $0x38] sm:$0xff]  ;;  %v1503_v17 = vld [vmem:[%s1802_s9 + $0x30] sm:$0xff]  ;;  %v1502_v18 = vld [vmem:[%s1802_s9 + $0x28] sm:$0xff]  ;;  %s353_s8 = scalar_select %p352_p11, %s1696_s17, 1 }
  0x2e   : > { %618 = vmatpush.bf16.msra.mxu0 %v1504_v16  ;;  %1600 = vmatpush.bf16.msra.mxu1 %v1504_v16  ;;  %v1501_v19 = vld [vmem:[%s1802_s9 + $0x20] sm:$0xff]  ;;  %v1500_v20 = vld [vmem:[%s1802_s9 + $0x18] sm:$0xff]  ;;  %v1499_v21 = vld [vmem:[%s1802_s9 + $0x10] sm:$0xff]  ;;  %s1478_s7 = sshll.u32 (%p1766_p6), %s1696_s17, 2 }
  0x2f   : > { %1601 = vmatpush.bf16.msra.mxu2 %v1504_v16  ;;  %1602 = vmatpush.bf16.msra.mxu3 %v1504_v16  ;;  %v1498_v22 = vld [vmem:[%s1802_s9 + $0x8] sm:$0xff]  ;;  %v1497_v23 = vld [vmem:[%s1802_s9] sm:$0xff]  ;;  %v1483_v32 = vld [vmem:[%s2204_s0 + $0x10] sm:$0xff]  ;;  %s354_s11 = scalar_lea.vmem %s2206_s2, %s353_s8  ;;  %s357_s14 = scalar_lea.vmem %s2207_s3, %s353_s8 }
  0x30   : > { %v1481_v24 = vld [vmem:[%s2204_s0] sm:$0xff]  ;;  %v1482_v28 = vld [vmem:[%s2204_s0 + $0x8] sm:$0xff]  ;;  %v1487_v33 = vld [vmem:[%s2204_s0 + $0x30] sm:$0xff]  ;;  %s2125_s26 = scalar_lea.vmem (%p1766_p6), %s2208_s4, %s1478_s7 }
  0x31   : > { %v1485_v25 = vld [vmem:[%s2204_s0 + $0x20] sm:$0xff]  ;;  %v1486_v29 = vld [vmem:[%s2204_s0 + $0x28] sm:$0xff]  ;;  %v1491_v34 = vld [vmem:[%s2204_s0 + $0x50] sm:$0xff] }
  0x32   : > { %619 = vmatpush.bf16.msra.mxu0 %v1503_v17  ;;  %1603 = vmatpush.bf16.msra.mxu1 %v1503_v17  ;;  %v1489_v26 = vld [vmem:[%s2204_s0 + $0x40] sm:$0xff]  ;;  %v1490_v30 = vld [vmem:[%s2204_s0 + $0x48] sm:$0xff]  ;;  %v1495_v35 = vld [vmem:[%s2204_s0 + $0x70] sm:$0xff] }
  0x33   : > { %1604 = vmatpush.bf16.msra.mxu2 %v1503_v17  ;;  %1605 = vmatpush.bf16.msra.mxu3 %v1503_v17  ;;  %v1493_v27 = vld [vmem:[%s2204_s0 + $0x60] sm:$0xff]  ;;  %v1494_v31 = vld [vmem:[%s2204_s0 + $0x68] sm:$0xff]  ;;  %v1484_v36 = vld [vmem:[%s2204_s0 + $0x18] sm:$0xff] }
  0x34   : > { %v1488_v37 = vld [vmem:[%s2204_s0 + $0x38] sm:$0xff] }
  0x35   : > { %v1492_v38 = vld [vmem:[%s2204_s0 + $0x58] sm:$0xff] }
  0x36   : > { %620 = vmatpush.bf16.msra.mxu0 %v1502_v18  ;;  %1606 = vmatpush.bf16.msra.mxu1 %v1502_v18  ;;  %v1496_v39 = vld [vmem:[%s2204_s0 + $0x78] sm:$0xff] }
  0x37   : > { %1607 = vmatpush.bf16.msra.mxu2 %v1502_v18  ;;  %1608 = vmatpush.bf16.msra.mxu3 %v1502_v18 }
  0x3a   : > { %621 = vmatpush.bf16.msra.mxu0 %v1501_v19  ;;  %1609 = vmatpush.bf16.msra.mxu1 %v1501_v19 }
  0x3b   : > { %1610 = vmatpush.bf16.msra.mxu2 %v1501_v19  ;;  %1611 = vmatpush.bf16.msra.mxu3 %v1501_v19 }
  0x3e   : > { %622 = vmatpush.bf16.msra.mxu0 %v1500_v20  ;;  %1612 = vmatpush.bf16.msra.mxu1 %v1500_v20 }
  0x3f   : > { %1613 = vmatpush.bf16.msra.mxu2 %v1500_v20  ;;  %1614 = vmatpush.bf16.msra.mxu3 %v1500_v20 }
  0x42   : > { %623 = vmatpush.bf16.msra.mxu0 %v1499_v21  ;;  %1615 = vmatpush.bf16.msra.mxu1 %v1499_v21 }
  0x43   : > { %1616 = vmatpush.bf16.msra.mxu2 %v1499_v21  ;;  %1617 = vmatpush.bf16.msra.mxu3 %v1499_v21 }
  0x46   : > { %624 = vmatpush.bf16.msra.mxu0 %v1498_v22  ;;  %1618 = vmatpush.bf16.msra.mxu1 %v1498_v22 }
  0x47   : > { %1619 = vmatpush.bf16.msra.mxu2 %v1498_v22  ;;  %1620 = vmatpush.bf16.msra.mxu3 %v1498_v22 }
  0x4a   : > { %625 = vmatpush.bf16.msra.mxu0 %v1497_v23  ;;  %1621 = vmatpush.bf16.msra.mxu1 %v1497_v23 }
  0x4b   : > { %1622 = vmatpush.bf16.msra.mxu2 %v1497_v23  ;;  %1623 = vmatpush.bf16.msra.mxu3 %v1497_v23 }
  0x4d   : > { %626 = vmatmul.bf16.vlgmr.msra.gmra.mxu0 %v1481_v24  ;;  %646 = vmatmul.bf16.vlgmr.msra.gmra.mxu1 %v1485_v25 }
  0x4e   : > { %666 = vmatmul.bf16.vlgmr.msra.gmra.mxu2 %v1489_v26  ;;  %686 = vmatmul.bf16.vlgmr.msra.gmra.mxu3 %v1493_v27 }
  0x5d   : > { %631 = vmatmul.bf16.gmra.mxu0 %v1482_v28  ;;  %651 = vmatmul.bf16.gmra.mxu1 %v1486_v29 }
  0x5e   : > { %671 = vmatmul.bf16.gmra.mxu2 %v1490_v30  ;;  %691 = vmatmul.bf16.gmra.mxu3 %v1494_v31 }
  0x6d   : > { %636 = vmatmul.bf16.gmra.mxu0 %v1483_v32  ;;  %656 = vmatmul.bf16.gmra.mxu1 %v1487_v33 }
  0x6e   : > { %676 = vmatmul.bf16.gmra.mxu2 %v1491_v34  ;;  %696 = vmatmul.bf16.gmra.mxu3 %v1495_v35 }
  0x7d   : > { %641 = vmatmul.bf16.gmra.mxu0 %v1484_v36  ;;  %661 = vmatmul.bf16.gmra.mxu1 %v1488_v37 }
  0x7e   : > { %681 = vmatmul.bf16.gmra.mxu2 %v1492_v38  ;;  %701 = vmatmul.bf16.gmra.mxu3 %v1496_v39 }
  0xca   : > { %v1860_v40 = vpop.f32.mrf.mxu0  ;;  %v1862_v41 = vpop.f32.mrf.mxu1 }
  0xcb   : > { %v844_v57 = vmul.f32 %v1860_v40, %v1860_v40  ;;  %v852_v19 = vmul.f32 %v1862_v41, %v1862_v41 }
  0xd1   : > { %v1870_v45 = vpop.f32.mrf.mxu2  ;;  %v1882_v51 = vpop.f32.mrf.mxu3 }
  0xd2   : > { %v1864_v42 = vpop.f32.mrf.mxu0  ;;  %v1866_v43 = vpop.f32.mrf.mxu1 }
  0xd3   : > { %v845_v56 = vmul.f32 %v1864_v42, %v1864_v42  ;;  %v806_v58 = vadd.f32 %v1864_v42, %v1860_v40  ;;  %v853_v23 = vmul.f32 %v1866_v43, %v1866_v43 }
  0xd5   : > { %v876_v61 = vadd.f32 %v845_v56, %v844_v57 }
  0xd9   : > { %v1876_v48 = vpop.f32.mrf.mxu2  ;;  %v1890_v55 = vpop.f32.mrf.mxu3 }
  0xda   : > { %v1868_v44 = vpop.f32.mrf.mxu0  ;;  %v1872_v46 = vpop.f32.mrf.mxu1 }
  0xdb   : > { %v846_v59 = vmul.f32 %v1868_v44, %v1868_v44  ;;  %v807_v62 = vadd.f32 %v806_v58, %v1868_v44  ;;  %v854_v27 = vmul.f32 %v1872_v46, %v1872_v46 }
  0xdd   : > { %v877_v1 = vadd.f32 %v876_v61, %v846_v59 }
  0xe1   : > { %v1884_v52 = vpop.f32.mrf.mxu2  ;;  %v1915_v8 = vpop.f32.mrf.mxu3 }
  0xe2   : > { %v1874_v47 = vpop.f32.mrf.mxu0  ;;  %v1878_v49 = vpop.f32.mrf.mxu1 }
  0xe3   : > { %v847_v63 = vmul.f32 %v1874_v47, %v1874_v47  ;;  %v808_v2 = vadd.f32 %v807_v62, %v1874_v47  ;;  %v855_v30 = vmul.f32 %v1878_v49, %v1878_v49 }
  0xe5   : > { %v878_v5 = vadd.f32 %v877_v1, %v847_v63 }
  0xe9   : > { %v1900_v60 = vpop.f32.mrf.mxu2  ;;  %v1936_v26 = vpop.f32.mrf.mxu3 }
  0xea   : > { %v1880_v50 = vpop.f32.mrf.mxu0  ;;  %v1888_v54 = vpop.f32.mrf.mxu1 }
  0xeb   : > { %v848_v3 = vmul.f32 %v1880_v50, %v1880_v50  ;;  %v809_v6 = vadd.f32 %v808_v2, %v1880_v50  ;;  %v856_v34 = vmul.f32 %v1888_v54, %v1888_v54  ;;  %v860_v2 = vmul.f32 %v1870_v45, %v1870_v45 }
  0xed   : > { %v879_v9 = vadd.f32 %v878_v5, %v848_v3 }
  0xf1   : > { %v1923_v15 = vpop.f32.mrf.mxu2  ;;  %v1957_v61 = vpop.f32.mrf.mxu3 }
  0xf2   : > { %v1886_v53 = vpop.f32.mrf.mxu0  ;;  %v1910_v4 = vpop.f32.mrf.mxu1 }
  0xf3   : > { %v849_v7 = vmul.f32 %v1886_v53, %v1886_v53  ;;  %v810_v10 = vadd.f32 %v809_v6, %v1886_v53  ;;  %v857_v37 = vmul.f32 %v1910_v4, %v1910_v4 }
  0xf5   : > { %v880_v12 = vadd.f32 %v879_v9, %v849_v7  ;;  %v861_v7 = vmul.f32 %v1876_v48, %v1876_v48 }
  0xf9   : > { %v1944_v33 = vpop.f32.mrf.mxu2 }
  0xfa   : > { %v1905_v0 = vpop.f32.mrf.mxu0  ;;  %v1931_v22 = vpop.f32.mrf.mxu1 }
  0xfb   : > { %v850_v11 = vmul.f32 %v1905_v0, %v1905_v0  ;;  %v811_v13 = vadd.f32 %v810_v10, %v1905_v0  ;;  %v858_v58 = vmul.f32 %v1931_v22, %v1931_v22 }
  0xfd   : > { %v881_v16 = vadd.f32 %v880_v12, %v850_v11  ;;  %v862_v11 = vmul.f32 %v1884_v52, %v1884_v52 }
 0x101   : > { %v1965_v6 = vpop.f32.mrf.mxu2 }
 0x102   : > { %v1921_v14 = vpop.f32.mrf.mxu0  ;;  %v1952_v56 = vpop.f32.mrf.mxu1 }
 0x103   : > { %v812_v17 = vadd.f32 %v811_v13, %v1921_v14  ;;  %v851_v18 = vmul.f32 %v1921_v14, %v1921_v14  ;;  %v859_v1 = vmul.f32 %v1952_v56, %v1952_v56 }
 0x105   : > { %v813_v20 = vadd.f32 %v812_v17, %v1862_v41  ;;  %v882_v21 = vadd.f32 %v881_v16, %v851_v18  ;;  %v863_v16 = vmul.f32 %v1900_v60, %v1900_v60 }
 0x107   : > { %v814_v24 = vadd.f32 %v813_v20, %v1866_v43  ;;  %v883_v25 = vadd.f32 %v882_v21, %v852_v19  ;;  %v1976_v19 = vpop.f32.mrf.mxu3  ;;  %v864_v20 = vmul.f32 %v1923_v15, %v1923_v15 }
 0x109   : > { %v815_v28 = vadd.f32 %v814_v24, %v1872_v46  ;;  %v884_v29 = vadd.f32 %v883_v25, %v853_v23  ;;  %v865_v25 = vmul.f32 %v1944_v33, %v1944_v33 }
 0x10b   : > { %v885_v31 = vadd.f32 %v884_v29, %v854_v27  ;;  %v816_v32 = vadd.f32 %v815_v28, %v1878_v49  ;;  %v1984_v28 = vpop.f32.mrf.mxu2 }
 0x10d   : > { %v817_v35 = vadd.f32 %v816_v32, %v1888_v54  ;;  %v886_v36 = vadd.f32 %v885_v31, %v855_v30  ;;  %v866_v31 = vmul.f32 %v1965_v6, %v1965_v6 }
 0x10f   : > { %v818_v38 = vadd.f32 %v817_v35, %v1910_v4  ;;  %v887_v39 = vadd.f32 %v886_v36, %v856_v34  ;;  %v867_v35 = vmul.f32 %v1984_v28, %v1984_v28  ;;  %v868_v36 = vmul.f32 %v1882_v51, %v1882_v51 }
 0x111   : > { %v819_v57 = vadd.f32 %v818_v38, %v1931_v22  ;;  %v888_v59 = vadd.f32 %v887_v39, %v857_v37  ;;  %v1995_v39 = vpop.f32.mrf.mxu3 }
 0x113   : > { %v889_v62 = vadd.f32 %v888_v59, %v858_v58  ;;  %v820_v63 = vadd.f32 %v819_v57, %v1952_v56  ;;  %v869_v57 = vmul.f32 %v1890_v55, %v1890_v55 }
 0x115   : > { %v821_v3 = vadd.f32 %v820_v63, %v1870_v45  ;;  %v890_v5 = vadd.f32 %v889_v62, %v859_v1  ;;  %v870_v62 = vmul.f32 %v1915_v8, %v1915_v8 }
 0x117   : > { %v822_v9 = vadd.f32 %v821_v3, %v1876_v48  ;;  %v891_v10 = vadd.f32 %v890_v5, %v860_v2  ;;  %v871_v2 = vmul.f32 %v1936_v26, %v1936_v26 }
 0x119   : > { %v823_v12 = vadd.f32 %v822_v9, %v1884_v52  ;;  %v892_v13 = vadd.f32 %v891_v10, %v861_v7  ;;  %v872_v7 = vmul.f32 %v1957_v61, %v1957_v61 }
 0x11b   : > { %v893_v17 = vadd.f32 %v892_v13, %v862_v11  ;;  %v824_v18 = vadd.f32 %v823_v12, %v1900_v60  ;;  %v873_v12 = vmul.f32 %v1976_v19, %v1976_v19 }
 0x11d   : > { %v825_v21 = vadd.f32 %v824_v18, %v1923_v15  ;;  %v894_v23 = vadd.f32 %v893_v17, %v863_v16  ;;  %v2012_v16 = vpop.f32.mrf.mxu3 }
 0x11f   : > { %v826_v24 = vadd.f32 %v825_v21, %v1944_v33  ;;  %v895_v27 = vadd.f32 %v894_v23, %v864_v20  ;;  %v874_v20 = vmul.f32 %v1995_v39, %v1995_v39 }
 0x121   : > { %v896_v29 = vadd.f32 %v895_v27, %v865_v25  ;;  %v827_v30 = vadd.f32 %v826_v24, %v1965_v6  ;;  %v875_v24 = vmul.f32 %v2012_v16, %v2012_v16 }
 0x123   : > { %v897_v32 = vadd.f32 %v896_v29, %v866_v31  ;;  %v828_v34 = vadd.f32 %v827_v30, %v1984_v28 }
 0x125   : > { %v829_v37 = vadd.f32 %v828_v34, %v1882_v51  ;;  %v898_v38 = vadd.f32 %v897_v32, %v867_v35 }
 0x127   : > { %v830_v58 = vadd.f32 %v829_v37, %v1890_v55  ;;  %v899_v59 = vadd.f32 %v898_v38, %v868_v36 }
 0x129   : > { %v831_v63 = vadd.f32 %v830_v58, %v1915_v8  ;;  %v900_v1 = vadd.f32 %v899_v59, %v869_v57 }
 0x12b   : > { %v901_v3 = vadd.f32 %v900_v1, %v870_v62  ;;  %v832_v5 = vadd.f32 %v831_v63, %v1936_v26 }
 0x12d   : > { %v833_v9 = vadd.f32 %v832_v5, %v1957_v61  ;;  %v902_v10 = vadd.f32 %v901_v3, %v871_v2 }
 0x12f   : > { %v834_v11 = vadd.f32 %v833_v9, %v1976_v19  ;;  %v903_v13 = vadd.f32 %v902_v10, %v872_v7 }
 0x131   : > { %v904_v17 = vadd.f32 %v903_v13, %v873_v12  ;;  %v835_v18 = vadd.f32 %v834_v11, %v1995_v39 }
 0x133   : > { %v905_v21 = vadd.f32 %v904_v17, %v874_v20  ;;  %v836_v23 = vadd.f32 %v835_v18, %v2012_v16  ;;  %v928_v17 = vld [vmem:[%s354_s11] sm:$0x1] }
 0x135   : > { %v837_v25 = vrot.slane %v836_v23, 4  ;;  %v906_v27 = vadd.f32 %v905_v21, %v875_v24 }
 0x137   : > { %v838_v29 = vadd.f32 %v837_v25, %v836_v23  ;;  %v907_v30 = vrot.slane %v906_v27, 4  ;;  %v930_v23 = vld [vmem:[%s357_s14] sm:$0x1] }
 0x139   : > { %v839_v31 = vrot.slane %v838_v29, 2  ;;  %v908_v32 = vadd.f32 %v907_v30, %v906_v27 }
 0x13b   : > { %v840_v34 = vadd.f32 %v839_v31, %v838_v29  ;;  %v909_v35 = vrot.slane %v908_v32, 2 }
 0x13d   : > { %v841_v36 = vrot.slane %v840_v34, 1  ;;  %v910_v37 = vadd.f32 %v909_v35, %v908_v32 }
 0x13f   : > { %v842_v38 = vadd.f32 %v841_v36, %v840_v34  ;;  %v911_v57 = vrot.slane %v910_v37, 1 }
 0x141   : > { %v843_v58 = vmul.f32 0.00390625, %v842_v38  ;;  %v912_v59 = vadd.f32 %v911_v57, %v910_v37 }
 0x143   : > { %v913_v62 = vmul.f32 0.00390625, %v912_v59  ;;  %v914_v63 = vmul.f32 %v843_v58, %v843_v58 }
 0x145   : > { %v915_v1 = vsub.f32 %v913_v62, %v914_v63 }
 0x147   : > { %v916_v2 = vmax.f32 %v915_v1, 0.0 }
 0x149   : > { %v917_v3 = vadd.f32 1e-05, %v916_v2 }
 0x14b   : > { %1664 = vrsqrt.f32 %v917_v3  ;;  %vm924_vm1 = vweird.f32 %v917_v3 }
 0x151   : > { %v1665_v5 = vpop.eup %1664 }
 0x152   : > { %v919_v7 = vmul.f32 %v1665_v5, %v917_v3  ;;  %vm925_vm0 = vweird.f32 %v1665_v5 }
 0x153   : > { %vm926_vm2 = vmor %vm924_vm1, %vm925_vm0 }
 0x154   : > { %v920_v9 = vmul.f32 %v1665_v5, %v919_v7 }
 0x156   : > { %v921_v10 = vmul.f32 0.5, %v920_v9 }
 0x158   : > { %v922_v11 = vsub.f32 1.5, %v921_v10 }
 0x15a   : > { %v923_v12 = vmul.f32 %v1665_v5, %v922_v11 }
 0x15c   : > { %v927_v13 = vsel %vm926_vm2, %v1665_v5, %v923_v12 }
 0x15d   : > { %v929_v18 = vmul.f32 %v928_v17, %v927_v13 }
 0x15f   : > { %v931_v20 = vmul.f32 %v929_v18, %v843_v58  ;;  %v933_v21 = vperm.slane %v929_v18, 0 }
 0x161   : > { %v932_v24 = vsub.f32 %v930_v23, %v931_v20  ;;  %v934_v25 = vmul.f32 %v933_v21, %v1860_v40  ;;  %v935_v27 = vmul.f32 %v933_v21, %v1864_v42  ;;  %v936_v29 = vmul.f32 %v933_v21, %v1868_v44 }
 0x162   : > { %v937_v30 = vmul.f32 %v933_v21, %v1874_v47  ;;  %v938_v31 = vmul.f32 %v933_v21, %v1880_v50  ;;  %v939_v32 = vmul.f32 %v933_v21, %v1886_v53  ;;  %v940_v34 = vmul.f32 %v933_v21, %v1905_v0 }
 0x163   : > { %v941_v35 = vmul.f32 %v933_v21, %v1921_v14  ;;  %v942_v36 = vmul.f32 %v933_v21, %v1862_v41  ;;  %v943_v37 = vmul.f32 %v933_v21, %v1866_v43  ;;  %v944_v40 = vmul.f32 %v933_v21, %v1872_v46 }
 0x164   : > { %v945_v42 = vmul.f32 %v933_v21, %v1878_v49  ;;  %v946_v44 = vmul.f32 %v933_v21, %v1888_v54  ;;  %v947_v47 = vmul.f32 %v933_v21, %v1910_v4  ;;  %v948_v50 = vmul.f32 %v933_v21, %v1931_v22 }
 0x165   : > { %v949_v53 = vmul.f32 %v933_v21, %v1952_v56  ;;  %v950_v0 = vmul.f32 %v933_v21, %v1870_v45  ;;  %v951_v14 = vmul.f32 %v933_v21, %v1876_v48  ;;  %v952_v41 = vmul.f32 %v933_v21, %v1884_v52 }
 0x166   : > { %v953_v43 = vmul.f32 %v933_v21, %v1900_v60  ;;  %v2048_v38 = vperm.slane %v932_v24, 0  ;;  %v954_v46 = vmul.f32 %v933_v21, %v1923_v15  ;;  %v955_v49 = vmul.f32 %v933_v21, %v1944_v33 }
 0x167   : > { %v956_v54 = vmul.f32 %v933_v21, %v1965_v6  ;;  %v957_v4 = vmul.f32 %v933_v21, %v1984_v28  ;;  %v958_v22 = vmul.f32 %v933_v21, %v1882_v51  ;;  %v959_v45 = vmul.f32 %v933_v21, %v1890_v55 }
 0x168   : > { %v960_v48 = vmul.f32 %v933_v21, %v1915_v8  ;;  %v961_v52 = vmul.f32 %v933_v21, %v1936_v26  ;;  %v962_v60 = vmul.f32 %v933_v21, %v1957_v61  ;;  %v963_v56 = vmul.f32 %v933_v21, %v1976_v19 }
 0x169   : > { %v964_v15 = vmul.f32 %v933_v21, %v1995_v39  ;;  %v2062_v33 = vmul.f32 %v933_v21, %v2012_v16  ;;  %v969_v6 = vadd.f32 %v2048_v38, %v934_v25  ;;  %v970_v28 = vadd.f32 %v2048_v38, %v935_v27 }
 0x16a   : > { %v971_v51 = vadd.f32 %v2048_v38, %v936_v29  ;;  %v972_v55 = vadd.f32 %v2048_v38, %v937_v30  ;;  %v973_v8 = vadd.f32 %v2048_v38, %v938_v31  ;;  %v974_v26 = vadd.f32 %v2048_v38, %v939_v32 }
 0x16b   : > { %v975_v61 = vadd.f32 %v2048_v38, %v940_v34  ;;  %v976_v19 = vadd.f32 %v2048_v38, %v941_v35  ;;  %v977_v39 = vadd.f32 %v2048_v38, %v942_v36  ;;  %v978_v16 = vadd.f32 %v2048_v38, %v943_v37 }
 0x16c   : > { %v979_v57 = vadd.f32 %v2048_v38, %v944_v40  ;;  %v980_v58 = vadd.f32 %v2048_v38, %v945_v42  ;;  %v981_v59 = vadd.f32 %v2048_v38, %v946_v44  ;;  %v982_v62 = vadd.f32 %v2048_v38, %v947_v47 }
 0x16d   : > { %v983_v63 = vadd.f32 %v2048_v38, %v948_v50  ;;  %v984_v1 = vadd.f32 %v2048_v38, %v949_v53  ;;  %v985_v2 = vadd.f32 %v2048_v38, %v950_v0  ;;  %v986_v3 = vadd.f32 %v2048_v38, %v951_v14 }
 0x16e   : > { %v987_v5 = vadd.f32 %v2048_v38, %v952_v41  ;;  %v988_v7 = vadd.f32 %v2048_v38, %v953_v43  ;;  %v989_v9 = vadd.f32 %v2048_v38, %v954_v46  ;;  %v990_v10 = vadd.f32 %v2048_v38, %v955_v49 }
 0x16f   : > { %v1001_v11 = vmax.f32 %v969_v6, 0.0  ;;  %v1002_v12 = vmax.f32 %v970_v28, 0.0  ;;  %v1003_v13 = vmax.f32 %v971_v51, 0.0  ;;  %v1004_v17 = vmax.f32 %v972_v55, 0.0 }
 0x170   : > { %v1005_v18 = vmax.f32 %v973_v8, 0.0  ;;  %v1006_v20 = vmax.f32 %v974_v26, 0.0  ;;  %v991_v21 = vadd.f32 %v2048_v38, %v956_v54  ;;  %v992_v23 = vadd.f32 %v2048_v38, %v957_v4 }
 0x171   : > { %v1007_v24 = vmax.f32 %v975_v61, 0.0  ;;  %v1008_v25 = vmax.f32 %v976_v19, 0.0  ;;  %v993_v27 = vadd.f32 %v2048_v38, %v958_v22  ;;  %v994_v29 = vadd.f32 %v2048_v38, %v959_v45 }
 0x172   : > { %v1009_v30 = vmax.f32 %v977_v39, 0.0  ;;  %v1010_v31 = vmax.f32 %v978_v16, 0.0  ;;  %v995_v32 = vadd.f32 %v2048_v38, %v960_v48  ;;  %v1011_v34 = vmax.f32 %v979_v57, 0.0 }
 0x173   : > { %v1012_v35 = vmax.f32 %v980_v58, 0.0  ;;  %v1013_v36 = vmax.f32 %v981_v59, 0.0  ;;  %v1014_v37 = vmax.f32 %v982_v62, 0.0  ;;  %v1508_v40 = vpack.c.bf16 %v1002_v12, %v1001_v11 }
 0x174   : > { %v1513_v42 = vpack.c.bf16 %v1004_v17, %v1003_v13  ;;  %v1518_v44 = vpack.c.bf16 %v1006_v20, %v1005_v18  ;;  %v996_v47 = vadd.f32 %v2048_v38, %v961_v52  ;;  %v1015_v50 = vmax.f32 %v983_v63, 0.0 }
 0x175   : > { %v1016_v53 = vmax.f32 %v984_v1, 0.0  ;;  %v1523_v0 = vpack.c.bf16 %v1008_v25, %v1007_v24  ;;  %v997_v14 = vadd.f32 %v2048_v38, %v962_v60  ;;  %v1017_v41 = vmax.f32 %v985_v2, 0.0  ;;  %1509 = vst [vmem:[%s2095_s15] sm:$0xff] %v1508_v40  }
 0x176   : > { %v1018_v43 = vmax.f32 %v986_v3, 0.0  ;;  %v1528_v46 = vpack.c.bf16 %v1010_v31, %v1009_v30  ;;  %v998_v49 = vadd.f32 %v2048_v38, %v963_v56  ;;  %v1019_v54 = vmax.f32 %v987_v5, 0.0  ;;  %1585 = vst [vmem:[%s2095_s15 + $0x8] sm:$0xff] %v1513_v42  }
 0x177   : > { %v1020_v4 = vmax.f32 %v988_v7, 0.0  ;;  %v1533_v22 = vpack.c.bf16 %v1012_v35, %v1011_v34  ;;  %v999_v45 = vadd.f32 %v2048_v38, %v964_v15  ;;  %v1021_v48 = vmax.f32 %v989_v9, 0.0  ;;  %1586 = vst [vmem:[%s2095_s15 + $0x10] sm:$0xff] %v1518_v44  }
 0x178   : > { %v1022_v52 = vmax.f32 %v990_v10, 0.0  ;;  %v1538_v60 = vpack.c.bf16 %v1014_v37, %v1013_v36  ;;  %v1000_v6 = vadd.f32 %v2048_v38, %v2062_v33  ;;  %v1023_v28 = vmax.f32 %v991_v21, 0.0  ;;  %1587 = vst [vmem:[%s2095_s15 + $0x18] sm:$0xff] %v1523_v0  }
 0x179   : > { %v1024_v51 = vmax.f32 %v992_v23, 0.0  ;;  %v1543_v56 = vpack.c.bf16 %v1016_v53, %v1015_v50  ;;  %v1025_v55 = vmax.f32 %v993_v27, 0.0  ;;  %v1026_v8 = vmax.f32 %v994_v29, 0.0  ;;  %1588 = vst [vmem:[%s2095_s15 + $0x20] sm:$0xff] %v1528_v46  }
 0x17a   : > { %v1548_v15 = vpack.c.bf16 %v1018_v43, %v1017_v41  ;;  %v1027_v26 = vmax.f32 %v995_v32, 0.0  ;;  %v1028_v61 = vmax.f32 %v996_v47, 0.0  ;;  %1589 = vst [vmem:[%s2095_s15 + $0x28] sm:$0xff] %v1533_v22   ;;  %v1553_v19 = vpack.c.bf16 %v1020_v4, %v1019_v54 }
 0x17b   : > { %v1029_v39 = vmax.f32 %v997_v14, 0.0  ;;  %v1030_v38 = vmax.f32 %v998_v49, 0.0  ;;  %1590 = vst [vmem:[%s2095_s15 + $0x30] sm:$0xff] %v1538_v60   ;;  %v1558_v33 = vpack.c.bf16 %v1022_v52, %v1021_v48  ;;  %v1031_v16 = vmax.f32 %v999_v45, 0.0 }
 0x17c   : > { %v1032_v57 = vmax.f32 %v1000_v6, 0.0  ;;  %1591 = vst [vmem:[%s2095_s15 + $0x38] sm:$0xff] %v1543_v56   ;;  %v1563_v58 = vpack.c.bf16 %v1024_v51, %v1023_v28  ;;  %v1568_v59 = vpack.c.bf16 %v1026_v8, %v1025_v55  ;;  %v1573_v62 = vpack.c.bf16 %v1028_v61, %v1027_v26  ;;  %v1122_v2 = vld [vmem:[%s2095_s15] sm:$0xf] (%p1766_p6)  ;;  %v1124_v3 = vld [vmem:[%s2095_s15 + $0x4] sm:$0xf] (%p1766_p6) }
 0x17d   : > { %1592 = vst [vmem:[%s2095_s15 + $0x40] sm:$0xff] %v1548_v15   ;;  %v1578_v63 = vpack.c.bf16 %v1030_v38, %v1029_v39  ;;  %v1126_v5 = vld [vmem:[%s2095_s15 + $0x8] sm:$0xf] (%p1766_p6)  ;;  %v1128_v7 = vld [vmem:[%s2095_s15 + $0xc] sm:$0xf] (%p1766_p6) }
 0x17e   : > { %1593 = vst [vmem:[%s2095_s15 + $0x48] sm:$0xff] %v1553_v19   ;;  %v1583_v1 = vpack.c.bf16 %v1032_v57, %v1031_v16  ;;  %v1130_v9 = vld [vmem:[%s2095_s15 + $0x10] sm:$0xf] (%p1766_p6)  ;;  %v1132_v10 = vld [vmem:[%s2095_s15 + $0x14] sm:$0xf] (%p1766_p6) }
 0x17f   : > { %1594 = vst [vmem:[%s2095_s15 + $0x50] sm:$0xff] %v1558_v33   ;;  %v1134_v11 = vld [vmem:[%s2095_s15 + $0x18] sm:$0xf] (%p1766_p6)  ;;  %v1136_v12 = vld [vmem:[%s2095_s15 + $0x1c] sm:$0xf] (%p1766_p6) }
 0x180   : > { %1595 = vst [vmem:[%s2095_s15 + $0x58] sm:$0xff] %v1563_v58   ;;  %1103 = sbr.rel (!%p1766_p6) target bundleno = 421 (0x1a5), region = 89  ;;  %v1138_v13 = vld [vmem:[%s2095_s15 + $0x20] sm:$0xf] (%p1766_p6)  ;;  %v1140_v17 = vld [vmem:[%s2095_s15 + $0x24] sm:$0xf] (%p1766_p6) }
 0x181   : > { %1596 = vst [vmem:[%s2095_s15 + $0x60] sm:$0xff] %v1568_v59   ;;  %v1142_v18 = vld [vmem:[%s2095_s15 + $0x28] sm:$0xf] (%p1766_p6)  ;;  %v1144_v20 = vld [vmem:[%s2095_s15 + $0x2c] sm:$0xf] (%p1766_p6) }
 0x182   : > { %1597 = vst [vmem:[%s2095_s15 + $0x68] sm:$0xff] %v1573_v62   ;;  %v1146_v21 = vld [vmem:[%s2095_s15 + $0x30] sm:$0xf] (%p1766_p6)  ;;  %v1148_v23 = vld [vmem:[%s2095_s15 + $0x34] sm:$0xf] (%p1766_p6) }
 0x183   : > { %1598 = vst [vmem:[%s2095_s15 + $0x70] sm:$0xff] %v1578_v63   ;;  %v1150_v24 = vld [vmem:[%s2095_s15 + $0x38] sm:$0xf] (%p1766_p6)  ;;  %v1152_v25 = vld [vmem:[%s2095_s15 + $0x3c] sm:$0xf] (%p1766_p6) }
 0x184   : > { %1599 = vst [vmem:[%s2095_s15 + $0x78] sm:$0xff] %v1583_v1   ;;  %v1154_v27 = vld [vmem:[%s2095_s15 + $0x40] sm:$0xf] (%p1766_p6)  ;;  %v1156_v29 = vld [vmem:[%s2095_s15 + $0x44] sm:$0xf] (%p1766_p6) }
 0x185   : > { %1123 = vst [vmem:[%s2125_s26] sm:$0xf] %v1122_v2  ;;  %v1158_v30 = vld [vmem:[%s2095_s15 + $0x48] sm:$0xf]  ;;  %v1160_v31 = vld [vmem:[%s2095_s15 + $0x4c] sm:$0xf] }
 0x186   : > { %1125 = vst [vmem:[%s2125_s26 + $0x8] sm:$0xf] %v1124_v3  ;;  %v1162_v32 = vld [vmem:[%s2095_s15 + $0x50] sm:$0xf]  ;;  %v1164_v34 = vld [vmem:[%s2095_s15 + $0x54] sm:$0xf] }
 0x187   : > { %1127 = vst [vmem:[%s2125_s26 + $0x10] sm:$0xf] %v1126_v5  ;;  %v1166_v35 = vld [vmem:[%s2095_s15 + $0x58] sm:$0xf]  ;;  %v1168_v36 = vld [vmem:[%s2095_s15 + $0x5c] sm:$0xf] }
 0x188   : > { %1129 = vst [vmem:[%s2125_s26 + $0x18] sm:$0xf] %v1128_v7  ;;  %v1170_v37 = vld [vmem:[%s2095_s15 + $0x60] sm:$0xf]  ;;  %v1172_v40 = vld [vmem:[%s2095_s15 + $0x64] sm:$0xf] }
 0x189   : > { %1131 = vst [vmem:[%s2125_s26 + $0x20] sm:$0xf] %v1130_v9  ;;  %v1174_v42 = vld [vmem:[%s2095_s15 + $0x68] sm:$0xf]  ;;  %v1176_v44 = vld [vmem:[%s2095_s15 + $0x6c] sm:$0xf] }
 0x18a   : > { %1133 = vst [vmem:[%s2125_s26 + $0x28] sm:$0xf] %v1132_v10  ;;  %v1178_v47 = vld [vmem:[%s2095_s15 + $0x70] sm:$0xf]  ;;  %v1180_v50 = vld [vmem:[%s2095_s15 + $0x74] sm:$0xf] }
 0x18b   : > { %1135 = vst [vmem:[%s2125_s26 + $0x30] sm:$0xf] %v1134_v11  ;;  %v1182_v53 = vld [vmem:[%s2095_s15 + $0x78] sm:$0xf]  ;;  %v1184_v0 = vld [vmem:[%s2095_s15 + $0x7c] sm:$0xf] }
 0x18c   : > { %1137 = vst [vmem:[%s2125_s26 + $0x38] sm:$0xf] %v1136_v12 }
 0x18d   : > { %1139 = vst [vmem:[%s2125_s26 + $0x40] sm:$0xf] %v1138_v13 }
 0x18e   : > { %1141 = vst [vmem:[%s2125_s26 + $0x48] sm:$0xf] %v1140_v17 }
 0x18f   : > { %1143 = vst [vmem:[%s2125_s26 + $0x50] sm:$0xf] %v1142_v18 }
 0x190   : > { %1145 = vst [vmem:[%s2125_s26 + $0x58] sm:$0xf] %v1144_v20 }
 0x191   : > { %1147 = vst [vmem:[%s2125_s26 + $0x60] sm:$0xf] %v1146_v21 }
 0x192   : > { %1149 = vst [vmem:[%s2125_s26 + $0x68] sm:$0xf] %v1148_v23 }
 0x193   : > { %1151 = vst [vmem:[%s2125_s26 + $0x70] sm:$0xf] %v1150_v24 }
 0x194   : > { %1153 = vst [vmem:[%s2125_s26 + $0x78] sm:$0xf] %v1152_v25 }
 0x195   : > { %1155 = vst [vmem:[%s2125_s26 + $0x80] sm:$0xf] %v1154_v27 }
 0x196   : > { %1157 = vst [vmem:[%s2125_s26 + $0x88] sm:$0xf] %v1156_v29 }
 0x197   : > { %1159 = vst [vmem:[%s2125_s26 + $0x90] sm:$0xf] %v1158_v30 }
 0x198   : > { %1161 = vst [vmem:[%s2125_s26 + $0x98] sm:$0xf] %v1160_v31 }
 0x199   : > { %1163 = vst [vmem:[%s2125_s26 + $0xa0] sm:$0xf] %v1162_v32 }
 0x19a   : > { %1165 = vst [vmem:[%s2125_s26 + $0xa8] sm:$0xf] %v1164_v34 }
 0x19b   : > { %1167 = vst [vmem:[%s2125_s26 + $0xb0] sm:$0xf] %v1166_v35 }
 0x19c   : > { %1169 = vst [vmem:[%s2125_s26 + $0xb8] sm:$0xf] %v1168_v36 }
 0x19d   : > { %1171 = vst [vmem:[%s2125_s26 + $0xc0] sm:$0xf] %v1170_v37 }
 0x19e   : > { %1173 = vst [vmem:[%s2125_s26 + $0xc8] sm:$0xf] %v1172_v40 }
 0x19f   : > { %1175 = vst [vmem:[%s2125_s26 + $0xd0] sm:$0xf] %v1174_v42 }
 0x1a0   : > { %1177 = vst [vmem:[%s2125_s26 + $0xd8] sm:$0xf] %v1176_v44 }
 0x1a1   : > { %1179 = vst [vmem:[%s2125_s26 + $0xe0] sm:$0xf] %v1178_v47 }
 0x1a2   : > { %1181 = vst [vmem:[%s2125_s26 + $0xe8] sm:$0xf] %v1180_v50 }
 0x1a3   : > { %1183 = vst [vmem:[%s2125_s26 + $0xf0] sm:$0xf] %v1182_v53 }
 0x1a4   : > { %1185 = vst [vmem:[%s2125_s26 + $0xf8] sm:$0xf] %v1184_v0 }
 0x1a5 PF: > { %s14_s19 = sadd.s32 1, %s1704_s19   ;;  %s2210_s15 = smov %s1692_s16 }
 0x1a6   : > { %p11_p12 = scmp.ge.s32.totalorder %s14_s19, 4   ;;  %s2211_s16 = smov %s1771_s25 }
 0x1a7   : > { %s2212_s17 = smov %s1700_s18  ;;  %s2213_s18 = smov %s2215_s20 }
 0x1a8   :  { %13 = sbr.rel (!%p11_p12) target bundleno = 3 (0x3), region = 170 }

// kernel: moco_head_forward.4
= control target key start
LH: loop header
LB: loop body
LE: loop exit
PB: predicated region body
PF: predicated region fallthrough
CT: control target
= control target key end

     0   :  { %s2129_s15 = smov 0   ;;  %s2131_s16 = smov 0   ;;  %s2846_s0 = inlined_call_operand.vmem [shape: bf16[256,256], index: 0, kind: input, shape index: {}]   ;;  %s2847_s1 = inlined_call_operand.vmem [shape: bf16[256,256], index: 1, kind: input, shape index: {}]   ;;  %s2848_s2 = inlined_call_operand.vmem [shape: f32[1,256], index: 2, kind: input, shape index: {}]   ;;  %s2849_s3 = inlined_call_operand.vmem [shape: f32[1,256], index: 3, kind: input, shape index: {}]   ;;  %s2850_s4 = inlined_call_operand.vmem [shape: bf16[256,256], index: 4, kind: output, shape index: {}]  }
   0x1   :  { %s2133_s17 = smov 0   ;;  %s2135_s18 = smov 0  }
   0x2   :  { %s2137_s19 = smov 0  }
   0x3 LB: > { %s26_s20 = sadd.s32 1, %s2098_s18  ;;  %s1657_s21 = sadd.s32 4294967295, %s2102_s19   ;;  %s2102_s19 = sphi %s2137_s19, %s14_s19   ;;  %s2098_s18 = sphi %s2135_s18, %s2855_s18   ;;  %s2094_s17 = sphi %s2133_s17, %s2854_s17   ;;  %s2090_s16 = sphi %s2131_s16, %s2853_s16   ;;  %s2086_s15 = sphi %s2129_s15, %s2852_s15  }
   0x4   : > { %p28_p0 = scmp.ge.s32.totalorder %s26_s20, 2  ;;  %p68_p1 = scmp.ne.s32.totalorder %s2090_s16, %s2086_s15 }
   0x5   : > { %p69_p2 = scmp.eq.s32.totalorder %s2102_s19, 0  ;;  %p150_p4 = scmp.eq.s32.totalorder %s1657_s21, 1 }
   0x6   : > { %s2857_s20 = smov (%p28_p0, %s26_s20), 0  ;;  %s61_s23 = sadd.s32 1, %s2090_s16 }
   0x7   : > { %p70_p3 = por %p69_p2, %p68_p1  ;;  %s57_s22 = ssub.s32 %s2098_s18, %s2857_s20 }
   0x8   : > { %p59_p5 = scmp.eq.s32.totalorder %s57_s22, 0  ;;  %p2164_p6 = por %p150_p4, %p68_p1 }
   0x9   : > { %p1661_p7 = scmp.ge.s32.totalorder %s2102_s19, 2 }
   0xa   : > { %s2169_s25 = scalar_select %p59_p5, %s2090_s16, %s61_s23  }
   0xb   : > { %181 = sbr.rel (%p1661_p7) target bundleno = 52 (0x34), region = 20 }
  0x10   : > { %184 = sbr.rel (!%p70_p3) target bundleno = 52 (0x34), region = 24  ;;  %s186_s26 = sand.u32 (%p70_p3), 1, %s2090_s16  }
  0x11   : > { %s1663_s27 = sshll.u32 (%p70_p3), %s2098_s18, 2  ;;  %s1662_s28 = sshll.u32 (%p70_p3), %s186_s26, 7 }
  0x12   : > { %s2177_s5 = scalar_lea.vmem (%p70_p3), %s2847_s1, %s1663_s27  ;;  %s2181_s6 = scalar_lea.vmem (%p70_p3), [#allocation3], %s1662_s28 }
  0x13   : > { %v210_v0 = vld [vmem:[%s2177_s5] sm:$0xf] (%p70_p3)  ;;  %v212_v1 = vld [vmem:[%s2177_s5 + $0x8] sm:$0xf] (%p70_p3)  ;;  %v214_v2 = vld [vmem:[%s2177_s5 + $0x10] sm:$0xf] (%p70_p3) }
  0x14   : > { %211 = vst [vmem:[%s2181_s6] sm:$0xf] (%p70_p3), %v210_v0  ;;  %v216_v3 = vld [vmem:[%s2177_s5 + $0x18] sm:$0xf] (%p70_p3)  ;;  %v218_v4 = vld [vmem:[%s2177_s5 + $0x20] sm:$0xf] (%p70_p3) }
  0x15   : > { %213 = vst [vmem:[%s2181_s6 + $0x4] sm:$0xf] %v212_v1  ;;  %v220_v5 = vld [vmem:[%s2177_s5 + $0x28] sm:$0xf]  ;;  %v222_v6 = vld [vmem:[%s2177_s5 + $0x30] sm:$0xf] }
  0x16   : > { %215 = vst [vmem:[%s2181_s6 + $0x8] sm:$0xf] %v214_v2  ;;  %v224_v7 = vld [vmem:[%s2177_s5 + $0x38] sm:$0xf]  ;;  %v226_v8 = vld [vmem:[%s2177_s5 + $0x40] sm:$0xf] }
  0x17   : > { %217 = vst [vmem:[%s2181_s6 + $0xc] sm:$0xf] %v216_v3  ;;  %v228_v9 = vld [vmem:[%s2177_s5 + $0x48] sm:$0xf]  ;;  %v230_v10 = vld [vmem:[%s2177_s5 + $0x50] sm:$0xf] }
  0x18   : > { %219 = vst [vmem:[%s2181_s6 + $0x10] sm:$0xf] %v218_v4  ;;  %v232_v11 = vld [vmem:[%s2177_s5 + $0x58] sm:$0xf]  ;;  %v234_v12 = vld [vmem:[%s2177_s5 + $0x60] sm:$0xf] }
  0x19   : > { %221 = vst [vmem:[%s2181_s6 + $0x14] sm:$0xf] %v220_v5  ;;  %v236_v13 = vld [vmem:[%s2177_s5 + $0x68] sm:$0xf]  ;;  %v238_v14 = vld [vmem:[%s2177_s5 + $0x70] sm:$0xf] }
  0x1a   : > { %223 = vst [vmem:[%s2181_s6 + $0x18] sm:$0xf] %v222_v6  ;;  %v240_v15 = vld [vmem:[%s2177_s5 + $0x78] sm:$0xf]  ;;  %v242_v16 = vld [vmem:[%s2177_s5 + $0x80] sm:$0xf] }
  0x1b   : > { %225 = vst [vmem:[%s2181_s6 + $0x1c] sm:$0xf] %v224_v7  ;;  %v244_v17 = vld [vmem:[%s2177_s5 + $0x88] sm:$0xf]  ;;  %v246_v18 = vld [vmem:[%s2177_s5 + $0x90] sm:$0xf] }
  0x1c   : > { %227 = vst [vmem:[%s2181_s6 + $0x20] sm:$0xf] %v226_v8  ;;  %v248_v19 = vld [vmem:[%s2177_s5 + $0x98] sm:$0xf]  ;;  %v250_v20 = vld [vmem:[%s2177_s5 + $0xa0] sm:$0xf] }
  0x1d   : > { %229 = vst [vmem:[%s2181_s6 + $0x24] sm:$0xf] %v228_v9  ;;  %v252_v21 = vld [vmem:[%s2177_s5 + $0xa8] sm:$0xf]  ;;  %v254_v22 = vld [vmem:[%s2177_s5 + $0xb0] sm:$0xf] }
  0x1e   : > { %231 = vst [vmem:[%s2181_s6 + $0x28] sm:$0xf] %v230_v10  ;;  %v256_v23 = vld [vmem:[%s2177_s5 + $0xb8] sm:$0xf]  ;;  %v258_v24 = vld [vmem:[%s2177_s5 + $0xc0] sm:$0xf] }
  0x1f   : > { %233 = vst [vmem:[%s2181_s6 + $0x2c] sm:$0xf] %v232_v11  ;;  %v260_v25 = vld [vmem:[%s2177_s5 + $0xc8] sm:$0xf]  ;;  %v262_v26 = vld [vmem:[%s2177_s5 + $0xd0] sm:$0xf] }
  0x20   : > { %235 = vst [vmem:[%s2181_s6 + $0x30] sm:$0xf] %v234_v12  ;;  %v264_v27 = vld [vmem:[%s2177_s5 + $0xd8] sm:$0xf]  ;;  %v266_v28 = vld [vmem:[%s2177_s5 + $0xe0] sm:$0xf] }
  0x21   : > { %237 = vst [vmem:[%s2181_s6 + $0x34] sm:$0xf] %v236_v13  ;;  %v268_v29 = vld [vmem:[%s2177_s5 + $0xe8] sm:$0xf]  ;;  %v270_v30 = vld [vmem:[%s2177_s5 + $0xf0] sm:$0xf] }
  0x22   : > { %239 = vst [vmem:[%s2181_s6 + $0x38] sm:$0xf] %v238_v14  ;;  %v272_v31 = vld [vmem:[%s2177_s5 + $0xf8] sm:$0xf] }
  0x23   : > { %241 = vst [vmem:[%s2181_s6 + $0x3c] sm:$0xf] %v240_v15 }
  0x24   : > { %243 = vst [vmem:[%s2181_s6 + $0x40] sm:$0xf] %v242_v16 }
  0x25   : > { %245 = vst [vmem:[%s2181_s6 + $0x44] sm:$0xf] %v244_v17 }
  0x26   : > { %247 = vst [vmem:[%s2181_s6 + $0x48] sm:$0xf] %v246_v18 }
  0x27   : > { %249 = vst [vmem:[%s2181_s6 + $0x4c] sm:$0xf] %v248_v19 }
  0x28   : > { %251 = vst [vmem:[%s2181_s6 + $0x50] sm:$0xf] %v250_v20 }
  0x29   : > { %253 = vst [vmem:[%s2181_s6 + $0x54] sm:$0xf] %v252_v21 }
  0x2a   : > { %255 = vst [vmem:[%s2181_s6 + $0x58] sm:$0xf] %v254_v22 }
  0x2b   : > { %257 = vst [vmem:[%s2181_s6 + $0x5c] sm:$0xf] %v256_v23 }
  0x2c   : > { %259 = vst [vmem:[%s2181_s6 + $0x60] sm:$0xf] %v258_v24 }
  0x2d   : > { %261 = vst [vmem:[%s2181_s6 + $0x64] sm:$0xf] %v260_v25 }
  0x2e   : > { %263 = vst [vmem:[%s2181_s6 + $0x68] sm:$0xf] %v262_v26 }
  0x2f   : > { %265 = vst [vmem:[%s2181_s6 + $0x6c] sm:$0xf] %v264_v27 }
  0x30   : > { %267 = vst [vmem:[%s2181_s6 + $0x70] sm:$0xf] %v266_v28 }
  0x31   : > { %269 = vst [vmem:[%s2181_s6 + $0x74] sm:$0xf] %v268_v29 }
  0x32   : > { %271 = vst [vmem:[%s2181_s6 + $0x78] sm:$0xf] %v270_v30 }
  0x33   : > { %273 = vst [vmem:[%s2181_s6 + $0x7c] sm:$0xf] %v272_v31 }
  0x34 PF: > { %p1664_p8 = scmp.ge.s32.totalorder %s2102_s19, 1  ;;  %p372_p9 = scmp.lt.s32.totalorder %s2102_s19, 3 }
  0x36   : > { %p373_p10 = pnand %p1664_p8, %p372_p9 }
  0x37   : > { %s379_s7 = sand.u32 (!%p373_p10), 1, %s2086_s15   ;;  %p421_p11 = scmp.lt.s32.totalorder (!%p373_p10), %s2094_s17, 1 }
  0x38   : > { %376 = sbr.rel (%p373_p10) target bundleno = 488 (0x1e8), region = 73  ;;  %s2248_s8 = sshll.u32 (!%p373_p10), %s379_s7, 7 }
  0x39   : > { %s2251_s9 = scalar_lea.vmem (!%p373_p10), [#allocation3], %s2248_s8  ;;  %s2737_s26 = scalar_lea.vmem (!%p373_p10), [#allocation4], %s2248_s8 }
  0x3d   : > { %v1902_v32 = vld [vmem:[%s2251_s9 + $0x38] sm:$0xff]  ;;  %v1901_v34 = vld [vmem:[%s2251_s9 + $0x30] sm:$0xff]  ;;  %v1900_v36 = vld [vmem:[%s2251_s9 + $0x28] sm:$0xff]  ;;  %s422_s12 = scalar_select %p421_p11, %s2094_s17, 1 }
  0x3e   : > { %v1910_v33 = vld [vmem:[%s2251_s9 + $0x78] sm:$0xff]  ;;  %815 = vmatpush.bf16.msra.mxu0 %v1902_v32  ;;  %v1909_v35 = vld [vmem:[%s2251_s9 + $0x70] sm:$0xff]  ;;  %2006 = vmatpush.bf16.msra.mxu2 %v1902_v32  ;;  %v1908_v37 = vld [vmem:[%s2251_s9 + $0x68] sm:$0xff]  ;;  %s1860_s8 = sshll.u32 (%p2164_p6), %s2094_s17, 2 }
  0x3f   : > { %904 = vmatpush.bf16.msra.mxu1 %v1910_v33  ;;  %2014 = vmatpush.bf16.msra.mxu3 %v1910_v33  ;;  %v1899_v38 = vld [vmem:[%s2251_s9 + $0x20] sm:$0xff]  ;;  %v1898_v40 = vld [vmem:[%s2251_s9 + $0x18] sm:$0xff]  ;;  %v1897_v42 = vld [vmem:[%s2251_s9 + $0x10] sm:$0xff]  ;;  %s423_s15 = scalar_lea.vmem %s2848_s2, %s422_s12  ;;  %s426_s23 = scalar_lea.vmem %s2849_s3, %s422_s12 }
  0x40   : > { %v1907_v39 = vld [vmem:[%s2251_s9 + $0x60] sm:$0xff]  ;;  %v1906_v41 = vld [vmem:[%s2251_s9 + $0x58] sm:$0xff]  ;;  %v1905_v43 = vld [vmem:[%s2251_s9 + $0x50] sm:$0xff]  ;;  %s2767_s29 = scalar_lea.vmem (%p2164_p6), %s2850_s4, %s1860_s8 }
  0x41   : > { %v1896_v44 = vld [vmem:[%s2251_s9 + $0x8] sm:$0xff]  ;;  %v1669_v46 = vld [vmem:[%s2846_s0] sm:$0xf]  ;;  %v1863_v48 = vld [vmem:[%s2846_s0 + $0x4] sm:$0xf] }
  0x42   : > { %816 = vmatpush.bf16.msra.mxu0 %v1901_v34  ;;  %2007 = vmatpush.bf16.msra.mxu2 %v1901_v34  ;;  %v1904_v45 = vld [vmem:[%s2251_s9 + $0x48] sm:$0xff]  ;;  %v1895_v50 = vld [vmem:[%s2251_s9] sm:$0xff]  ;;  %v1677_v60 = vld [vmem:[%s2846_s0 + $0x10] sm:$0xf] }
  0x43   : > { %905 = vmatpush.bf16.msra.mxu1 %v1909_v35  ;;  %2015 = vmatpush.bf16.msra.mxu3 %v1909_v35  ;;  %v1864_v47 = vld [vmem:[%s2846_s0 + $0x4] sm:$0xf0]  ;;  %v1671_v49 = vld [vmem:[%s2846_s0 + $0x8] sm:$0xf0]  ;;  %v1903_v51 = vld [vmem:[%s2251_s9 + $0x40] sm:$0xff] }
  0x44   : > { %v1733_v52 = vld [vmem:[%s2846_s0 + $0x80] sm:$0xf]  ;;  %v1880_v53 = vld [vmem:[%s2846_s0 + $0x84] sm:$0xf0]  ;;  %v1879_v54 = vld [vmem:[%s2846_s0 + $0x84] sm:$0xf]  ;;  %v1670_v56 = vor.u32 %v1864_v47, %v1669_v46  ;;  %v1674_v57 = vor.u32 %v1863_v48, %v1671_v49 }
  0x45   : > { %v1735_v55 = vld [vmem:[%s2846_s0 + $0x88] sm:$0xf0]  ;;  %v1734_v58 = vor.u32 %v1880_v53, %v1733_v52  ;;  %v1866_v61 = vld [vmem:[%s2846_s0 + $0x14] sm:$0xf0]  ;;  %v1865_v62 = vld [vmem:[%s2846_s0 + $0x14] sm:$0xf] }
  0x46   : > { %817 = vmatpush.bf16.msra.mxu0 %v1900_v36  ;;  %2008 = vmatpush.bf16.msra.mxu2 %v1900_v36  ;;  %v1738_v59 = vor.u32 %v1879_v54, %v1735_v55  ;;  %v1679_v63 = vld [vmem:[%s2846_s0 + $0x18] sm:$0xf0]  ;;  %v1741_v0 = vld [vmem:[%s2846_s0 + $0x90] sm:$0xf]  ;;  %v1882_v1 = vld [vmem:[%s2846_s0 + $0x94] sm:$0xf0]  ;;  %v1678_v4 = vor.u32 %v1866_v61, %v1677_v60 }
  0x47   : > { %906 = vmatpush.bf16.msra.mxu1 %v1908_v37  ;;  %2016 = vmatpush.bf16.msra.mxu3 %v1908_v37  ;;  %v1881_v2 = vld [vmem:[%s2846_s0 + $0x94] sm:$0xf]  ;;  %v1743_v3 = vld [vmem:[%s2846_s0 + $0x98] sm:$0xf0]  ;;  %v1682_v5 = vor.u32 %v1865_v62, %v1679_v63  ;;  %v1742_v6 = vor.u32 %v1882_v1, %v1741_v0  ;;  %v1685_v8 = vld [vmem:[%s2846_s0 + $0x20] sm:$0xf] }
  0x48   : > { %v1746_v7 = vor.u32 %v1881_v2, %v1743_v3  ;;  %v1868_v9 = vld [vmem:[%s2846_s0 + $0x24] sm:$0xf0]  ;;  %v1867_v10 = vld [vmem:[%s2846_s0 + $0x24] sm:$0xf]  ;;  %v1687_v11 = vld [vmem:[%s2846_s0 + $0x28] sm:$0xf0] }
  0x49   : > { %v1749_v12 = vld [vmem:[%s2846_s0 + $0xa0] sm:$0xf]  ;;  %v1884_v13 = vld [vmem:[%s2846_s0 + $0xa4] sm:$0xf0]  ;;  %v1883_v14 = vld [vmem:[%s2846_s0 + $0xa4] sm:$0xf]  ;;  %v1686_v16 = vor.u32 %v1868_v9, %v1685_v8  ;;  %v1690_v17 = vor.u32 %v1867_v10, %v1687_v11 }
  0x4a   : > { %818 = vmatpush.bf16.msra.mxu0 %v1899_v38  ;;  %2009 = vmatpush.bf16.msra.mxu2 %v1899_v38  ;;  %v1751_v15 = vld [vmem:[%s2846_s0 + $0xa8] sm:$0xf0]  ;;  %v1750_v18 = vor.u32 %v1884_v13, %v1749_v12  ;;  %v1693_v20 = vld [vmem:[%s2846_s0 + $0x30] sm:$0xf]  ;;  %v1870_v21 = vld [vmem:[%s2846_s0 + $0x34] sm:$0xf0] }
  0x4b   : > { %907 = vmatpush.bf16.msra.mxu1 %v1907_v39  ;;  %2017 = vmatpush.bf16.msra.mxu3 %v1907_v39  ;;  %v1754_v19 = vor.u32 %v1883_v14, %v1751_v15  ;;  %v1869_v22 = vld [vmem:[%s2846_s0 + $0x34] sm:$0xf]  ;;  %v1695_v23 = vld [vmem:[%s2846_s0 + $0x38] sm:$0xf0]  ;;  %v1757_v24 = vld [vmem:[%s2846_s0 + $0xb0] sm:$0xf]  ;;  %v1694_v28 = vor.u32 %v1870_v21, %v1693_v20 }
  0x4c   : > { %v1886_v25 = vld [vmem:[%s2846_s0 + $0xb4] sm:$0xf0]  ;;  %v1885_v26 = vld [vmem:[%s2846_s0 + $0xb4] sm:$0xf]  ;;  %v1759_v27 = vld [vmem:[%s2846_s0 + $0xb8] sm:$0xf0]  ;;  %v1698_v29 = vor.u32 %v1869_v22, %v1695_v23 }
  0x4d   : > { %v1758_v30 = vor.u32 %v1886_v25, %v1757_v24  ;;  %v1762_v31 = vor.u32 %v1885_v26, %v1759_v27  ;;  %v1701_v32 = vld [vmem:[%s2846_s0 + $0x40] sm:$0xf]  ;;  %v1872_v33 = vld [vmem:[%s2846_s0 + $0x44] sm:$0xf0]  ;;  %v1871_v34 = vld [vmem:[%s2846_s0 + $0x44] sm:$0xf] }
  0x4e   : > { %819 = vmatpush.bf16.msra.mxu0 %v1898_v40  ;;  %2010 = vmatpush.bf16.msra.mxu2 %v1898_v40  ;;  %v1703_v35 = vld [vmem:[%s2846_s0 + $0x48] sm:$0xf0]  ;;  %v1765_v36 = vld [vmem:[%s2846_s0 + $0xc0] sm:$0xf]  ;;  %v1888_v37 = vld [vmem:[%s2846_s0 + $0xc4] sm:$0xf0]  ;;  %v1702_v40 = vor.u32 %v1872_v33, %v1701_v32 }
  0x4f   : > { %908 = vmatpush.bf16.msra.mxu1 %v1906_v41  ;;  %2018 = vmatpush.bf16.msra.mxu3 %v1906_v41  ;;  %v1887_v38 = vld [vmem:[%s2846_s0 + $0xc4] sm:$0xf]  ;;  %v1767_v39 = vld [vmem:[%s2846_s0 + $0xc8] sm:$0xf0]  ;;  %v1706_v41 = vor.u32 %v1871_v34, %v1703_v35  ;;  %v1873_v46 = vld [vmem:[%s2846_s0 + $0x54] sm:$0xf] }
  0x50   : > { %v1711_v47 = vld [vmem:[%s2846_s0 + $0x58] sm:$0xf0]  ;;  %v1773_v48 = vld [vmem:[%s2846_s0 + $0xd0] sm:$0xf]  ;;  %v1890_v49 = vld [vmem:[%s2846_s0 + $0xd4] sm:$0xf0] }
  0x51   : > { %v1714_v53 = vor.u32 %v1873_v46, %v1711_v47  ;;  %v1774_v54 = vor.u32 %v1890_v49, %v1773_v48  ;;  %v1781_v60 = vld [vmem:[%s2846_s0 + $0xe0] sm:$0xf]  ;;  %v1892_v61 = vld [vmem:[%s2846_s0 + $0xe4] sm:$0xf0]  ;;  %v1891_v62 = vld [vmem:[%s2846_s0 + $0xe4] sm:$0xf] }
  0x52   : > { %820 = vmatpush.bf16.msra.mxu0 %v1897_v42  ;;  %2011 = vmatpush.bf16.msra.mxu2 %v1897_v42  ;;  %v1766_v42 = vor.u32 %v1888_v37, %v1765_v36  ;;  %v1783_v63 = vld [vmem:[%s2846_s0 + $0xe8] sm:$0xf0]  ;;  %v1782_v2 = vor.u32 %v1892_v61, %v1781_v60  ;;  %v1789_v8 = vld [vmem:[%s2846_s0 + $0xf0] sm:$0xf]  ;;  %v1894_v9 = vld [vmem:[%s2846_s0 + $0xf4] sm:$0xf0] }
  0x53   : > { %909 = vmatpush.bf16.msra.mxu1 %v1905_v43  ;;  %2019 = vmatpush.bf16.msra.mxu3 %v1905_v43  ;;  %v1770_v43 = vor.u32 %v1887_v38, %v1767_v39  ;;  %v1786_v3 = vor.u32 %v1891_v62, %v1783_v63  ;;  %v1893_v10 = vld [vmem:[%s2846_s0 + $0xf4] sm:$0xf]  ;;  %v1791_v11 = vld [vmem:[%s2846_s0 + $0xf8] sm:$0xf0]  ;;  %v1790_v14 = vor.u32 %v1894_v9, %v1789_v8 }
  0x54   : > { %v1794_v15 = vor.u32 %v1893_v10, %v1791_v11 }
  0x56   : > { %821 = vmatpush.bf16.msra.mxu0 %v1896_v44  ;;  %2012 = vmatpush.bf16.msra.mxu2 %v1896_v44  ;;  %v1709_v44 = vld [vmem:[%s2846_s0 + $0x50] sm:$0xf] }
  0x57   : > { %910 = vmatpush.bf16.msra.mxu1 %v1904_v45  ;;  %2020 = vmatpush.bf16.msra.mxu3 %v1904_v45  ;;  %v1874_v45 = vld [vmem:[%s2846_s0 + $0x54] sm:$0xf0] }
  0x58   : > { %v1710_v52 = vor.u32 %v1874_v45, %v1709_v44 }
  0x5a   : > { %822 = vmatpush.bf16.msra.mxu0 %v1895_v50  ;;  %2013 = vmatpush.bf16.msra.mxu2 %v1895_v50  ;;  %v1889_v50 = vld [vmem:[%s2846_s0 + $0xd4] sm:$0xf] }
  0x5b   : > { %911 = vmatpush.bf16.msra.mxu1 %v1903_v51  ;;  %2021 = vmatpush.bf16.msra.mxu3 %v1903_v51  ;;  %v1775_v51 = vld [vmem:[%s2846_s0 + $0xd8] sm:$0xf0] }
  0x5c   : > { %v1778_v55 = vor.u32 %v1889_v50, %v1775_v51 }
  0x5d   : > { %823 = vmatmul.bf16.vlgmr.msra.gmra.mxu0 %v1670_v56  ;;  %863 = vmatmul.bf16.vlgmr.msra.gmra.mxu2 %v1734_v58  ;;  %v1717_v56 = vld [vmem:[%s2846_s0 + $0x60] sm:$0xf]  ;;  %v1875_v58 = vld [vmem:[%s2846_s0 + $0x64] sm:$0xf] }
  0x5e   : > { %912 = vmatmul.bf16.vlgmr.msra.gmra.mxu1 %v1674_v57  ;;  %952 = vmatmul.bf16.vlgmr.msra.gmra.mxu3 %v1738_v59  ;;  %v1876_v57 = vld [vmem:[%s2846_s0 + $0x64] sm:$0xf0]  ;;  %v1719_v59 = vld [vmem:[%s2846_s0 + $0x68] sm:$0xf0] }
  0x5f   : > { %v1718_v0 = vor.u32 %v1876_v57, %v1717_v56  ;;  %v1722_v1 = vor.u32 %v1875_v58, %v1719_v59 }
  0x6d   : > { %828 = vmatmul.bf16.gmra.mxu0 %v1678_v4  ;;  %868 = vmatmul.bf16.gmra.mxu2 %v1742_v6  ;;  %v1725_v4 = vld [vmem:[%s2846_s0 + $0x70] sm:$0xf]  ;;  %v1877_v6 = vld [vmem:[%s2846_s0 + $0x74] sm:$0xf] }
  0x6e   : > { %917 = vmatmul.bf16.gmra.mxu1 %v1682_v5  ;;  %957 = vmatmul.bf16.gmra.mxu3 %v1746_v7  ;;  %v1878_v5 = vld [vmem:[%s2846_s0 + $0x74] sm:$0xf0]  ;;  %v1727_v7 = vld [vmem:[%s2846_s0 + $0x78] sm:$0xf0] }
  0x6f   : > { %v1726_v12 = vor.u32 %v1878_v5, %v1725_v4  ;;  %v1730_v13 = vor.u32 %v1877_v6, %v1727_v7 }
  0x7d   : > { %833 = vmatmul.bf16.gmra.mxu0 %v1686_v16  ;;  %873 = vmatmul.bf16.gmra.mxu2 %v1750_v18 }
  0x7e   : > { %922 = vmatmul.bf16.gmra.mxu1 %v1690_v17  ;;  %962 = vmatmul.bf16.gmra.mxu3 %v1754_v19 }
  0x8d   : > { %838 = vmatmul.bf16.gmra.mxu0 %v1694_v28  ;;  %878 = vmatmul.bf16.gmra.mxu2 %v1758_v30 }
  0x8e   : > { %927 = vmatmul.bf16.gmra.mxu1 %v1698_v29  ;;  %967 = vmatmul.bf16.gmra.mxu3 %v1762_v31 }
  0x9d   : > { %843 = vmatmul.bf16.gmra.mxu0 %v1702_v40  ;;  %883 = vmatmul.bf16.gmra.mxu2 %v1766_v42 }
  0x9e   : > { %932 = vmatmul.bf16.gmra.mxu1 %v1706_v41  ;;  %972 = vmatmul.bf16.gmra.mxu3 %v1770_v43 }
  0xad   : > { %848 = vmatmul.bf16.gmra.mxu0 %v1710_v52  ;;  %888 = vmatmul.bf16.gmra.mxu2 %v1774_v54 }
  0xae   : > { %937 = vmatmul.bf16.gmra.mxu1 %v1714_v53  ;;  %977 = vmatmul.bf16.gmra.mxu3 %v1778_v55 }
  0xbd   : > { %853 = vmatmul.bf16.gmra.mxu0 %v1718_v0  ;;  %893 = vmatmul.bf16.gmra.mxu2 %v1782_v2 }
  0xbe   : > { %942 = vmatmul.bf16.gmra.mxu1 %v1722_v1  ;;  %982 = vmatmul.bf16.gmra.mxu3 %v1786_v3 }
  0xcd   : > { %858 = vmatmul.bf16.gmra.mxu0 %v1726_v12  ;;  %898 = vmatmul.bf16.gmra.mxu2 %v1790_v14 }
  0xce   : > { %947 = vmatmul.bf16.gmra.mxu1 %v1730_v13  ;;  %987 = vmatmul.bf16.gmra.mxu3 %v1794_v15 }
  0xda   : > { %v824_v16 = vpop.f32.mrf.mxu0 }
  0xdb   : > { %v913_v17 = vpop.f32.mrf.mxu1 }
  0xdc   : > { %v2461_v18 = vadd.f32 %v913_v17, %v824_v16 }
  0xde   : > { %v1130_v7 = vmul.f32 %v2461_v18, %v2461_v18 }
  0xe0   : > { %v864_v19 = vpop.f32.mrf.mxu2 }
  0xe1   : > { %v953_v20 = vpop.f32.mrf.mxu3 }
  0xe2   : > { %v826_v21 = vpop.f32.mrf.mxu0  ;;  %v2463_v23 = vadd.f32 %v953_v20, %v864_v19 }
  0xe3   : > { %v915_v22 = vpop.f32.mrf.mxu1 }
  0xe4   : > { %v2465_v24 = vadd.f32 %v915_v22, %v826_v21 }
  0xe6   : > { %v1131_v6 = vmul.f32 %v2465_v24, %v2465_v24  ;;  %v1092_v8 = vadd.f32 %v2465_v24, %v2461_v18 }
  0xe8   : > { %v866_v25 = vpop.f32.mrf.mxu2  ;;  %v1162_v12 = vadd.f32 %v1131_v6, %v1130_v7 }
  0xe9   : > { %v955_v26 = vpop.f32.mrf.mxu3 }
  0xea   : > { %v829_v27 = vpop.f32.mrf.mxu0  ;;  %v2467_v29 = vadd.f32 %v955_v26, %v866_v25 }
  0xeb   : > { %v918_v28 = vpop.f32.mrf.mxu1 }
  0xec   : > { %v2469_v30 = vadd.f32 %v918_v28, %v829_v27 }
  0xee   : > { %v1132_v9 = vmul.f32 %v2469_v30, %v2469_v30  ;;  %v1093_v13 = vadd.f32 %v1092_v8, %v2469_v30 }
  0xf0   : > { %v869_v31 = vpop.f32.mrf.mxu2  ;;  %v1163_v19 = vadd.f32 %v1162_v12, %v1132_v9 }
  0xf1   : > { %v958_v32 = vpop.f32.mrf.mxu3 }
  0xf2   : > { %v831_v33 = vpop.f32.mrf.mxu0  ;;  %v2471_v35 = vadd.f32 %v958_v32, %v869_v31 }
  0xf3   : > { %v920_v34 = vpop.f32.mrf.mxu1 }
  0xf4   : > { %v2473_v36 = vadd.f32 %v920_v34, %v831_v33 }
  0xf6   : > { %v1133_v14 = vmul.f32 %v2473_v36, %v2473_v36  ;;  %v1094_v20 = vadd.f32 %v1093_v13, %v2473_v36 }
  0xf8   : > { %v871_v37 = vpop.f32.mrf.mxu2  ;;  %v1164_v25 = vadd.f32 %v1163_v19, %v1133_v14 }
  0xf9   : > { %v960_v38 = vpop.f32.mrf.mxu3 }
  0xfa   : > { %v834_v39 = vpop.f32.mrf.mxu0  ;;  %v2475_v41 = vadd.f32 %v960_v38, %v871_v37 }
  0xfb   : > { %v923_v40 = vpop.f32.mrf.mxu1 }
  0xfc   : > { %v2477_v42 = vadd.f32 %v923_v40, %v834_v39 }
  0xfe   : > { %v1134_v21 = vmul.f32 %v2477_v42, %v2477_v42  ;;  %v1095_v26 = vadd.f32 %v1094_v20, %v2477_v42 }
 0x100   : > { %v874_v43 = vpop.f32.mrf.mxu2  ;;  %v1165_v31 = vadd.f32 %v1164_v25, %v1134_v21 }
 0x101   : > { %v963_v44 = vpop.f32.mrf.mxu3 }
 0x102   : > { %v836_v45 = vpop.f32.mrf.mxu0  ;;  %v2479_v47 = vadd.f32 %v963_v44, %v874_v43 }
 0x103   : > { %v925_v46 = vpop.f32.mrf.mxu1 }
 0x104   : > { %v2512_v15 = vadd.f32 %v925_v46, %v836_v45 }
 0x106   : > { %v1135_v27 = vmul.f32 %v2512_v15, %v2512_v15  ;;  %v1096_v32 = vadd.f32 %v1095_v26, %v2512_v15 }
 0x108   : > { %v2481_v48 = vpop.f32.mrf.mxu2  ;;  %v1166_v39 = vadd.f32 %v1165_v31, %v1135_v27 }
 0x109   : > { %v2483_v49 = vpop.f32.mrf.mxu3 }
 0x10a   : > { %v839_v50 = vpop.f32.mrf.mxu0 }
 0x10b   : > { %v928_v51 = vpop.f32.mrf.mxu1 }
 0x10c   : > { %v2521_v22 = vadd.f32 %v928_v51, %v839_v50 }
 0x10e   : > { %v1136_v33 = vmul.f32 %v2521_v22, %v2521_v22  ;;  %v1097_v40 = vadd.f32 %v1096_v32, %v2521_v22 }
 0x110   : > { %v2485_v54 = vpop.f32.mrf.mxu2  ;;  %v1167_v45 = vadd.f32 %v1166_v39, %v1136_v33 }
 0x111   : > { %v2487_v55 = vpop.f32.mrf.mxu3 }
 0x112   : > { %v841_v52 = vpop.f32.mrf.mxu0 }
 0x113   : > { %v930_v53 = vpop.f32.mrf.mxu1 }
 0x114   : > { %v2526_v28 = vadd.f32 %v930_v53, %v841_v52 }
 0x116   : > { %v1137_v43 = vmul.f32 %v2526_v28, %v2526_v28  ;;  %v1098_v46 = vadd.f32 %v1097_v40, %v2526_v28 }
 0x118   : > { %v2489_v58 = vpop.f32.mrf.mxu2 }
 0x119   : > { %v2491_v59 = vpop.f32.mrf.mxu3 }
 0x11a   : > { %v844_v56 = vpop.f32.mrf.mxu0 }
 0x11b   : > { %v933_v57 = vpop.f32.mrf.mxu1 }
 0x11c   : > { %v2531_v34 = vadd.f32 %v933_v57, %v844_v56  ;;  %v1168_v56 = vadd.f32 %v1167_v45, %v1137_v43 }
 0x11e   : > { %v1138_v50 = vmul.f32 %v2531_v34, %v2531_v34  ;;  %v1099_v57 = vadd.f32 %v1098_v46, %v2531_v34 }
 0x120   : > { %v2493_v62 = vpop.f32.mrf.mxu2 }
 0x121   : > { %v2495_v63 = vpop.f32.mrf.mxu3 }
 0x122   : > { %v846_v60 = vpop.f32.mrf.mxu0 }
 0x123   : > { %v935_v61 = vpop.f32.mrf.mxu1 }
 0x124   : > { %v2536_v44 = vadd.f32 %v935_v61, %v846_v60  ;;  %v1169_v61 = vadd.f32 %v1168_v56, %v1138_v50  ;;  %v1146_v56 = vmul.f32 %v2463_v23, %v2463_v23 }
 0x126   : > { %v1139_v6 = vmul.f32 %v2536_v44, %v2536_v44  ;;  %v1100_v7 = vadd.f32 %v1099_v57, %v2536_v44 }
 0x128   : > { %v2497_v2 = vpop.f32.mrf.mxu2  ;;  %v1170_v12 = vadd.f32 %v1169_v61, %v1139_v6  ;;  %v1147_v61 = vmul.f32 %v2467_v29, %v2467_v29 }
 0x129   : > { %v2499_v3 = vpop.f32.mrf.mxu3 }
 0x12a   : > { %v849_v0 = vpop.f32.mrf.mxu0 }
 0x12b   : > { %v938_v1 = vpop.f32.mrf.mxu1 }
 0x12c   : > { %v2541_v51 = vadd.f32 %v938_v1, %v849_v0 }
 0x12e   : > { %v1140_v8 = vmul.f32 %v2541_v51, %v2541_v51  ;;  %v1101_v13 = vadd.f32 %v1100_v7, %v2541_v51 }
 0x130   : > { %v2514_v16 = vpop.f32.mrf.mxu2 }
 0x131   : > { %v2516_v17 = vpop.f32.mrf.mxu3 }
 0x132   : > { %v851_v4 = vpop.f32.mrf.mxu0 }
 0x133   : > { %v940_v5 = vpop.f32.mrf.mxu1 }
 0x134   : > { %v2550_v60 = vadd.f32 %v940_v5, %v851_v4  ;;  %v1171_v4 = vadd.f32 %v1170_v12, %v1140_v8  ;;  %v1148_v12 = vmul.f32 %v2471_v35, %v2471_v35 }
 0x136   : > { %v1141_v14 = vmul.f32 %v2550_v60, %v2550_v60  ;;  %v1102_v5 = vadd.f32 %v1101_v13, %v2550_v60 }
 0x138   : > { %v2543_v52 = vpop.f32.mrf.mxu2 }
 0x139   : > { %v2545_v53 = vpop.f32.mrf.mxu3 }
 0x13a   : > { %v854_v10 = vpop.f32.mrf.mxu0 }
 0x13b   : > { %v943_v11 = vpop.f32.mrf.mxu1 }
 0x13c   : > { %v2555_v0 = vadd.f32 %v943_v11, %v854_v10  ;;  %v1172_v10 = vadd.f32 %v1171_v4, %v1141_v14  ;;  %v1149_v4 = vmul.f32 %v2475_v41, %v2475_v41 }
 0x13e   : > { %v1142_v20 = vmul.f32 %v2555_v0, %v2555_v0  ;;  %v1103_v11 = vadd.f32 %v1102_v5, %v2555_v0  ;;  %v2592_v5 = vadd.f32 %v2483_v49, %v2481_v48  ;;  %v2606_v48 = vadd.f32 %v2491_v59, %v2489_v58 }
 0x13f   : > { %v2620_v58 = vadd.f32 %v2499_v3, %v2497_v2  ;;  %v2634_v2 = vadd.f32 %v2545_v53, %v2543_v52 }
 0x140   : > { %v894_v26 = vpop.f32.mrf.mxu2  ;;  %v1173_v31 = vadd.f32 %v1172_v10, %v1142_v20 }
 0x141   : > { %v983_v27 = vpop.f32.mrf.mxu3 }
 0x142   : > { %v856_v37 = vpop.f32.mrf.mxu0 }
 0x143   : > { %v945_v38 = vpop.f32.mrf.mxu1 }
 0x144   : > { %v2560_v19 = vadd.f32 %v945_v38, %v856_v37 }
 0x146   : > { %v1143_v25 = vmul.f32 %v2560_v19, %v2560_v19  ;;  %v1104_v32 = vadd.f32 %v1103_v11, %v2560_v19  ;;  %v1150_v11 = vmul.f32 %v2479_v47, %v2479_v47 }
 0x148   : > { %v1174_v39 = vadd.f32 %v1173_v31, %v1143_v25  ;;  %v2599_v25 = vadd.f32 %v2487_v55, %v2485_v54  ;;  %v2613_v54 = vadd.f32 %v2495_v63, %v2493_v62  ;;  %v2627_v62 = vadd.f32 %v2516_v17, %v2514_v16 }
 0x14a   : > { %v859_v1 = vpop.f32.mrf.mxu0 }
 0x14b   : > { %v948_v9 = vpop.f32.mrf.mxu1 }
 0x14c   : > { %v2565_v21 = vadd.f32 %v948_v9, %v859_v1  ;;  %v896_v1 = vpop.f32.mrf.mxu2  ;;  %v985_v9 = vpop.f32.mrf.mxu3 }
 0x14e   : > { %v1144_v33 = vmul.f32 %v2565_v21, %v2565_v21  ;;  %v1105_v40 = vadd.f32 %v1104_v32, %v2565_v21 }
 0x150   : > { %v1175_v45 = vadd.f32 %v1174_v39, %v1144_v33  ;;  %v1151_v33 = vmul.f32 %v2592_v5, %v2592_v5 }
 0x152   : > { %v861_v37 = vpop.f32.mrf.mxu0 }
 0x153   : > { %v950_v38 = vpop.f32.mrf.mxu1 }
 0x154   : > { %v2574_v43 = vadd.f32 %v950_v38, %v861_v37  ;;  %v1152_v38 = vmul.f32 %v2599_v25, %v2599_v25 }
 0x156   : > { %v1106_v46 = vadd.f32 %v1105_v40, %v2574_v43  ;;  %v1145_v50 = vmul.f32 %v2574_v43, %v2574_v43  ;;  %v899_v40 = vpop.f32.mrf.mxu2 }
 0x158   : > { %v1107_v57 = vadd.f32 %v1106_v46, %v2463_v23  ;;  %v1176_v6 = vadd.f32 %v1175_v45, %v1145_v50  ;;  %v988_v45 = vpop.f32.mrf.mxu3  ;;  %v1153_v46 = vmul.f32 %v2606_v48, %v2606_v48 }
 0x15a   : > { %v1108_v7 = vadd.f32 %v1107_v57, %v2467_v29  ;;  %v1177_v8 = vadd.f32 %v1176_v6, %v1146_v56  ;;  %v1154_v56 = vmul.f32 %v2613_v54, %v2613_v54  ;;  %v1155_v6 = vmul.f32 %v2620_v58, %v2620_v58 }
 0x15c   : > { %v1109_v13 = vadd.f32 %v1108_v7, %v2471_v35  ;;  %v1178_v14 = vadd.f32 %v1177_v8, %v1147_v61  ;;  %v1156_v7 = vmul.f32 %v2627_v62, %v2627_v62  ;;  %v2639_v8 = vadd.f32 %v983_v27, %v894_v26 }
 0x15d   : > { %v2650_v27 = vadd.f32 %v988_v45, %v899_v40 }
 0x15e   : > { %v1110_v20 = vadd.f32 %v1109_v13, %v2475_v41  ;;  %v1179_v10 = vadd.f32 %v1178_v14, %v1148_v12  ;;  %v1157_v12 = vmul.f32 %v2634_v2, %v2634_v2  ;;  %v901_v52 = vpop.f32.mrf.mxu2 }
 0x160   : > { %v1111_v31 = vadd.f32 %v1110_v20, %v2479_v47  ;;  %v1180_v32 = vadd.f32 %v1179_v10, %v1149_v4  ;;  %v2645_v4 = vadd.f32 %v985_v9, %v896_v1  ;;  %v990_v53 = vpop.f32.mrf.mxu3  ;;  %v1158_v10 = vmul.f32 %v2639_v8, %v2639_v8 }
 0x162   : > { %v1112_v49 = vadd.f32 %v1111_v31, %v2592_v5  ;;  %v1181_v37 = vadd.f32 %v1180_v32, %v1150_v11  ;;  %v1159_v32 = vmul.f32 %v2645_v4, %v2645_v4 }
 0x164   : > { %v1182_v55 = vadd.f32 %v1181_v37, %v1151_v33  ;;  %v1113_v39 = vadd.f32 %v1112_v49, %v2599_v25  ;;  %v2655_v33 = vadd.f32 %v990_v53, %v901_v52  ;;  %v1160_v49 = vmul.f32 %v2650_v27, %v2650_v27 }
 0x166   : > { %v1114_v59 = vadd.f32 %v1113_v39, %v2606_v48  ;;  %v1183_v50 = vadd.f32 %v1182_v55, %v1152_v38  ;;  %v1161_v55 = vmul.f32 %v2655_v33, %v2655_v33 }
 0x168   : > { %v1115_v63 = vadd.f32 %v1114_v59, %v2613_v54  ;;  %v1184_v57 = vadd.f32 %v1183_v50, %v1153_v46 }
 0x16a   : > { %v1116_v3 = vadd.f32 %v1115_v63, %v2620_v58  ;;  %v1185_v61 = vadd.f32 %v1184_v57, %v1154_v56 }
 0x16c   : > { %v1117_v16 = vadd.f32 %v1116_v3, %v2627_v62  ;;  %v1186_v17 = vadd.f32 %v1185_v61, %v1155_v6 }
 0x16e   : > { %v1118_v13 = vadd.f32 %v1117_v16, %v2634_v2  ;;  %v1187_v14 = vadd.f32 %v1186_v17, %v1156_v7 }
 0x170   : > { %v1119_v20 = vadd.f32 %v1118_v13, %v2639_v8  ;;  %v1188_v26 = vadd.f32 %v1187_v14, %v1157_v12 }
 0x172   : > { %v1189_v11 = vadd.f32 %v1188_v26, %v1158_v10  ;;  %v1120_v31 = vadd.f32 %v1119_v20, %v2645_v4 }
 0x174   : > { %v1190_v1 = vadd.f32 %v1189_v11, %v1159_v32  ;;  %v1121_v9 = vadd.f32 %v1120_v31, %v2650_v27 }
 0x176   : > { %v1191_v37 = vadd.f32 %v1190_v1, %v1160_v49  ;;  %v1122_v38 = vadd.f32 %v1121_v9, %v2655_v33  ;;  %v1214_v1 = vld [vmem:[%s423_s15] sm:$0x1] }
 0x178   : > { %v1123_v39 = vrot.slane %v1122_v38, 4  ;;  %v1192_v40 = vadd.f32 %v1191_v37, %v1161_v55 }
 0x17a   : > { %v1124_v45 = vadd.f32 %v1123_v39, %v1122_v38  ;;  %v1193_v46 = vrot.slane %v1192_v40, 4  ;;  %v1216_v38 = vld [vmem:[%s426_s23] sm:$0x1] }
 0x17c   : > { %v1125_v59 = vrot.slane %v1124_v45, 2  ;;  %v1194_v50 = vadd.f32 %v1193_v46, %v1192_v40 }
 0x17e   : > { %v1126_v56 = vadd.f32 %v1125_v59, %v1124_v45  ;;  %v1195_v63 = vrot.slane %v1194_v50, 2 }
 0x180   : > { %v1127_v57 = vrot.slane %v1126_v56, 1  ;;  %v1196_v6 = vadd.f32 %v1195_v63, %v1194_v50 }
 0x182   : > { %v1128_v3 = vadd.f32 %v1127_v57, %v1126_v56  ;;  %v1197_v61 = vrot.slane %v1196_v6, 1 }
 0x184   : > { %v1129_v7 = vmul.f32 0.00390625, %v1128_v3  ;;  %v1198_v16 = vadd.f32 %v1197_v61, %v1196_v6 }
 0x186   : > { %v1199_v17 = vmul.f32 0.00390625, %v1198_v16  ;;  %v1200_v12 = vmul.f32 %v1129_v7, %v1129_v7 }
 0x188   : > { %v1201_v13 = vsub.f32 %v1199_v17, %v1200_v12 }
 0x18a   : > { %v1202_v14 = vmax.f32 %v1201_v13, 0.0 }
 0x18c   : > { %v1203_v52 = vadd.f32 1e-05, %v1202_v14 }
 0x18e   : > { %2062 = vrsqrt.f32 %v1203_v52  ;;  %vm1210_vm1 = vweird.f32 %v1203_v52 }
 0x194   : > { %v2063_v53 = vpop.eup %2062 }
 0x195   : > { %v1205_v20 = vmul.f32 %v2063_v53, %v1203_v52  ;;  %vm1211_vm0 = vweird.f32 %v2063_v53 }
 0x196   : > { %vm1212_vm2 = vmor %vm1210_vm1, %vm1211_vm0 }
 0x197   : > { %v1206_v10 = vmul.f32 %v2063_v53, %v1205_v20 }
 0x199   : > { %v1207_v26 = vmul.f32 0.5, %v1206_v10 }
 0x19b   : > { %v1208_v11 = vsub.f32 1.5, %v1207_v26 }
 0x19d   : > { %v1209_v31 = vmul.f32 %v2063_v53, %v1208_v11 }
 0x19f   : > { %v1213_v32 = vsel %vm1212_vm2, %v2063_v53, %v1209_v31 }
 0x1a0   : > { %v1215_v9 = vmul.f32 %v1214_v1, %v1213_v32 }
 0x1a2   : > { %v1217_v49 = vmul.f32 %v1215_v9, %v1129_v7  ;;  %v1219_v37 = vperm.slane %v1215_v9, 0 }
 0x1a4   : > { %v1218_v55 = vsub.f32 %v1216_v38, %v1217_v49  ;;  %v1220_v39 = vmul.f32 %v1219_v37, %v2461_v18  ;;  %v1221_v40 = vmul.f32 %v1219_v37, %v2465_v24  ;;  %v1222_v45 = vmul.f32 %v1219_v37, %v2469_v30 }
 0x1a5   : > { %v1223_v46 = vmul.f32 %v1219_v37, %v2473_v36  ;;  %v1224_v59 = vmul.f32 %v1219_v37, %v2477_v42  ;;  %v1225_v50 = vmul.f32 %v1219_v37, %v2512_v15  ;;  %v1226_v56 = vmul.f32 %v1219_v37, %v2521_v22 }
 0x1a6   : > { %v1227_v63 = vmul.f32 %v1219_v37, %v2526_v28  ;;  %v1228_v57 = vmul.f32 %v1219_v37, %v2531_v34  ;;  %v1229_v6 = vmul.f32 %v1219_v37, %v2536_v44  ;;  %v1230_v18 = vmul.f32 %v1219_v37, %v2541_v51 }
 0x1a7   : > { %v1231_v24 = vmul.f32 %v1219_v37, %v2550_v60  ;;  %v1232_v30 = vmul.f32 %v1219_v37, %v2555_v0  ;;  %v1233_v36 = vmul.f32 %v1219_v37, %v2560_v19  ;;  %v1234_v42 = vmul.f32 %v1219_v37, %v2565_v21 }
 0x1a8   : > { %v1235_v15 = vmul.f32 %v1219_v37, %v2574_v43  ;;  %v1236_v22 = vmul.f32 %v1219_v37, %v2463_v23  ;;  %v1237_v28 = vmul.f32 %v1219_v37, %v2467_v29  ;;  %v1238_v34 = vmul.f32 %v1219_v37, %v2471_v35 }
 0x1a9   : > { %v1239_v44 = vmul.f32 %v1219_v37, %v2475_v41  ;;  %v2691_v3 = vperm.slane %v1218_v55, 0  ;;  %v1240_v51 = vmul.f32 %v1219_v37, %v2479_v47  ;;  %v1241_v60 = vmul.f32 %v1219_v37, %v2592_v5 }
 0x1aa   : > { %v1242_v0 = vmul.f32 %v1219_v37, %v2599_v25  ;;  %v1243_v19 = vmul.f32 %v1219_v37, %v2606_v48  ;;  %v1244_v21 = vmul.f32 %v1219_v37, %v2613_v54  ;;  %v1245_v23 = vmul.f32 %v1219_v37, %v2620_v58 }
 0x1ab   : > { %v1246_v29 = vmul.f32 %v1219_v37, %v2627_v62  ;;  %v1247_v35 = vmul.f32 %v1219_v37, %v2634_v2  ;;  %v1248_v41 = vmul.f32 %v1219_v37, %v2639_v8  ;;  %v1249_v43 = vmul.f32 %v1219_v37, %v2645_v4 }
 0x1ac   : > { %v1250_v47 = vmul.f32 %v1219_v37, %v2650_v27  ;;  %v2705_v5 = vmul.f32 %v1219_v37, %v2655_v33  ;;  %v1255_v25 = vadd.f32 %v2691_v3, %v1220_v39  ;;  %v1256_v48 = vadd.f32 %v2691_v3, %v1221_v40 }
 0x1ad   : > { %v1257_v54 = vadd.f32 %v2691_v3, %v1222_v45  ;;  %v1258_v58 = vadd.f32 %v2691_v3, %v1223_v46  ;;  %v1259_v62 = vadd.f32 %v2691_v3, %v1224_v59  ;;  %v1260_v2 = vadd.f32 %v2691_v3, %v1225_v50 }
 0x1ae   : > { %v1261_v8 = vadd.f32 %v2691_v3, %v1226_v56  ;;  %v1262_v4 = vadd.f32 %v2691_v3, %v1227_v63  ;;  %v1263_v27 = vadd.f32 %v2691_v3, %v1228_v57  ;;  %v1264_v33 = vadd.f32 %v2691_v3, %v1229_v6 }
 0x1af   : > { %v1265_v61 = vadd.f32 %v2691_v3, %v1230_v18  ;;  %v1266_v7 = vadd.f32 %v2691_v3, %v1231_v24  ;;  %v1267_v16 = vadd.f32 %v2691_v3, %v1232_v30  ;;  %v1268_v17 = vadd.f32 %v2691_v3, %v1233_v36 }
 0x1b0   : > { %v1269_v12 = vadd.f32 %v2691_v3, %v1234_v42  ;;  %v1270_v13 = vadd.f32 %v2691_v3, %v1235_v15  ;;  %v1271_v14 = vadd.f32 %v2691_v3, %v1236_v22  ;;  %v1272_v52 = vadd.f32 %v2691_v3, %v1237_v28 }
 0x1b1   : > { %v1273_v53 = vadd.f32 %v2691_v3, %v1238_v34  ;;  %v1274_v20 = vadd.f32 %v2691_v3, %v1239_v44  ;;  %v1275_v10 = vadd.f32 %v2691_v3, %v1240_v51  ;;  %v1276_v26 = vadd.f32 %v2691_v3, %v1241_v60 }
 0x1b2   : > { %v1287_v11 = vmax.f32 %v1255_v25, 0.0  ;;  %v1288_v31 = vmax.f32 %v1256_v48, 0.0  ;;  %v1289_v32 = vmax.f32 %v1257_v54, 0.0  ;;  %v1290_v1 = vmax.f32 %v1258_v58, 0.0 }
 0x1b3   : > { %v1291_v9 = vmax.f32 %v1259_v62, 0.0  ;;  %v1292_v49 = vmax.f32 %v1260_v2, 0.0  ;;  %v1277_v37 = vadd.f32 %v2691_v3, %v1242_v0  ;;  %v1278_v38 = vadd.f32 %v2691_v3, %v1243_v19 }
 0x1b4   : > { %v1293_v55 = vmax.f32 %v1261_v8, 0.0  ;;  %v1294_v39 = vmax.f32 %v1262_v4, 0.0  ;;  %v1279_v40 = vadd.f32 %v2691_v3, %v1244_v21  ;;  %v1280_v45 = vadd.f32 %v2691_v3, %v1245_v23 }
 0x1b5   : > { %v1295_v46 = vmax.f32 %v1263_v27, 0.0  ;;  %v1296_v59 = vmax.f32 %v1264_v33, 0.0  ;;  %v1281_v50 = vadd.f32 %v2691_v3, %v1246_v29  ;;  %v1297_v56 = vmax.f32 %v1265_v61, 0.0 }
 0x1b6   : > { %v1298_v63 = vmax.f32 %v1266_v7, 0.0  ;;  %v1299_v57 = vmax.f32 %v1267_v16, 0.0  ;;  %v1300_v6 = vmax.f32 %v1268_v17, 0.0  ;;  %v1914_v18 = vpack.c.bf16 %v1288_v31, %v1287_v11 }
 0x1b7   : > { %v1919_v24 = vpack.c.bf16 %v1290_v1, %v1289_v32  ;;  %v1924_v30 = vpack.c.bf16 %v1292_v49, %v1291_v9  ;;  %v1282_v36 = vadd.f32 %v2691_v3, %v1247_v35  ;;  %v1301_v42 = vmax.f32 %v1269_v12, 0.0 }
 0x1b8   : > { %v1302_v15 = vmax.f32 %v1270_v13, 0.0  ;;  %v1929_v22 = vpack.c.bf16 %v1294_v39, %v1293_v55  ;;  %v1283_v28 = vadd.f32 %v2691_v3, %v1248_v41  ;;  %v1303_v34 = vmax.f32 %v1271_v14, 0.0  ;;  %1915 = vst [vmem:[%s2737_s26] sm:$0xff] %v1914_v18  }
 0x1b9   : > { %v1304_v44 = vmax.f32 %v1272_v52, 0.0  ;;  %v1934_v51 = vpack.c.bf16 %v1296_v59, %v1295_v46  ;;  %v1284_v60 = vadd.f32 %v2691_v3, %v1249_v43  ;;  %v1305_v0 = vmax.f32 %v1273_v53, 0.0  ;;  %1991 = vst [vmem:[%s2737_s26 + $0x8] sm:$0xff] %v1919_v24  }
 0x1ba   : > { %v1306_v19 = vmax.f32 %v1274_v20, 0.0  ;;  %v1939_v21 = vpack.c.bf16 %v1298_v63, %v1297_v56  ;;  %v1285_v23 = vadd.f32 %v2691_v3, %v1250_v47  ;;  %v1307_v29 = vmax.f32 %v1275_v10, 0.0  ;;  %1992 = vst [vmem:[%s2737_s26 + $0x10] sm:$0xff] %v1924_v30  }
 0x1bb   : > { %v1308_v35 = vmax.f32 %v1276_v26, 0.0  ;;  %v1944_v41 = vpack.c.bf16 %v1300_v6, %v1299_v57  ;;  %v1286_v25 = vadd.f32 %v2691_v3, %v2705_v5  ;;  %v1309_v48 = vmax.f32 %v1277_v37, 0.0  ;;  %1993 = vst [vmem:[%s2737_s26 + $0x18] sm:$0xff] %v1929_v22  }
 0x1bc   : > { %v1310_v54 = vmax.f32 %v1278_v38, 0.0  ;;  %v1949_v43 = vpack.c.bf16 %v1302_v15, %v1301_v42  ;;  %v1311_v58 = vmax.f32 %v1279_v40, 0.0  ;;  %v1312_v62 = vmax.f32 %v1280_v45, 0.0  ;;  %1994 = vst [vmem:[%s2737_s26 + $0x20] sm:$0xff] %v1934_v51  }
 0x1bd   : > { %v1954_v47 = vpack.c.bf16 %v1304_v44, %v1303_v34  ;;  %v1313_v2 = vmax.f32 %v1281_v50, 0.0  ;;  %v1314_v8 = vmax.f32 %v1282_v36, 0.0  ;;  %1995 = vst [vmem:[%s2737_s26 + $0x28] sm:$0xff] %v1939_v21   ;;  %v1959_v4 = vpack.c.bf16 %v1306_v19, %v1305_v0 }
 0x1be   : > { %v1315_v27 = vmax.f32 %v1283_v28, 0.0  ;;  %v1316_v3 = vmax.f32 %v1284_v60, 0.0  ;;  %1996 = vst [vmem:[%s2737_s26 + $0x30] sm:$0xff] %v1944_v41   ;;  %v1964_v5 = vpack.c.bf16 %v1308_v35, %v1307_v29  ;;  %v1317_v33 = vmax.f32 %v1285_v23, 0.0 }
 0x1bf   : > { %v1318_v61 = vmax.f32 %v1286_v25, 0.0  ;;  %1997 = vst [vmem:[%s2737_s26 + $0x38] sm:$0xff] %v1949_v43   ;;  %v1969_v7 = vpack.c.bf16 %v1310_v54, %v1309_v48  ;;  %v1974_v16 = vpack.c.bf16 %v1312_v62, %v1311_v58  ;;  %v1979_v17 = vpack.c.bf16 %v1314_v8, %v1313_v2  ;;  %v1408_v14 = vld [vmem:[%s2737_s26] sm:$0xf] (%p2164_p6)  ;;  %v1410_v52 = vld [vmem:[%s2737_s26 + $0x4] sm:$0xf] (%p2164_p6) }
 0x1c0   : > { %1998 = vst [vmem:[%s2737_s26 + $0x40] sm:$0xff] %v1954_v47   ;;  %v1984_v12 = vpack.c.bf16 %v1316_v3, %v1315_v27  ;;  %v1412_v53 = vld [vmem:[%s2737_s26 + $0x8] sm:$0xf] (%p2164_p6)  ;;  %v1414_v20 = vld [vmem:[%s2737_s26 + $0xc] sm:$0xf] (%p2164_p6) }
 0x1c1   : > { %1999 = vst [vmem:[%s2737_s26 + $0x48] sm:$0xff] %v1959_v4   ;;  %v1989_v13 = vpack.c.bf16 %v1318_v61, %v1317_v33  ;;  %v1416_v10 = vld [vmem:[%s2737_s26 + $0x10] sm:$0xf] (%p2164_p6)  ;;  %v1418_v26 = vld [vmem:[%s2737_s26 + $0x14] sm:$0xf] (%p2164_p6) }
 0x1c2   : > { %2000 = vst [vmem:[%s2737_s26 + $0x50] sm:$0xff] %v1964_v5   ;;  %v1420_v11 = vld [vmem:[%s2737_s26 + $0x18] sm:$0xf] (%p2164_p6)  ;;  %v1422_v31 = vld [vmem:[%s2737_s26 + $0x1c] sm:$0xf] (%p2164_p6) }
 0x1c3   : > { %2001 = vst [vmem:[%s2737_s26 + $0x58] sm:$0xff] %v1969_v7   ;;  %1389 = sbr.rel (!%p2164_p6) target bundleno = 488 (0x1e8), region = 89  ;;  %v1424_v32 = vld [vmem:[%s2737_s26 + $0x20] sm:$0xf] (%p2164_p6)  ;;  %v1426_v1 = vld [vmem:[%s2737_s26 + $0x24] sm:$0xf] (%p2164_p6) }
 0x1c4   : > { %2002 = vst [vmem:[%s2737_s26 + $0x60] sm:$0xff] %v1974_v16   ;;  %v1428_v9 = vld [vmem:[%s2737_s26 + $0x28] sm:$0xf] (%p2164_p6)  ;;  %v1430_v49 = vld [vmem:[%s2737_s26 + $0x2c] sm:$0xf] (%p2164_p6) }
 0x1c5   : > { %2003 = vst [vmem:[%s2737_s26 + $0x68] sm:$0xff] %v1979_v17   ;;  %v1432_v37 = vld [vmem:[%s2737_s26 + $0x30] sm:$0xf] (%p2164_p6)  ;;  %v1434_v38 = vld [vmem:[%s2737_s26 + $0x34] sm:$0xf] (%p2164_p6) }
 0x1c6   : > { %2004 = vst [vmem:[%s2737_s26 + $0x70] sm:$0xff] %v1984_v12   ;;  %v1436_v55 = vld [vmem:[%s2737_s26 + $0x38] sm:$0xf] (%p2164_p6)  ;;  %v1438_v39 = vld [vmem:[%s2737_s26 + $0x3c] sm:$0xf] (%p2164_p6) }
 0x1c7   : > { %2005 = vst [vmem:[%s2737_s26 + $0x78] sm:$0xff] %v1989_v13   ;;  %v1440_v40 = vld [vmem:[%s2737_s26 + $0x40] sm:$0xf] (%p2164_p6)  ;;  %v1442_v45 = vld [vmem:[%s2737_s26 + $0x44] sm:$0xf] (%p2164_p6) }
 0x1c8   : > { %1409 = vst [vmem:[%s2767_s29] sm:$0xf] %v1408_v14  ;;  %v1444_v46 = vld [vmem:[%s2737_s26 + $0x48] sm:$0xf]  ;;  %v1446_v59 = vld [vmem:[%s2737_s26 + $0x4c] sm:$0xf] }
 0x1c9   : > { %1411 = vst [vmem:[%s2767_s29 + $0x8] sm:$0xf] %v1410_v52  ;;  %v1448_v50 = vld [vmem:[%s2737_s26 + $0x50] sm:$0xf]  ;;  %v1450_v56 = vld [vmem:[%s2737_s26 + $0x54] sm:$0xf] }
 0x1ca   : > { %1413 = vst [vmem:[%s2767_s29 + $0x10] sm:$0xf] %v1412_v53  ;;  %v1452_v63 = vld [vmem:[%s2737_s26 + $0x58] sm:$0xf]  ;;  %v1454_v57 = vld [vmem:[%s2737_s26 + $0x5c] sm:$0xf] }
 0x1cb   : > { %1415 = vst [vmem:[%s2767_s29 + $0x18] sm:$0xf] %v1414_v20  ;;  %v1456_v6 = vld [vmem:[%s2737_s26 + $0x60] sm:$0xf]  ;;  %v1458_v18 = vld [vmem:[%s2737_s26 + $0x64] sm:$0xf] }
 0x1cc   : > { %1417 = vst [vmem:[%s2767_s29 + $0x20] sm:$0xf] %v1416_v10  ;;  %v1460_v24 = vld [vmem:[%s2737_s26 + $0x68] sm:$0xf]  ;;  %v1462_v30 = vld [vmem:[%s2737_s26 + $0x6c] sm:$0xf] }
 0x1cd   : > { %1419 = vst [vmem:[%s2767_s29 + $0x28] sm:$0xf] %v1418_v26  ;;  %v1464_v36 = vld [vmem:[%s2737_s26 + $0x70] sm:$0xf]  ;;  %v1466_v42 = vld [vmem:[%s2737_s26 + $0x74] sm:$0xf] }
 0x1ce   : > { %1421 = vst [vmem:[%s2767_s29 + $0x30] sm:$0xf] %v1420_v11  ;;  %v1468_v15 = vld [vmem:[%s2737_s26 + $0x78] sm:$0xf]  ;;  %v1470_v22 = vld [vmem:[%s2737_s26 + $0x7c] sm:$0xf] }
 0x1cf   : > { %1423 = vst [vmem:[%s2767_s29 + $0x38] sm:$0xf] %v1422_v31 }
 0x1d0   : > { %1425 = vst [vmem:[%s2767_s29 + $0x40] sm:$0xf] %v1424_v32 }
 0x1d1   : > { %1427 = vst [vmem:[%s2767_s29 + $0x48] sm:$0xf] %v1426_v1 }
 0x1d2   : > { %1429 = vst [vmem:[%s2767_s29 + $0x50] sm:$0xf] %v1428_v9 }
 0x1d3   : > { %1431 = vst [vmem:[%s2767_s29 + $0x58] sm:$0xf] %v1430_v49 }
 0x1d4   : > { %1433 = vst [vmem:[%s2767_s29 + $0x60] sm:$0xf] %v1432_v37 }
 0x1d5   : > { %1435 = vst [vmem:[%s2767_s29 + $0x68] sm:$0xf] %v1434_v38 }
 0x1d6   : > { %1437 = vst [vmem:[%s2767_s29 + $0x70] sm:$0xf] %v1436_v55 }
 0x1d7   : > { %1439 = vst [vmem:[%s2767_s29 + $0x78] sm:$0xf] %v1438_v39 }
 0x1d8   : > { %1441 = vst [vmem:[%s2767_s29 + $0x80] sm:$0xf] %v1440_v40 }
 0x1d9   : > { %1443 = vst [vmem:[%s2767_s29 + $0x88] sm:$0xf] %v1442_v45 }
 0x1da   : > { %1445 = vst [vmem:[%s2767_s29 + $0x90] sm:$0xf] %v1444_v46 }
 0x1db   : > { %1447 = vst [vmem:[%s2767_s29 + $0x98] sm:$0xf] %v1446_v59 }
 0x1dc   : > { %1449 = vst [vmem:[%s2767_s29 + $0xa0] sm:$0xf] %v1448_v50 }
 0x1dd   : > { %1451 = vst [vmem:[%s2767_s29 + $0xa8] sm:$0xf] %v1450_v56 }
 0x1de   : > { %1453 = vst [vmem:[%s2767_s29 + $0xb0] sm:$0xf] %v1452_v63 }
 0x1df   : > { %1455 = vst [vmem:[%s2767_s29 + $0xb8] sm:$0xf] %v1454_v57 }
 0x1e0   : > { %1457 = vst [vmem:[%s2767_s29 + $0xc0] sm:$0xf] %v1456_v6 }
 0x1e1   : > { %1459 = vst [vmem:[%s2767_s29 + $0xc8] sm:$0xf] %v1458_v18 }
 0x1e2   : > { %1461 = vst [vmem:[%s2767_s29 + $0xd0] sm:$0xf] %v1460_v24 }
 0x1e3   : > { %1463 = vst [vmem:[%s2767_s29 + $0xd8] sm:$0xf] %v1462_v30 }
 0x1e4   : > { %1465 = vst [vmem:[%s2767_s29 + $0xe0] sm:$0xf] %v1464_v36 }
 0x1e5   : > { %1467 = vst [vmem:[%s2767_s29 + $0xe8] sm:$0xf] %v1466_v42 }
 0x1e6   : > { %1469 = vst [vmem:[%s2767_s29 + $0xf0] sm:$0xf] %v1468_v15 }
 0x1e7   : > { %1471 = vst [vmem:[%s2767_s29 + $0xf8] sm:$0xf] %v1470_v22 }
 0x1e8 PF: > { %s14_s19 = sadd.s32 1, %s2102_s19   ;;  %s2852_s15 = smov %s2090_s16 }
 0x1e9   : > { %p11_p12 = scmp.ge.s32.totalorder %s14_s19, 4   ;;  %s2853_s16 = smov %s2169_s25 }
 0x1ea   : > { %s2854_s17 = smov %s2098_s18  ;;  %s2855_s18 = smov %s2857_s20 }
 0x1eb   :  { %13 = sbr.rel (!%p11_p12) target bundleno = 3 (0x3), region = 170 }

</bundles_post_ra>
